<compile_context>
chip_gen: v7x
topology: tpu7x:2x2x1
jax: 0.10.0
libtpu: 0.0.40
codegen_flags: <defaults>
</compile_context>

<pallas_src>
import math
from functools import partial

import jax
import jax.numpy as jnp
from jax import lax
from jax.experimental import pallas as pl
from jax.experimental.pallas import tpu as pltpu


# ---------------------------------------------------------------------------
# Lane-dense GEMM kernel (used for both weight-norm Linear layers).
# ---------------------------------------------------------------------------
def _dense_kernel(x_ref, wt_ref, o_ref, *, activation):
    acc = jnp.dot(x_ref[...], wt_ref[...], preferred_element_type=jnp.float32)
    if activation == "celu":
        # CELU(alpha=1): x if x > 0 else exp(x) - 1
        acc = jnp.where(acc > 0, acc, jnp.exp(acc) - 1.0)
    o_ref[...] = acc.astype(o_ref.dtype)


def dense(x, w, *, activation=None):
    """y = activation(x @ w.T); x: (B, F_in), w: (F_out, F_in)."""
    B, F_in = x.shape
    F_out = w.shape[0]
    wt = jnp.transpose(w)                                   # (F_in, F_out)
    block_n = 128 if F_out % 128 == 0 else F_out            # lane-dense output tiles
    grid = (F_out // block_n,)
    return pl.pallas_call(
        partial(_dense_kernel, activation=activation),
        out_shape=jax.ShapeDtypeStruct((B, F_out), jnp.float32),
        grid=grid,
        in_specs=[
            pl.BlockSpec((B, F_in), lambda j: (0, 0)),      # constant index -> fetched once
            pl.BlockSpec((F_in, block_n), lambda j: (0, j)),
        ],
        out_specs=pl.BlockSpec((B, block_n), lambda j: (0, j)),
        compiler_params=pltpu.CompilerParams(dimension_semantics=("parallel",)),
    )(x, wt)


# ---------------------------------------------------------------------------
# In-kernel structural matrices (iota / compare / select only).
# ---------------------------------------------------------------------------
def _shift_mat(n, seg, d):
    """(n, n) matrix S with (x @ S)[:, j] = x[:, j + d] if position j+d stays inside
    the length-`seg` segment that column j belongs to, else 0.  `seg` is a power of 2."""
    r = lax.broadcasted_iota(jnp.int32, (n, n), 0)
    c = lax.broadcasted_iota(jnp.int32, (n, n), 1)
    lc = jnp.bitwise_and(c, seg - 1)                 # in-segment position of column j
    hit = (r == c + d) & (lc + d >= 0) & (lc + d < seg)
    return jnp.where(hit, 1.0, 0.0).astype(jnp.float32)


def _pool_mat(n_in, n_out, seg_in, seg_out, rel_lo, rel_hi, scale):
    """(n_in, n_out) pooling matrix: output slot m of a segment averages input slots l
    of the same segment with rel_lo <= l - 2*m <= rel_hi, each with weight `scale`."""
    r = lax.broadcasted_iota(jnp.int32, (n_in, n_out), 0)
    c = lax.broadcasted_iota(jnp.int32, (n_in, n_out), 1)
    li = jnp.bitwise_and(r, seg_in - 1)
    lo = jnp.bitwise_and(c, seg_out - 1)
    same_seg = (r - li) * seg_out == (c - lo) * seg_in
    rel = li - 2 * lo
    hit = same_seg & (rel >= rel_lo) & (rel <= rel_hi)
    return jnp.where(hit, scale, 0.0).astype(jnp.float32)


def _conv_same(x, w_taps_ref, seg):
    """Stride-1 SAME conv in (C_in, n) layout, n = n_segments * seg.
    w_taps_ref: (K, C_out, C_in) dense per-tap weights (groups pre-expanded)."""
    K, C_out, _ = w_taps_ref.shape
    pad = (K - 1) // 2
    n = x.shape[1]
    acc = jnp.zeros((C_out, n), jnp.float32)
    for k in range(K):
        d = k - pad
        xs = x if d == 0 else jnp.dot(x, _shift_mat(n, seg, d),
                                      preferred_element_type=jnp.float32)
        acc = acc + jnp.dot(w_taps_ref[k], xs, preferred_element_type=jnp.float32)
    return acc


# ---------------------------------------------------------------------------
# Fused conv tower: layers_1 ... layers_5 (minus the final flatten).
# ---------------------------------------------------------------------------
def _conv_tower_kernel(h_ref, w1_ref, w2_ref, w3_ref, w4_ref, o_ref, *, bt, l1):
    l2 = l1 // 2                      # after adaptive avg pool
    l3 = l2 // 2                      # after final avg pool
    n1, n2, n3 = bt * l1, bt * l2, bt * l3

    x = h_ref[...]                                              # (n_channels, n1)

    # conv1 (grouped, pre-expanded) + ReLU
    y = jnp.maximum(_conv_same(x, w1_ref, l1), 0.0)             # (C1, n1)
    # AdaptiveAvgPool1d(l1 -> l2) == avg pool(kernel=2, stride=2)
    y = jnp.dot(y, _pool_mat(n1, n2, l1, l2, 0, 1, 0.5),
                preferred_element_type=jnp.float32)             # (C1, n2)

    # conv2 + ReLU (residual branch point)
    y = jnp.maximum(_conv_same(y, w2_ref, l2), 0.0)
    y_res = y
    # conv3 + ReLU
    y = jnp.maximum(_conv_same(y, w3_ref, l2), 0.0)
    # conv4 (depthwise, no activation)
    y = _conv_same(y, w4_ref, l2)
    # residual add + ReLU
    y = jnp.maximum(y + y_res, 0.0)

    # AvgPool1d(kernel=4, stride=2, padding=1), count_include_pad=True
    y = jnp.dot(y, _pool_mat(n2, n3, l2, l3, -1, 2, 0.25),
                preferred_element_type=jnp.float32)             # (C_conv, n3)

    o_ref[...] = y.astype(o_ref.dtype)


def conv_tower(h, w1_taps, w2_taps, w3_taps, w4_taps, *, batch_tile, layer_size):
    """h: (n_tiles, n_channels, batch_tile*layer_size)
       -> (n_tiles, C_conv, batch_tile*layer_size//4). All intermediates in VMEM."""
    n_tiles, c_in, n1 = h.shape
    c_conv = w4_taps.shape[1]
    n3 = batch_tile * (layer_size // 4)
    kernel = partial(_conv_tower_kernel, bt=batch_tile, l1=layer_size)
    return pl.pallas_call(
        kernel,
        out_shape=jax.ShapeDtypeStruct((n_tiles, c_conv, n3), jnp.float32),
        grid=(n_tiles,),
        in_specs=[
            pl.BlockSpec((None, c_in, n1), lambda i: (i, 0, 0)),
            # constant index_maps -> weights DMA'd once, stay resident across steps
            pl.BlockSpec(w1_taps.shape, lambda i: (0, 0, 0)),
            pl.BlockSpec(w2_taps.shape, lambda i: (0, 0, 0)),
            pl.BlockSpec(w3_taps.shape, lambda i: (0, 0, 0)),
            pl.BlockSpec(w4_taps.shape, lambda i: (0, 0, 0)),
        ],
        out_specs=pl.BlockSpec((None, c_conv, n3), lambda i: (i, 0, 0)),
        compiler_params=pltpu.CompilerParams(dimension_semantics=("parallel",)),
    )(h, w1_taps, w2_taps, w3_taps, w4_taps)


# ---------------------------------------------------------------------------
# Parameter preprocessing (weight_norm reparametrization + grouped-conv weight
# densification).  One-time, tiny, wrapper-side.
# ---------------------------------------------------------------------------
def _weight_norm_rows(v, g):           # nn.utils.weight_norm(Linear), dim=0
    norm = jnp.sqrt(jnp.sum(v * v, axis=1, keepdims=True))
    return v * (g[:, None] / norm)


def _weight_norm_scalar(v, g):         # nn.utils.weight_norm(conv, dim=None)
    norm = jnp.sqrt(jnp.sum(v * v))
    return v * (g / norm)


def _conv_taps_dense(w, groups):
    """(C_out, C_in_g, K) grouped-conv weight -> (K, C_out, C_in) dense per-tap mats."""
    c_out, c_in_g, k = w.shape
    c_in = c_in_g * groups
    c_out_g = c_out // groups
    taps = jnp.transpose(w, (2, 0, 1))                           # (K, C_out, C_in_g)
    base = (jnp.arange(c_out) // c_out_g) * c_in_g
    cols = base[:, None] + jnp.arange(c_in_g)[None, :]           # (C_out, C_in_g)
    onehot = (cols[:, :, None] == jnp.arange(c_in)[None, None, :]).astype(w.dtype)
    return jnp.einsum("koj,ojc->koc", taps, onehot)              # (K, C_out, C_in)


# ---------------------------------------------------------------------------
# Full tabCNN forward.
# ---------------------------------------------------------------------------
def tabcnn_forward(x, params, *, n_channels=16, layer_size=32, batch_tile=4):
    b = x.shape[0]
    x = x.reshape(b, -1).astype(jnp.float32)                 # x.view(B, -1)

    assert layer_size % 4 == 0 and (layer_size & (layer_size - 1)) == 0
    if b % batch_tile:
        batch_tile = b
    n_tiles = b // batch_tile
    l1 = layer_size
    l3 = l1 // 4

    w0 = _weight_norm_rows(params["v0"], params["g0"])
    w1 = _weight_norm_scalar(params["v1"], params["g1"])
    w2 = _weight_norm_scalar(params["v2"], params["g2"])
    w3 = _weight_norm_scalar(params["v3"], params["g3"])
    w4 = _weight_norm_scalar(params["v4"], params["g4"])
    w6 = _weight_norm_rows(params["v6"], params["g6"])

    c_conv = w2.shape[0]
    w1_taps = _conv_taps_dense(w1, groups=n_channels)         # (5, C1, n_channels)
    w2_taps = _conv_taps_dense(w2, groups=1)                  # (3, C_conv, C1)
    w3_taps = _conv_taps_dense(w3, groups=1)
    w4_taps = _conv_taps_dense(w4, groups=c_conv)             # (5, C_conv, C_conv)

    # layers_0: Linear + CELU (lane-dense Pallas GEMM)
    h = dense(x, w0, activation="celu")                       # (B, n_channels*l1)

    # -> channel-major conv layout (n_tiles, n_channels, batch_tile*l1); glue only.
    h = h.reshape(n_tiles, batch_tile, n_channels, l1)
    h = jnp.transpose(h, (0, 2, 1, 3)).reshape(n_tiles, n_channels, batch_tile * l1)

    # layers_1..layers_5: fused conv tower (single Pallas kernel)
    y = conv_tower(h, w1_taps, w2_taps, w3_taps, w4_taps,
                   batch_tile=batch_tile, layer_size=l1)      # (n_tiles, C_conv, bt*l3)

    # flatten back, matching torch.Flatten of (B, C_conv, l3)
    y = y.reshape(n_tiles, c_conv, batch_tile, l3)
    y = jnp.transpose(y, (0, 2, 1, 3)).reshape(b, c_conv * l3)

    # layers_6: Linear (Pallas)
    return dense(y, w6, activation=None)


# ---------------------------------------------------------------------------
# Pure-JAX reference (no Pallas) for correctness checking.
# ---------------------------------------------------------------------------
def tabcnn_reference(x, params, *, n_channels=16, layer_size=32):
    b = x.shape[0]
    x = x.reshape(b, -1).astype(jnp.float32)
    w0 = _weight_norm_rows(params["v0"], params["g0"])
    w1 = _weight_norm_scalar(params["v1"], params["g1"])
    w2 = _weight_norm_scalar(params["v2"], params["g2"])
    w3 = _weight_norm_scalar(params["v3"], params["g3"])
    w4 = _weight_norm_scalar(params["v4"], params["g4"])
    w6 = _weight_norm_rows(params["v6"], params["g6"])

    h = x @ w0.T
    h = jnp.where(h > 0, h, jnp.exp(h) - 1.0)                 # CELU(alpha=1)
    h = h.reshape(b, n_channels, layer_size)

    def conv1d(inp, w, pad, groups):
        return lax.conv_general_dilated(
            inp, w, window_strides=(1,), padding=[(pad, pad)],
            dimension_numbers=("NCH", "OIH", "NCH"), feature_group_count=groups)

    y = jnp.maximum(conv1d(h, w1, 2, n_channels), 0.0)
    y = y.reshape(b, y.shape[1], layer_size // 2, 2).mean(-1)  # adaptive avg pool /2
    y = jnp.maximum(conv1d(y, w2, 1, 1), 0.0)
    y_res = y
    y = jnp.maximum(conv1d(y, w3, 1, 1), 0.0)
    y = conv1d(y, w4, 2, w4.shape[0])
    y = jnp.maximum(y + y_res, 0.0)
    yp = jnp.pad(y, ((0, 0), (0, 0), (1, 1)))                  # AvgPool1d(4, 2, 1)
    y = jnp.stack([yp[:, :, 2 * m:2 * m + 4].mean(-1)
                   for m in range(layer_size // 4)], axis=-1)
    y = y.reshape(b, -1)
    return y @ w6.T


if __name__ == "__main__":
    # Small config consistent with the module defaults:
    # layer_size=32, n_channels=16, n_channels_conv=32, rate=2.
    in_shape = (8, 4, 6)          # batch=8, flattens to in_channels=24
    n_channels, layer_size, rate = 16, 32, 2
    n_channels_conv, n_classes = 32, 10

    in_channels = in_shape[1] * in_shape[2]
    L0 = layer_size * n_channels                   # 512
    C1 = n_channels * rate                         # 32
    out_feats = (layer_size // 4) * n_channels_conv  # 256

    key = jax.random.PRNGKey(0)
    keys = jax.random.split(key, 13)

    def _uinit(k, shape, fan_in):
        bound = 1.0 / math.sqrt(fan_in)
        return jax.random.uniform(k, shape, jnp.float32, -bound, bound)

    v0 = _uinit(keys[0], (L0, in_channels), in_channels)
    v1 = _uinit(keys[1], (C1, 1, 5), 5)                        # conv1, groups=16
    v2 = _uinit(keys[2], (n_channels_conv, C1, 3), C1 * 3)
    v3 = _uinit(keys[3], (n_channels_conv, n_channels_conv, 3), n_channels_conv * 3)
    v4 = _uinit(keys[4], (n_channels_conv, 1, 5), 5)           # conv4, depthwise
    v6 = _uinit(keys[5], (n_classes, out_feats), out_feats)

    def _rownorm(v):
        return jnp.sqrt(jnp.sum(v * v, axis=1))

    g0 = _rownorm(v0) * jax.random.uniform(keys[6], (L0,), jnp.float32, 0.9, 1.1)
    g1 = jnp.sqrt(jnp.sum(v1 * v1)) * jax.random.uniform(keys[7], (), jnp.float32, 0.9, 1.1)
    g2 = jnp.sqrt(jnp.sum(v2 * v2)) * jax.random.uniform(keys[8], (), jnp.float32, 0.9, 1.1)
    g3 = jnp.sqrt(jnp.sum(v3 * v3)) * jax.random.uniform(keys[9], (), jnp.float32, 0.9, 1.1)
    g4 = jnp.sqrt(jnp.sum(v4 * v4)) * jax.random.uniform(keys[10], (), jnp.float32, 0.9, 1.1)
    g6 = _rownorm(v6) * jax.random.uniform(keys[11], (n_classes,), jnp.float32, 0.9, 1.1)

    params = dict(v0=v0, g0=g0, v1=v1, g1=g1, v2=v2, g2=g2,
                  v3=v3, g3=g3, v4=v4, g4=g4, v6=v6, g6=g6)

    x = jax.random.normal(keys[12], in_shape, jnp.float32)

    fwd = jax.jit(tabcnn_forward)
    out = jax.block_until_ready(fwd(x, params))

    ref = tabcnn_reference(x, params)
    assert out.shape == (in_shape[0], n_classes), (out.shape, (in_shape[0], n_classes))
    max_err = float(jnp.max(jnp.abs(out - ref)))
    assert jnp.allclose(out, ref, atol=1e-4, rtol=1e-4), f"mismatch vs reference: {max_err}"
    print("KERNEL_OK")
</pallas_src>

<mosaic_0001>
module attributes {stable_mosaic.version = 11 : i64} {
  func.func @_dense_kernel(%arg0: i32, %arg1: memref<8x24xf32, #tpu.memory_space<vmem>>, %arg2: memref<24x128xf32, #tpu.memory_space<vmem>>, %arg3: memref<8x128xf32, #tpu.memory_space<vmem>>) attributes {dimension_semantics = [#tpu.dimension_semantics<parallel>], iteration_bounds = array<i64: 4>, scalar_prefetch = 0 : i64, scratch_operands = 0 : i64, tpu.core_type = #tpu.core_type<tc>, window_params = [{pipeline_mode = #tpu.pipeline_mode<synchronous>, transform_indices = @transform_0, window_bounds = array<i64: 8, 24>}, {transform_indices = @transform_1, window_bounds = array<i64: 24, 128>}, {transform_indices = @transform_2, window_bounds = array<i64: 8, 128>}]} {
    %c0 = arith.constant 0 : index
    %c0_0 = arith.constant 0 : index
    %0 = vector.load %arg1[%c0, %c0_0] : memref<8x24xf32, #tpu.memory_space<vmem>>, vector<8x24xf32>
    %c0_1 = arith.constant 0 : index
    %c0_2 = arith.constant 0 : index
    %1 = vector.load %arg2[%c0_1, %c0_2] : memref<24x128xf32, #tpu.memory_space<vmem>>, vector<24x128xf32>
    %cst = arith.constant dense<0.000000e+00> : vector<8x128xf32>
    %2 = tpu.matmul %0, %1, %cst {dimension_numbers = #tpu.dot_dimension_numbers<[1], [0], [0], [1], [0, 0, 1, 1], [], []>} : vector<8x24xf32>, vector<24x128xf32>, vector<8x128xf32> -> vector<8x128xf32>
    %cst_3 = arith.constant 0.000000e+00 : f32
    %3 = vector.broadcast %cst_3 : f32 to vector<8x128xf32>
    %4 = arith.cmpf ogt, %2, %3 : vector<8x128xf32>
    %5 = math.exp %2 : vector<8x128xf32>
    %cst_4 = arith.constant 1.000000e+00 : f32
    %6 = vector.broadcast %cst_4 : f32 to vector<8x128xf32>
    %7 = arith.subf %5, %6 : vector<8x128xf32>
    %8 = arith.select %4, %2, %7 : vector<8x128xi1>, vector<8x128xf32>
    %c0_5 = arith.constant 0 : index
    %c0_6 = arith.constant 0 : index
    %9 = vector.load %arg3[%c0_5, %c0_6] : memref<8x128xf32, #tpu.memory_space<vmem>>, vector<8x128xf32>
    tpu.vector_store %arg3[%c0_5, %c0_6], %8 {strides = array<i32>} : memref<8x128xf32, #tpu.memory_space<vmem>>, vector<8x128xf32>,
    return
  }
  func.func @transform_0(%arg0: i32) -> (i32, i32) {
    %c0_i32 = arith.constant 0 : i32
    %c0_i32_0 = arith.constant 0 : i32
    %c0_i32_1 = arith.constant 0 : i32
    return %c0_i32, %c0_i32_0 : i32, i32
  }
  func.func @transform_1(%arg0: i32) -> (i32, i32) {
    %c0_i32 = arith.constant 0 : i32
    %c0_i32_0 = arith.constant 0 : i32
    return %c0_i32, %arg0 : i32, i32
  }
  func.func @transform_2(%arg0: i32) -> (i32, i32) {
    %c0_i32 = arith.constant 0 : i32
    %c0_i32_0 = arith.constant 0 : i32
    return %c0_i32, %arg0 : i32, i32
  }
}

module attributes {stable_mosaic.version = 11 : i64} {
  func.func @_conv_tower_kernel(%arg0: i32, %arg1: memref<1x16x128xf32, #tpu.memory_space<vmem>>, %arg2: memref<5x32x16xf32, #tpu.memory_space<vmem>>, %arg3: memref<3x32x32xf32, #tpu.memory_space<vmem>>, %arg4: memref<3x32x32xf32, #tpu.memory_space<vmem>>, %arg5: memref<5x32x32xf32, #tpu.memory_space<vmem>>, %arg6: memref<1x32x32xf32, #tpu.memory_space<vmem>>) attributes {dimension_semantics = [#tpu.dimension_semantics<parallel>], iteration_bounds = array<i64: 2>, scalar_prefetch = 0 : i64, scratch_operands = 0 : i64, tpu.core_type = #tpu.core_type<tc>, window_params = [{transform_indices = @transform_0, window_bounds = array<i64: 1, 16, 128>}, {pipeline_mode = #tpu.pipeline_mode<synchronous>, transform_indices = @transform_1, window_bounds = array<i64: 5, 32, 16>}, {pipeline_mode = #tpu.pipeline_mode<synchronous>, transform_indices = @transform_2, window_bounds = array<i64: 3, 32, 32>}, {pipeline_mode = #tpu.pipeline_mode<synchronous>, transform_indices = @transform_3, window_bounds = array<i64: 3, 32, 32>}, {pipeline_mode = #tpu.pipeline_mode<synchronous>, transform_indices = @transform_4, window_bounds = array<i64: 5, 32, 32>}, {transform_indices = @transform_5, window_bounds = array<i64: 1, 32, 32>}]} {
    %c0 = arith.constant 0 : index
    %c0_0 = arith.constant 0 : index
    %c0_1 = arith.constant 0 : index
    %0 = vector.load %arg1[%c0, %c0_0, %c0_1] : memref<1x16x128xf32, #tpu.memory_space<vmem>>, vector<1x16x128xf32>
    %1 = vector.shape_cast %0 : vector<1x16x128xf32> to vector<16x128xf32>
    %cst = arith.constant 0.000000e+00 : f32
    %2 = vector.broadcast %cst : f32 to vector<32x128xf32>
    %3 = tpu.iota {dimensions = array<i32: 0>} : vector<128x128xi32>
    %4 = tpu.iota {dimensions = array<i32: 1>} : vector<128x128xi32>
    %c31_i32 = arith.constant 31 : i32
    %5 = vector.broadcast %c31_i32 : i32 to vector<128x128xi32>
    %6 = arith.andi %4, %5 : vector<128x128xi32>
    %c-2_i32 = arith.constant -2 : i32
    %7 = vector.broadcast %c-2_i32 : i32 to vector<128x128xi32>
    %8 = arith.addi %4, %7 : vector<128x128xi32>
    %9 = arith.cmpi eq, %3, %8 : vector<128x128xi32>
    %c-2_i32_2 = arith.constant -2 : i32
    %10 = vector.broadcast %c-2_i32_2 : i32 to vector<128x128xi32>
    %11 = arith.addi %6, %10 : vector<128x128xi32>
    %c0_i32 = arith.constant 0 : i32
    %12 = vector.broadcast %c0_i32 : i32 to vector<128x128xi32>
    %13 = arith.cmpi sge, %11, %12 : vector<128x128xi32>
    %14 = arith.andi %9, %13 : vector<128x128xi1>
    %c-2_i32_3 = arith.constant -2 : i32
    %15 = vector.broadcast %c-2_i32_3 : i32 to vector<128x128xi32>
    %16 = arith.addi %6, %15 : vector<128x128xi32>
    %c32_i32 = arith.constant 32 : i32
    %17 = vector.broadcast %c32_i32 : i32 to vector<128x128xi32>
    %18 = arith.cmpi slt, %16, %17 : vector<128x128xi32>
    %19 = arith.andi %14, %18 : vector<128x128xi1>
    %cst_4 = arith.constant 1.000000e+00 : f32
    %cst_5 = arith.constant 0.000000e+00 : f32
    %20 = vector.broadcast %cst_4 : f32 to vector<128x128xf32>
    %21 = vector.broadcast %cst_5 : f32 to vector<128x128xf32>
    %22 = arith.select %19, %20, %21 : vector<128x128xi1>, vector<128x128xf32>
    %cst_6 = arith.constant dense<0.000000e+00> : vector<16x128xf32>
    %23 = tpu.matmul %1, %22, %cst_6 {dimension_numbers = #tpu.dot_dimension_numbers<[1], [0], [0], [1], [0, 0, 1, 1], [], []>} : vector<16x128xf32>, vector<128x128xf32>, vector<16x128xf32> -> vector<16x128xf32>
    %c0_7 = arith.constant 0 : index
    %c0_8 = arith.constant 0 : index
    %c0_9 = arith.constant 0 : index
    %24 = vector.load %arg2[%c0_7, %c0_8, %c0_9] : memref<5x32x16xf32, #tpu.memory_space<vmem>>, vector<1x32x16xf32>
    %25 = vector.shape_cast %24 : vector<1x32x16xf32> to vector<32x16xf32>
    %cst_10 = arith.constant dense<0.000000e+00> : vector<32x128xf32>
    %26 = tpu.matmul %25, %23, %cst_10 {dimension_numbers = #tpu.dot_dimension_numbers<[1], [0], [0], [1], [0, 0, 1, 1], [], []>} : vector<32x16xf32>, vector<16x128xf32>, vector<32x128xf32> -> vector<32x128xf32>
    %27 = arith.addf %2, %26 : vector<32x128xf32>
    %28 = tpu.iota {dimensions = array<i32: 0>} : vector<128x128xi32>
    %29 = tpu.iota {dimensions = array<i32: 1>} : vector<128x128xi32>
    %c31_i32_11 = arith.constant 31 : i32
    %30 = vector.broadcast %c31_i32_11 : i32 to vector<128x128xi32>
    %31 = arith.andi %29, %30 : vector<128x128xi32>
    %c-1_i32 = arith.constant -1 : i32
    %32 = vector.broadcast %c-1_i32 : i32 to vector<128x128xi32>
    %33 = arith.addi %29, %32 : vector<128x128xi32>
    %34 = arith.cmpi eq, %28, %33 : vector<128x128xi32>
    %c-1_i32_12 = arith.constant -1 : i32
    %35 = vector.broadcast %c-1_i32_12 : i32 to vector<128x128xi32>
    %36 = arith.addi %31, %35 : vector<128x128xi32>
    %c0_i32_13 = arith.constant 0 : i32
    %37 = vector.broadcast %c0_i32_13 : i32 to vector<128x128xi32>
    %38 = arith.cmpi sge, %36, %37 : vector<128x128xi32>
    %39 = arith.andi %34, %38 : vector<128x128xi1>
    %c-1_i32_14 = arith.constant -1 : i32
    %40 = vector.broadcast %c-1_i32_14 : i32 to vector<128x128xi32>
    %41 = arith.addi %31, %40 : vector<128x128xi32>
    %c32_i32_15 = arith.constant 32 : i32
    %42 = vector.broadcast %c32_i32_15 : i32 to vector<128x128xi32>
    %43 = arith.cmpi slt, %41, %42 : vector<128x128xi32>
    %44 = arith.andi %39, %43 : vector<128x128xi1>
    %cst_16 = arith.constant 1.000000e+00 : f32
    %cst_17 = arith.constant 0.000000e+00 : f32
    %45 = vector.broadcast %cst_16 : f32 to vector<128x128xf32>
    %46 = vector.broadcast %cst_17 : f32 to vector<128x128xf32>
    %47 = arith.select %44, %45, %46 : vector<128x128xi1>, vector<128x128xf32>
    %cst_18 = arith.constant dense<0.000000e+00> : vector<16x128xf32>
    %48 = tpu.matmul %1, %47, %cst_18 {dimension_numbers = #tpu.dot_dimension_numbers<[1], [0], [0], [1], [0, 0, 1, 1], [], []>} : vector<16x128xf32>, vector<128x128xf32>, vector<16x128xf32> -> vector<16x128xf32>
    %c1 = arith.constant 1 : index
    %c0_19 = arith.constant 0 : index
    %c0_20 = arith.constant 0 : index
    %49 = vector.load %arg2[%c1, %c0_19, %c0_20] : memref<5x32x16xf32, #tpu.memory_space<vmem>>, vector<1x32x16xf32>
    %50 = vector.shape_cast %49 : vector<1x32x16xf32> to vector<32x16xf32>
    %cst_21 = arith.constant dense<0.000000e+00> : vector<32x128xf32>
    %51 = tpu.matmul %50, %48, %cst_21 {dimension_numbers = #tpu.dot_dimension_numbers<[1], [0], [0], [1], [0, 0, 1, 1], [], []>} : vector<32x16xf32>, vector<16x128xf32>, vector<32x128xf32> -> vector<32x128xf32>
    %52 = arith.addf %27, %51 : vector<32x128xf32>
    %c2 = arith.constant 2 : index
    %c0_22 = arith.constant 0 : index
    %c0_23 = arith.constant 0 : index
    %53 = vector.load %arg2[%c2, %c0_22, %c0_23] : memref<5x32x16xf32, #tpu.memory_space<vmem>>, vector<1x32x16xf32>
    %54 = vector.shape_cast %53 : vector<1x32x16xf32> to vector<32x16xf32>
    %cst_24 = arith.constant dense<0.000000e+00> : vector<32x128xf32>
    %55 = tpu.matmul %54, %1, %cst_24 {dimension_numbers = #tpu.dot_dimension_numbers<[1], [0], [0], [1], [0, 0, 1, 1], [], []>} : vector<32x16xf32>, vector<16x128xf32>, vector<32x128xf32> -> vector<32x128xf32>
    %56 = arith.addf %52, %55 : vector<32x128xf32>
    %57 = tpu.iota {dimensions = array<i32: 0>} : vector<128x128xi32>
    %58 = tpu.iota {dimensions = array<i32: 1>} : vector<128x128xi32>
    %c31_i32_25 = arith.constant 31 : i32
    %59 = vector.broadcast %c31_i32_25 : i32 to vector<128x128xi32>
    %60 = arith.andi %58, %59 : vector<128x128xi32>
    %c1_i32 = arith.constant 1 : i32
    %61 = vector.broadcast %c1_i32 : i32 to vector<128x128xi32>
    %62 = arith.addi %58, %61 : vector<128x128xi32>
    %63 = arith.cmpi eq, %57, %62 : vector<128x128xi32>
    %c1_i32_26 = arith.constant 1 : i32
    %64 = vector.broadcast %c1_i32_26 : i32 to vector<128x128xi32>
    %65 = arith.addi %60, %64 : vector<128x128xi32>
    %c0_i32_27 = arith.constant 0 : i32
    %66 = vector.broadcast %c0_i32_27 : i32 to vector<128x128xi32>
    %67 = arith.cmpi sge, %65, %66 : vector<128x128xi32>
    %68 = arith.andi %63, %67 : vector<128x128xi1>
    %c1_i32_28 = arith.constant 1 : i32
    %69 = vector.broadcast %c1_i32_28 : i32 to vector<128x128xi32>
    %70 = arith.addi %60, %69 : vector<128x128xi32>
    %c32_i32_29 = arith.constant 32 : i32
    %71 = vector.broadcast %c32_i32_29 : i32 to vector<128x128xi32>
    %72 = arith.cmpi slt, %70, %71 : vector<128x128xi32>
    %73 = arith.andi %68, %72 : vector<128x128xi1>
    %cst_30 = arith.constant 1.000000e+00 : f32
    %cst_31 = arith.constant 0.000000e+00 : f32
    %74 = vector.broadcast %cst_30 : f32 to vector<128x128xf32>
    %75 = vector.broadcast %cst_31 : f32 to vector<128x128xf32>
    %76 = arith.select %73, %74, %75 : vector<128x128xi1>, vector<128x128xf32>
    %cst_32 = arith.constant dense<0.000000e+00> : vector<16x128xf32>
    %77 = tpu.matmul %1, %76, %cst_32 {dimension_numbers = #tpu.dot_dimension_numbers<[1], [0], [0], [1], [0, 0, 1, 1], [], []>} : vector<16x128xf32>, vector<128x128xf32>, vector<16x128xf32> -> vector<16x128xf32>
    %c3 = arith.constant 3 : index
    %c0_33 = arith.constant 0 : index
    %c0_34 = arith.constant 0 : index
    %78 = vector.load %arg2[%c3, %c0_33, %c0_34] : memref<5x32x16xf32, #tpu.memory_space<vmem>>, vector<1x32x16xf32>
    %79 = vector.shape_cast %78 : vector<1x32x16xf32> to vector<32x16xf32>
    %cst_35 = arith.constant dense<0.000000e+00> : vector<32x128xf32>
    %80 = tpu.matmul %79, %77, %cst_35 {dimension_numbers = #tpu.dot_dimension_numbers<[1], [0], [0], [1], [0, 0, 1, 1], [], []>} : vector<32x16xf32>, vector<16x128xf32>, vector<32x128xf32> -> vector<32x128xf32>
    %81 = arith.addf %56, %80 : vector<32x128xf32>
    %82 = tpu.iota {dimensions = array<i32: 0>} : vector<128x128xi32>
    %83 = tpu.iota {dimensions = array<i32: 1>} : vector<128x128xi32>
    %c31_i32_36 = arith.constant 31 : i32
    %84 = vector.broadcast %c31_i32_36 : i32 to vector<128x128xi32>
    %85 = arith.andi %83, %84 : vector<128x128xi32>
    %c2_i32 = arith.constant 2 : i32
    %86 = vector.broadcast %c2_i32 : i32 to vector<128x128xi32>
    %87 = arith.addi %83, %86 : vector<128x128xi32>
    %88 = arith.cmpi eq, %82, %87 : vector<128x128xi32>
    %c2_i32_37 = arith.constant 2 : i32
    %89 = vector.broadcast %c2_i32_37 : i32 to vector<128x128xi32>
    %90 = arith.addi %85, %89 : vector<128x128xi32>
    %c0_i32_38 = arith.constant 0 : i32
    %91 = vector.broadcast %c0_i32_38 : i32 to vector<128x128xi32>
    %92 = arith.cmpi sge, %90, %91 : vector<128x128xi32>
    %93 = arith.andi %88, %92 : vector<128x128xi1>
    %c2_i32_39 = arith.constant 2 : i32
    %94 = vector.broadcast %c2_i32_39 : i32 to vector<128x128xi32>
    %95 = arith.addi %85, %94 : vector<128x128xi32>
    %c32_i32_40 = arith.constant 32 : i32
    %96 = vector.broadcast %c32_i32_40 : i32 to vector<128x128xi32>
    %97 = arith.cmpi slt, %95, %96 : vector<128x128xi32>
    %98 = arith.andi %93, %97 : vector<128x128xi1>
    %cst_41 = arith.constant 1.000000e+00 : f32
    %cst_42 = arith.constant 0.000000e+00 : f32
    %99 = vector.broadcast %cst_41 : f32 to vector<128x128xf32>
    %100 = vector.broadcast %cst_42 : f32 to vector<128x128xf32>
    %101 = arith.select %98, %99, %100 : vector<128x128xi1>, vector<128x128xf32>
    %cst_43 = arith.constant dense<0.000000e+00> : vector<16x128xf32>
    %102 = tpu.matmul %1, %101, %cst_43 {dimension_numbers = #tpu.dot_dimension_numbers<[1], [0], [0], [1], [0, 0, 1, 1], [], []>} : vector<16x128xf32>, vector<128x128xf32>, vector<16x128xf32> -> vector<16x128xf32>
    %c4 = arith.constant 4 : index
    %c0_44 = arith.constant 0 : index
    %c0_45 = arith.constant 0 : index
    %103 = vector.load %arg2[%c4, %c0_44, %c0_45] : memref<5x32x16xf32, #tpu.memory_space<vmem>>, vector<1x32x16xf32>
    %104 = vector.shape_cast %103 : vector<1x32x16xf32> to vector<32x16xf32>
    %cst_46 = arith.constant dense<0.000000e+00> : vector<32x128xf32>
    %105 = tpu.matmul %104, %102, %cst_46 {dimension_numbers = #tpu.dot_dimension_numbers<[1], [0], [0], [1], [0, 0, 1, 1], [], []>} : vector<32x16xf32>, vector<16x128xf32>, vector<32x128xf32> -> vector<32x128xf32>
    %106 = arith.addf %81, %105 : vector<32x128xf32>
    %cst_47 = arith.constant 0.000000e+00 : f32
    %107 = vector.broadcast %cst_47 : f32 to vector<32x128xf32>
    %108 = arith.maximumf %106, %107 : vector<32x128xf32>
    %109 = tpu.iota {dimensions = array<i32: 0>} : vector<128x64xi32>
    %110 = tpu.iota {dimensions = array<i32: 1>} : vector<128x64xi32>
    %c31_i32_48 = arith.constant 31 : i32
    %111 = vector.broadcast %c31_i32_48 : i32 to vector<128x64xi32>
    %112 = arith.andi %109, %111 : vector<128x64xi32>
    %c15_i32 = arith.constant 15 : i32
    %113 = vector.broadcast %c15_i32 : i32 to vector<128x64xi32>
    %114 = arith.andi %110, %113 : vector<128x64xi32>
    %115 = arith.subi %109, %112 : vector<128x64xi32>
    %c16_i32 = arith.constant 16 : i32
    %116 = vector.broadcast %c16_i32 : i32 to vector<128x64xi32>
    %117 = arith.muli %115, %116 : vector<128x64xi32>
    %118 = arith.subi %110, %114 : vector<128x64xi32>
    %c32_i32_49 = arith.constant 32 : i32
    %119 = vector.broadcast %c32_i32_49 : i32 to vector<128x64xi32>
    %120 = arith.muli %118, %119 : vector<128x64xi32>
    %121 = arith.cmpi eq, %117, %120 : vector<128x64xi32>
    %c2_i32_50 = arith.constant 2 : i32
    %122 = vector.broadcast %c2_i32_50 : i32 to vector<128x64xi32>
    %123 = arith.muli %122, %114 : vector<128x64xi32>
    %124 = arith.subi %112, %123 : vector<128x64xi32>
    %c0_i32_51 = arith.constant 0 : i32
    %125 = vector.broadcast %c0_i32_51 : i32 to vector<128x64xi32>
    %126 = arith.cmpi sge, %124, %125 : vector<128x64xi32>
    %127 = arith.andi %121, %126 : vector<128x64xi1>
    %c1_i32_52 = arith.constant 1 : i32
    %128 = vector.broadcast %c1_i32_52 : i32 to vector<128x64xi32>
    %129 = arith.cmpi sle, %124, %128 : vector<128x64xi32>
    %130 = arith.andi %127, %129 : vector<128x64xi1>
    %cst_53 = arith.constant 5.000000e-01 : f32
    %cst_54 = arith.constant 0.000000e+00 : f32
    %131 = vector.broadcast %cst_53 : f32 to vector<128x64xf32>
    %132 = vector.broadcast %cst_54 : f32 to vector<128x64xf32>
    %133 = arith.select %130, %131, %132 : vector<128x64xi1>, vector<128x64xf32>
    %cst_55 = arith.constant dense<0.000000e+00> : vector<32x64xf32>
    %134 = tpu.matmul %108, %133, %cst_55 {dimension_numbers = #tpu.dot_dimension_numbers<[1], [0], [0], [1], [0, 0, 1, 1], [], []>} : vector<32x128xf32>, vector<128x64xf32>, vector<32x64xf32> -> vector<32x64xf32>
    %cst_56 = arith.constant 0.000000e+00 : f32
    %135 = vector.broadcast %cst_56 : f32 to vector<32x64xf32>
    %136 = tpu.iota {dimensions = array<i32: 0>} : vector<64x64xi32>
    %137 = tpu.iota {dimensions = array<i32: 1>} : vector<64x64xi32>
    %c15_i32_57 = arith.constant 15 : i32
    %138 = vector.broadcast %c15_i32_57 : i32 to vector<64x64xi32>
    %139 = arith.andi %137, %138 : vector<64x64xi32>
    %c-1_i32_58 = arith.constant -1 : i32
    %140 = vector.broadcast %c-1_i32_58 : i32 to vector<64x64xi32>
    %141 = arith.addi %137, %140 : vector<64x64xi32>
    %142 = arith.cmpi eq, %136, %141 : vector<64x64xi32>
    %c-1_i32_59 = arith.constant -1 : i32
    %143 = vector.broadcast %c-1_i32_59 : i32 to vector<64x64xi32>
    %144 = arith.addi %139, %143 : vector<64x64xi32>
    %c0_i32_60 = arith.constant 0 : i32
    %145 = vector.broadcast %c0_i32_60 : i32 to vector<64x64xi32>
    %146 = arith.cmpi sge, %144, %145 : vector<64x64xi32>
    %147 = arith.andi %142, %146 : vector<64x64xi1>
    %c-1_i32_61 = arith.constant -1 : i32
    %148 = vector.broadcast %c-1_i32_61 : i32 to vector<64x64xi32>
    %149 = arith.addi %139, %148 : vector<64x64xi32>
    %c16_i32_62 = arith.constant 16 : i32
    %150 = vector.broadcast %c16_i32_62 : i32 to vector<64x64xi32>
    %151 = arith.cmpi slt, %149, %150 : vector<64x64xi32>
    %152 = arith.andi %147, %151 : vector<64x64xi1>
    %cst_63 = arith.constant 1.000000e+00 : f32
    %cst_64 = arith.constant 0.000000e+00 : f32
    %153 = vector.broadcast %cst_63 : f32 to vector<64x64xf32>
    %154 = vector.broadcast %cst_64 : f32 to vector<64x64xf32>
    %155 = arith.select %152, %153, %154 : vector<64x64xi1>, vector<64x64xf32>
    %cst_65 = arith.constant dense<0.000000e+00> : vector<32x64xf32>
    %156 = tpu.matmul %134, %155, %cst_65 {dimension_numbers = #tpu.dot_dimension_numbers<[1], [0], [0], [1], [0, 0, 1, 1], [], []>} : vector<32x64xf32>, vector<64x64xf32>, vector<32x64xf32> -> vector<32x64xf32>
    %c0_66 = arith.constant 0 : index
    %c0_67 = arith.constant 0 : index
    %c0_68 = arith.constant 0 : index
    %157 = vector.load %arg3[%c0_66, %c0_67, %c0_68] : memref<3x32x32xf32, #tpu.memory_space<vmem>>, vector<1x32x32xf32>
    %158 = vector.shape_cast %157 : vector<1x32x32xf32> to vector<32x32xf32>
    %cst_69 = arith.constant dense<0.000000e+00> : vector<32x64xf32>
    %159 = tpu.matmul %158, %156, %cst_69 {dimension_numbers = #tpu.dot_dimension_numbers<[1], [0], [0], [1], [0, 0, 1, 1], [], []>} : vector<32x32xf32>, vector<32x64xf32>, vector<32x64xf32> -> vector<32x64xf32>
    %160 = arith.addf %135, %159 : vector<32x64xf32>
    %c1_70 = arith.constant 1 : index
    %c0_71 = arith.constant 0 : index
    %c0_72 = arith.constant 0 : index
    %161 = vector.load %arg3[%c1_70, %c0_71, %c0_72] : memref<3x32x32xf32, #tpu.memory_space<vmem>>, vector<1x32x32xf32>
    %162 = vector.shape_cast %161 : vector<1x32x32xf32> to vector<32x32xf32>
    %cst_73 = arith.constant dense<0.000000e+00> : vector<32x64xf32>
    %163 = tpu.matmul %162, %134, %cst_73 {dimension_numbers = #tpu.dot_dimension_numbers<[1], [0], [0], [1], [0, 0, 1, 1], [], []>} : vector<32x32xf32>, vector<32x64xf32>, vector<32x64xf32> -> vector<32x64xf32>
    %164 = arith.addf %160, %163 : vector<32x64xf32>
    %165 = tpu.iota {dimensions = array<i32: 0>} : vector<64x64xi32>
    %166 = tpu.iota {dimensions = array<i32: 1>} : vector<64x64xi32>
    %c15_i32_74 = arith.constant 15 : i32
    %167 = vector.broadcast %c15_i32_74 : i32 to vector<64x64xi32>
    %168 = arith.andi %166, %167 : vector<64x64xi32>
    %c1_i32_75 = arith.constant 1 : i32
    %169 = vector.broadcast %c1_i32_75 : i32 to vector<64x64xi32>
    %170 = arith.addi %166, %169 : vector<64x64xi32>
    %171 = arith.cmpi eq, %165, %170 : vector<64x64xi32>
    %c1_i32_76 = arith.constant 1 : i32
    %172 = vector.broadcast %c1_i32_76 : i32 to vector<64x64xi32>
    %173 = arith.addi %168, %172 : vector<64x64xi32>
    %c0_i32_77 = arith.constant 0 : i32
    %174 = vector.broadcast %c0_i32_77 : i32 to vector<64x64xi32>
    %175 = arith.cmpi sge, %173, %174 : vector<64x64xi32>
    %176 = arith.andi %171, %175 : vector<64x64xi1>
    %c1_i32_78 = arith.constant 1 : i32
    %177 = vector.broadcast %c1_i32_78 : i32 to vector<64x64xi32>
    %178 = arith.addi %168, %177 : vector<64x64xi32>
    %c16_i32_79 = arith.constant 16 : i32
    %179 = vector.broadcast %c16_i32_79 : i32 to vector<64x64xi32>
    %180 = arith.cmpi slt, %178, %179 : vector<64x64xi32>
    %181 = arith.andi %176, %180 : vector<64x64xi1>
    %cst_80 = arith.constant 1.000000e+00 : f32
    %cst_81 = arith.constant 0.000000e+00 : f32
    %182 = vector.broadcast %cst_80 : f32 to vector<64x64xf32>
    %183 = vector.broadcast %cst_81 : f32 to vector<64x64xf32>
    %184 = arith.select %181, %182, %183 : vector<64x64xi1>, vector<64x64xf32>
    %cst_82 = arith.constant dense<0.000000e+00> : vector<32x64xf32>
    %185 = tpu.matmul %134, %184, %cst_82 {dimension_numbers = #tpu.dot_dimension_numbers<[1], [0], [0], [1], [0, 0, 1, 1], [], []>} : vector<32x64xf32>, vector<64x64xf32>, vector<32x64xf32> -> vector<32x64xf32>
    %c2_83 = arith.constant 2 : index
    %c0_84 = arith.constant 0 : index
    %c0_85 = arith.constant 0 : index
    %186 = vector.load %arg3[%c2_83, %c0_84, %c0_85] : memref<3x32x32xf32, #tpu.memory_space<vmem>>, vector<1x32x32xf32>
    %187 = vector.shape_cast %186 : vector<1x32x32xf32> to vector<32x32xf32>
    %cst_86 = arith.constant dense<0.000000e+00> : vector<32x64xf32>
    %188 = tpu.matmul %187, %185, %cst_86 {dimension_numbers = #tpu.dot_dimension_numbers<[1], [0], [0], [1], [0, 0, 1, 1], [], []>} : vector<32x32xf32>, vector<32x64xf32>, vector<32x64xf32> -> vector<32x64xf32>
    %189 = arith.addf %164, %188 : vector<32x64xf32>
    %cst_87 = arith.constant 0.000000e+00 : f32
    %190 = vector.broadcast %cst_87 : f32 to vector<32x64xf32>
    %191 = arith.maximumf %189, %190 : vector<32x64xf32>
    %cst_88 = arith.constant 0.000000e+00 : f32
    %192 = vector.broadcast %cst_88 : f32 to vector<32x64xf32>
    %193 = tpu.iota {dimensions = array<i32: 0>} : vector<64x64xi32>
    %194 = tpu.iota {dimensions = array<i32: 1>} : vector<64x64xi32>
    %c15_i32_89 = arith.constant 15 : i32
    %195 = vector.broadcast %c15_i32_89 : i32 to vector<64x64xi32>
    %196 = arith.andi %194, %195 : vector<64x64xi32>
    %c-1_i32_90 = arith.constant -1 : i32
    %197 = vector.broadcast %c-1_i32_90 : i32 to vector<64x64xi32>
    %198 = arith.addi %194, %197 : vector<64x64xi32>
    %199 = arith.cmpi eq, %193, %198 : vector<64x64xi32>
    %c-1_i32_91 = arith.constant -1 : i32
    %200 = vector.broadcast %c-1_i32_91 : i32 to vector<64x64xi32>
    %201 = arith.addi %196, %200 : vector<64x64xi32>
    %c0_i32_92 = arith.constant 0 : i32
    %202 = vector.broadcast %c0_i32_92 : i32 to vector<64x64xi32>
    %203 = arith.cmpi sge, %201, %202 : vector<64x64xi32>
    %204 = arith.andi %199, %203 : vector<64x64xi1>
    %c-1_i32_93 = arith.constant -1 : i32
    %205 = vector.broadcast %c-1_i32_93 : i32 to vector<64x64xi32>
    %206 = arith.addi %196, %205 : vector<64x64xi32>
    %c16_i32_94 = arith.constant 16 : i32
    %207 = vector.broadcast %c16_i32_94 : i32 to vector<64x64xi32>
    %208 = arith.cmpi slt, %206, %207 : vector<64x64xi32>
    %209 = arith.andi %204, %208 : vector<64x64xi1>
    %cst_95 = arith.constant 1.000000e+00 : f32
    %cst_96 = arith.constant 0.000000e+00 : f32
    %210 = vector.broadcast %cst_95 : f32 to vector<64x64xf32>
    %211 = vector.broadcast %cst_96 : f32 to vector<64x64xf32>
    %212 = arith.select %209, %210, %211 : vector<64x64xi1>, vector<64x64xf32>
    %cst_97 = arith.constant dense<0.000000e+00> : vector<32x64xf32>
    %213 = tpu.matmul %191, %212, %cst_97 {dimension_numbers = #tpu.dot_dimension_numbers<[1], [0], [0], [1], [0, 0, 1, 1], [], []>} : vector<32x64xf32>, vector<64x64xf32>, vector<32x64xf32> -> vector<32x64xf32>
    %c0_98 = arith.constant 0 : index
    %c0_99 = arith.constant 0 : index
    %c0_100 = arith.constant 0 : index
    %214 = vector.load %arg4[%c0_98, %c0_99, %c0_100] : memref<3x32x32xf32, #tpu.memory_space<vmem>>, vector<1x32x32xf32>
    %215 = vector.shape_cast %214 : vector<1x32x32xf32> to vector<32x32xf32>
    %cst_101 = arith.constant dense<0.000000e+00> : vector<32x64xf32>
    %216 = tpu.matmul %215, %213, %cst_101 {dimension_numbers = #tpu.dot_dimension_numbers<[1], [0], [0], [1], [0, 0, 1, 1], [], []>} : vector<32x32xf32>, vector<32x64xf32>, vector<32x64xf32> -> vector<32x64xf32>
    %217 = arith.addf %192, %216 : vector<32x64xf32>
    %c1_102 = arith.constant 1 : index
    %c0_103 = arith.constant 0 : index
    %c0_104 = arith.constant 0 : index
    %218 = vector.load %arg4[%c1_102, %c0_103, %c0_104] : memref<3x32x32xf32, #tpu.memory_space<vmem>>, vector<1x32x32xf32>
    %219 = vector.shape_cast %218 : vector<1x32x32xf32> to vector<32x32xf32>
    %cst_105 = arith.constant dense<0.000000e+00> : vector<32x64xf32>
    %220 = tpu.matmul %219, %191, %cst_105 {dimension_numbers = #tpu.dot_dimension_numbers<[1], [0], [0], [1], [0, 0, 1, 1], [], []>} : vector<32x32xf32>, vector<32x64xf32>, vector<32x64xf32> -> vector<32x64xf32>
    %221 = arith.addf %217, %220 : vector<32x64xf32>
    %222 = tpu.iota {dimensions = array<i32: 0>} : vector<64x64xi32>
    %223 = tpu.iota {dimensions = array<i32: 1>} : vector<64x64xi32>
    %c15_i32_106 = arith.constant 15 : i32
    %224 = vector.broadcast %c15_i32_106 : i32 to vector<64x64xi32>
    %225 = arith.andi %223, %224 : vector<64x64xi32>
    %c1_i32_107 = arith.constant 1 : i32
    %226 = vector.broadcast %c1_i32_107 : i32 to vector<64x64xi32>
    %227 = arith.addi %223, %226 : vector<64x64xi32>
    %228 = arith.cmpi eq, %222, %227 : vector<64x64xi32>
    %c1_i32_108 = arith.constant 1 : i32
    %229 = vector.broadcast %c1_i32_108 : i32 to vector<64x64xi32>
    %230 = arith.addi %225, %229 : vector<64x64xi32>
    %c0_i32_109 = arith.constant 0 : i32
    %231 = vector.broadcast %c0_i32_109 : i32 to vector<64x64xi32>
    %232 = arith.cmpi sge, %230, %231 : vector<64x64xi32>
    %233 = arith.andi %228, %232 : vector<64x64xi1>
    %c1_i32_110 = arith.constant 1 : i32
    %234 = vector.broadcast %c1_i32_110 : i32 to vector<64x64xi32>
    %235 = arith.addi %225, %234 : vector<64x64xi32>
    %c16_i32_111 = arith.constant 16 : i32
    %236 = vector.broadcast %c16_i32_111 : i32 to vector<64x64xi32>
    %237 = arith.cmpi slt, %235, %236 : vector<64x64xi32>
    %238 = arith.andi %233, %237 : vector<64x64xi1>
    %cst_112 = arith.constant 1.000000e+00 : f32
    %cst_113 = arith.constant 0.000000e+00 : f32
    %239 = vector.broadcast %cst_112 : f32 to vector<64x64xf32>
    %240 = vector.broadcast %cst_113 : f32 to vector<64x64xf32>
    %241 = arith.select %238, %239, %240 : vector<64x64xi1>, vector<64x64xf32>
    %cst_114 = arith.constant dense<0.000000e+00> : vector<32x64xf32>
    %242 = tpu.matmul %191, %241, %cst_114 {dimension_numbers = #tpu.dot_dimension_numbers<[1], [0], [0], [1], [0, 0, 1, 1], [], []>} : vector<32x64xf32>, vector<64x64xf32>, vector<32x64xf32> -> vector<32x64xf32>
    %c2_115 = arith.constant 2 : index
    %c0_116 = arith.constant 0 : index
    %c0_117 = arith.constant 0 : index
    %243 = vector.load %arg4[%c2_115, %c0_116, %c0_117] : memref<3x32x32xf32, #tpu.memory_space<vmem>>, vector<1x32x32xf32>
    %244 = vector.shape_cast %243 : vector<1x32x32xf32> to vector<32x32xf32>
    %cst_118 = arith.constant dense<0.000000e+00> : vector<32x64xf32>
    %245 = tpu.matmul %244, %242, %cst_118 {dimension_numbers = #tpu.dot_dimension_numbers<[1], [0], [0], [1], [0, 0, 1, 1], [], []>} : vector<32x32xf32>, vector<32x64xf32>, vector<32x64xf32> -> vector<32x64xf32>
    %246 = arith.addf %221, %245 : vector<32x64xf32>
    %cst_119 = arith.constant 0.000000e+00 : f32
    %247 = vector.broadcast %cst_119 : f32 to vector<32x64xf32>
    %248 = arith.maximumf %246, %247 : vector<32x64xf32>
    %cst_120 = arith.constant 0.000000e+00 : f32
    %249 = vector.broadcast %cst_120 : f32 to vector<32x64xf32>
    %250 = tpu.iota {dimensions = array<i32: 0>} : vector<64x64xi32>
    %251 = tpu.iota {dimensions = array<i32: 1>} : vector<64x64xi32>
    %c15_i32_121 = arith.constant 15 : i32
    %252 = vector.broadcast %c15_i32_121 : i32 to vector<64x64xi32>
    %253 = arith.andi %251, %252 : vector<64x64xi32>
    %c-2_i32_122 = arith.constant -2 : i32
    %254 = vector.broadcast %c-2_i32_122 : i32 to vector<64x64xi32>
    %255 = arith.addi %251, %254 : vector<64x64xi32>
    %256 = arith.cmpi eq, %250, %255 : vector<64x64xi32>
    %c-2_i32_123 = arith.constant -2 : i32
    %257 = vector.broadcast %c-2_i32_123 : i32 to vector<64x64xi32>
    %258 = arith.addi %253, %257 : vector<64x64xi32>
    %c0_i32_124 = arith.constant 0 : i32
    %259 = vector.broadcast %c0_i32_124 : i32 to vector<64x64xi32>
    %260 = arith.cmpi sge, %258, %259 : vector<64x64xi32>
    %261 = arith.andi %256, %260 : vector<64x64xi1>
    %c-2_i32_125 = arith.constant -2 : i32
    %262 = vector.broadcast %c-2_i32_125 : i32 to vector<64x64xi32>
    %263 = arith.addi %253, %262 : vector<64x64xi32>
    %c16_i32_126 = arith.constant 16 : i32
    %264 = vector.broadcast %c16_i32_126 : i32 to vector<64x64xi32>
    %265 = arith.cmpi slt, %263, %264 : vector<64x64xi32>
    %266 = arith.andi %261, %265 : vector<64x64xi1>
    %cst_127 = arith.constant 1.000000e+00 : f32
    %cst_128 = arith.constant 0.000000e+00 : f32
    %267 = vector.broadcast %cst_127 : f32 to vector<64x64xf32>
    %268 = vector.broadcast %cst_128 : f32 to vector<64x64xf32>
    %269 = arith.select %266, %267, %268 : vector<64x64xi1>, vector<64x64xf32>
    %cst_129 = arith.constant dense<0.000000e+00> : vector<32x64xf32>
    %270 = tpu.matmul %248, %269, %cst_129 {dimension_numbers = #tpu.dot_dimension_numbers<[1], [0], [0], [1], [0, 0, 1, 1], [], []>} : vector<32x64xf32>, vector<64x64xf32>, vector<32x64xf32> -> vector<32x64xf32>
    %c0_130 = arith.constant 0 : index
    %c0_131 = arith.constant 0 : index
    %c0_132 = arith.constant 0 : index
    %271 = vector.load %arg5[%c0_130, %c0_131, %c0_132] : memref<5x32x32xf32, #tpu.memory_space<vmem>>, vector<1x32x32xf32>
    %272 = vector.shape_cast %271 : vector<1x32x32xf32> to vector<32x32xf32>
    %cst_133 = arith.constant dense<0.000000e+00> : vector<32x64xf32>
    %273 = tpu.matmul %272, %270, %cst_133 {dimension_numbers = #tpu.dot_dimension_numbers<[1], [0], [0], [1], [0, 0, 1, 1], [], []>} : vector<32x32xf32>, vector<32x64xf32>, vector<32x64xf32> -> vector<32x64xf32>
    %274 = arith.addf %249, %273 : vector<32x64xf32>
    %275 = tpu.iota {dimensions = array<i32: 0>} : vector<64x64xi32>
    %276 = tpu.iota {dimensions = array<i32: 1>} : vector<64x64xi32>
    %c15_i32_134 = arith.constant 15 : i32
    %277 = vector.broadcast %c15_i32_134 : i32 to vector<64x64xi32>
    %278 = arith.andi %276, %277 : vector<64x64xi32>
    %c-1_i32_135 = arith.constant -1 : i32
    %279 = vector.broadcast %c-1_i32_135 : i32 to vector<64x64xi32>
    %280 = arith.addi %276, %279 : vector<64x64xi32>
    %281 = arith.cmpi eq, %275, %280 : vector<64x64xi32>
    %c-1_i32_136 = arith.constant -1 : i32
    %282 = vector.broadcast %c-1_i32_136 : i32 to vector<64x64xi32>
    %283 = arith.addi %278, %282 : vector<64x64xi32>
    %c0_i32_137 = arith.constant 0 : i32
    %284 = vector.broadcast %c0_i32_137 : i32 to vector<64x64xi32>
    %285 = arith.cmpi sge, %283, %284 : vector<64x64xi32>
    %286 = arith.andi %281, %285 : vector<64x64xi1>
    %c-1_i32_138 = arith.constant -1 : i32
    %287 = vector.broadcast %c-1_i32_138 : i32 to vector<64x64xi32>
    %288 = arith.addi %278, %287 : vector<64x64xi32>
    %c16_i32_139 = arith.constant 16 : i32
    %289 = vector.broadcast %c16_i32_139 : i32 to vector<64x64xi32>
    %290 = arith.cmpi slt, %288, %289 : vector<64x64xi32>
    %291 = arith.andi %286, %290 : vector<64x64xi1>
    %cst_140 = arith.constant 1.000000e+00 : f32
    %cst_141 = arith.constant 0.000000e+00 : f32
    %292 = vector.broadcast %cst_140 : f32 to vector<64x64xf32>
    %293 = vector.broadcast %cst_141 : f32 to vector<64x64xf32>
    %294 = arith.select %291, %292, %293 : vector<64x64xi1>, vector<64x64xf32>
    %cst_142 = arith.constant dense<0.000000e+00> : vector<32x64xf32>
    %295 = tpu.matmul %248, %294, %cst_142 {dimension_numbers = #tpu.dot_dimension_numbers<[1], [0], [0], [1], [0, 0, 1, 1], [], []>} : vector<32x64xf32>, vector<64x64xf32>, vector<32x64xf32> -> vector<32x64xf32>
    %c1_143 = arith.constant 1 : index
    %c0_144 = arith.constant 0 : index
    %c0_145 = arith.constant 0 : index
    %296 = vector.load %arg5[%c1_143, %c0_144, %c0_145] : memref<5x32x32xf32, #tpu.memory_space<vmem>>, vector<1x32x32xf32>
    %297 = vector.shape_cast %296 : vector<1x32x32xf32> to vector<32x32xf32>
    %cst_146 = arith.constant dense<0.000000e+00> : vector<32x64xf32>
    %298 = tpu.matmul %297, %295, %cst_146 {dimension_numbers = #tpu.dot_dimension_numbers<[1], [0], [0], [1], [0, 0, 1, 1], [], []>} : vector<32x32xf32>, vector<32x64xf32>, vector<32x64xf32> -> vector<32x64xf32>
    %299 = arith.addf %274, %298 : vector<32x64xf32>
    %c2_147 = arith.constant 2 : index
    %c0_148 = arith.constant 0 : index
    %c0_149 = arith.constant 0 : index
    %300 = vector.load %arg5[%c2_147, %c0_148, %c0_149] : memref<5x32x32xf32, #tpu.memory_space<vmem>>, vector<1x32x32xf32>
    %301 = vector.shape_cast %300 : vector<1x32x32xf32> to vector<32x32xf32>
    %cst_150 = arith.constant dense<0.000000e+00> : vector<32x64xf32>
    %302 = tpu.matmul %301, %248, %cst_150 {dimension_numbers = #tpu.dot_dimension_numbers<[1], [0], [0], [1], [0, 0, 1, 1], [], []>} : vector<32x32xf32>, vector<32x64xf32>, vector<32x64xf32> -> vector<32x64xf32>
    %303 = arith.addf %299, %302 : vector<32x64xf32>
    %304 = tpu.iota {dimensions = array<i32: 0>} : vector<64x64xi32>
    %305 = tpu.iota {dimensions = array<i32: 1>} : vector<64x64xi32>
    %c15_i32_151 = arith.constant 15 : i32
    %306 = vector.broadcast %c15_i32_151 : i32 to vector<64x64xi32>
    %307 = arith.andi %305, %306 : vector<64x64xi32>
    %c1_i32_152 = arith.constant 1 : i32
    %308 = vector.broadcast %c1_i32_152 : i32 to vector<64x64xi32>
    %309 = arith.addi %305, %308 : vector<64x64xi32>
    %310 = arith.cmpi eq, %304, %309 : vector<64x64xi32>
    %c1_i32_153 = arith.constant 1 : i32
    %311 = vector.broadcast %c1_i32_153 : i32 to vector<64x64xi32>
    %312 = arith.addi %307, %311 : vector<64x64xi32>
    %c0_i32_154 = arith.constant 0 : i32
    %313 = vector.broadcast %c0_i32_154 : i32 to vector<64x64xi32>
    %314 = arith.cmpi sge, %312, %313 : vector<64x64xi32>
    %315 = arith.andi %310, %314 : vector<64x64xi1>
    %c1_i32_155 = arith.constant 1 : i32
    %316 = vector.broadcast %c1_i32_155 : i32 to vector<64x64xi32>
    %317 = arith.addi %307, %316 : vector<64x64xi32>
    %c16_i32_156 = arith.constant 16 : i32
    %318 = vector.broadcast %c16_i32_156 : i32 to vector<64x64xi32>
    %319 = arith.cmpi slt, %317, %318 : vector<64x64xi32>
    %320 = arith.andi %315, %319 : vector<64x64xi1>
    %cst_157 = arith.constant 1.000000e+00 : f32
    %cst_158 = arith.constant 0.000000e+00 : f32
    %321 = vector.broadcast %cst_157 : f32 to vector<64x64xf32>
    %322 = vector.broadcast %cst_158 : f32 to vector<64x64xf32>
    %323 = arith.select %320, %321, %322 : vector<64x64xi1>, vector<64x64xf32>
    %cst_159 = arith.constant dense<0.000000e+00> : vector<32x64xf32>
    %324 = tpu.matmul %248, %323, %cst_159 {dimension_numbers = #tpu.dot_dimension_numbers<[1], [0], [0], [1], [0, 0, 1, 1], [], []>} : vector<32x64xf32>, vector<64x64xf32>, vector<32x64xf32> -> vector<32x64xf32>
    %c3_160 = arith.constant 3 : index
    %c0_161 = arith.constant 0 : index
    %c0_162 = arith.constant 0 : index
    %325 = vector.load %arg5[%c3_160, %c0_161, %c0_162] : memref<5x32x32xf32, #tpu.memory_space<vmem>>, vector<1x32x32xf32>
    %326 = vector.shape_cast %325 : vector<1x32x32xf32> to vector<32x32xf32>
    %cst_163 = arith.constant dense<0.000000e+00> : vector<32x64xf32>
    %327 = tpu.matmul %326, %324, %cst_163 {dimension_numbers = #tpu.dot_dimension_numbers<[1], [0], [0], [1], [0, 0, 1, 1], [], []>} : vector<32x32xf32>, vector<32x64xf32>, vector<32x64xf32> -> vector<32x64xf32>
    %328 = arith.addf %303, %327 : vector<32x64xf32>
    %329 = tpu.iota {dimensions = array<i32: 0>} : vector<64x64xi32>
    %330 = tpu.iota {dimensions = array<i32: 1>} : vector<64x64xi32>
    %c15_i32_164 = arith.constant 15 : i32
    %331 = vector.broadcast %c15_i32_164 : i32 to vector<64x64xi32>
    %332 = arith.andi %330, %331 : vector<64x64xi32>
    %c2_i32_165 = arith.constant 2 : i32
    %333 = vector.broadcast %c2_i32_165 : i32 to vector<64x64xi32>
    %334 = arith.addi %330, %333 : vector<64x64xi32>
    %335 = arith.cmpi eq, %329, %334 : vector<64x64xi32>
    %c2_i32_166 = arith.constant 2 : i32
    %336 = vector.broadcast %c2_i32_166 : i32 to vector<64x64xi32>
    %337 = arith.addi %332, %336 : vector<64x64xi32>
    %c0_i32_167 = arith.constant 0 : i32
    %338 = vector.broadcast %c0_i32_167 : i32 to vector<64x64xi32>
    %339 = arith.cmpi sge, %337, %338 : vector<64x64xi32>
    %340 = arith.andi %335, %339 : vector<64x64xi1>
    %c2_i32_168 = arith.constant 2 : i32
    %341 = vector.broadcast %c2_i32_168 : i32 to vector<64x64xi32>
    %342 = arith.addi %332, %341 : vector<64x64xi32>
    %c16_i32_169 = arith.constant 16 : i32
    %343 = vector.broadcast %c16_i32_169 : i32 to vector<64x64xi32>
    %344 = arith.cmpi slt, %342, %343 : vector<64x64xi32>
    %345 = arith.andi %340, %344 : vector<64x64xi1>
    %cst_170 = arith.constant 1.000000e+00 : f32
    %cst_171 = arith.constant 0.000000e+00 : f32
    %346 = vector.broadcast %cst_170 : f32 to vector<64x64xf32>
    %347 = vector.broadcast %cst_171 : f32 to vector<64x64xf32>
    %348 = arith.select %345, %346, %347 : vector<64x64xi1>, vector<64x64xf32>
    %cst_172 = arith.constant dense<0.000000e+00> : vector<32x64xf32>
    %349 = tpu.matmul %248, %348, %cst_172 {dimension_numbers = #tpu.dot_dimension_numbers<[1], [0], [0], [1], [0, 0, 1, 1], [], []>} : vector<32x64xf32>, vector<64x64xf32>, vector<32x64xf32> -> vector<32x64xf32>
    %c4_173 = arith.constant 4 : index
    %c0_174 = arith.constant 0 : index
    %c0_175 = arith.constant 0 : index
    %350 = vector.load %arg5[%c4_173, %c0_174, %c0_175] : memref<5x32x32xf32, #tpu.memory_space<vmem>>, vector<1x32x32xf32>
    %351 = vector.shape_cast %350 : vector<1x32x32xf32> to vector<32x32xf32>
    %cst_176 = arith.constant dense<0.000000e+00> : vector<32x64xf32>
    %352 = tpu.matmul %351, %349, %cst_176 {dimension_numbers = #tpu.dot_dimension_numbers<[1], [0], [0], [1], [0, 0, 1, 1], [], []>} : vector<32x32xf32>, vector<32x64xf32>, vector<32x64xf32> -> vector<32x64xf32>
    %353 = arith.addf %328, %352 : vector<32x64xf32>
    %354 = arith.addf %353, %191 : vector<32x64xf32>
    %cst_177 = arith.constant 0.000000e+00 : f32
    %355 = vector.broadcast %cst_177 : f32 to vector<32x64xf32>
    %356 = arith.maximumf %354, %355 : vector<32x64xf32>
    %357 = tpu.iota {dimensions = array<i32: 0>} : vector<64x32xi32>
    %358 = tpu.iota {dimensions = array<i32: 1>} : vector<64x32xi32>
    %c15_i32_178 = arith.constant 15 : i32
    %359 = vector.broadcast %c15_i32_178 : i32 to vector<64x32xi32>
    %360 = arith.andi %357, %359 : vector<64x32xi32>
    %c7_i32 = arith.constant 7 : i32
    %361 = vector.broadcast %c7_i32 : i32 to vector<64x32xi32>
    %362 = arith.andi %358, %361 : vector<64x32xi32>
    %363 = arith.subi %357, %360 : vector<64x32xi32>
    %c8_i32 = arith.constant 8 : i32
    %364 = vector.broadcast %c8_i32 : i32 to vector<64x32xi32>
    %365 = arith.muli %363, %364 : vector<64x32xi32>
    %366 = arith.subi %358, %362 : vector<64x32xi32>
    %c16_i32_179 = arith.constant 16 : i32
    %367 = vector.broadcast %c16_i32_179 : i32 to vector<64x32xi32>
    %368 = arith.muli %366, %367 : vector<64x32xi32>
    %369 = arith.cmpi eq, %365, %368 : vector<64x32xi32>
    %c2_i32_180 = arith.constant 2 : i32
    %370 = vector.broadcast %c2_i32_180 : i32 to vector<64x32xi32>
    %371 = arith.muli %370, %362 : vector<64x32xi32>
    %372 = arith.subi %360, %371 : vector<64x32xi32>
    %c-1_i32_181 = arith.constant -1 : i32
    %373 = vector.broadcast %c-1_i32_181 : i32 to vector<64x32xi32>
    %374 = arith.cmpi sge, %372, %373 : vector<64x32xi32>
    %375 = arith.andi %369, %374 : vector<64x32xi1>
    %c2_i32_182 = arith.constant 2 : i32
    %376 = vector.broadcast %c2_i32_182 : i32 to vector<64x32xi32>
    %377 = arith.cmpi sle, %372, %376 : vector<64x32xi32>
    %378 = arith.andi %375, %377 : vector<64x32xi1>
    %cst_183 = arith.constant 2.500000e-01 : f32
    %cst_184 = arith.constant 0.000000e+00 : f32
    %379 = vector.broadcast %cst_183 : f32 to vector<64x32xf32>
    %380 = vector.broadcast %cst_184 : f32 to vector<64x32xf32>
    %381 = arith.select %378, %379, %380 : vector<64x32xi1>, vector<64x32xf32>
    %cst_185 = arith.constant dense<0.000000e+00> : vector<32x32xf32>
    %382 = tpu.matmul %356, %381, %cst_185 {dimension_numbers = #tpu.dot_dimension_numbers<[1], [0], [0], [1], [0, 0, 1, 1], [], []>} : vector<32x64xf32>, vector<64x32xf32>, vector<32x32xf32> -> vector<32x32xf32>
    %c0_186 = arith.constant 0 : index
    %c0_187 = arith.constant 0 : index
    %c0_188 = arith.constant 0 : index
    %383 = vector.load %arg6[%c0_186, %c0_187, %c0_188] : memref<1x32x32xf32, #tpu.memory_space<vmem>>, vector<1x32x32xf32>
    %384 = vector.shape_cast %383 : vector<1x32x32xf32> to vector<32x32xf32>
    %385 = vector.shape_cast %382 : vector<32x32xf32> to vector<1x32x32xf32>
    tpu.vector_store %arg6[%c0_186, %c0_187, %c0_188], %385 {strides = array<i32>} : memref<1x32x32xf32, #tpu.memory_space<vmem>>, vector<1x32x32xf32>,
    return
  }
  func.func @transform_0(%arg0: i32) -> (i32, i32, i32) {
    %c0_i32 = arith.constant 0 : i32
    %c0_i32_0 = arith.constant 0 : i32
    %c0_i32_1 = arith.constant 0 : i32
    return %arg0, %c0_i32, %c0_i32_0 : i32, i32, i32
  }
  func.func @transform_1(%arg0: i32) -> (i32, i32, i32) {
    %c0_i32 = arith.constant 0 : i32
    %c0_i32_0 = arith.constant 0 : i32
    %c0_i32_1 = arith.constant 0 : i32
    %c0_i32_2 = arith.constant 0 : i32
    return %c0_i32, %c0_i32_0, %c0_i32_1 : i32, i32, i32
  }
  func.func @transform_2(%arg0: i32) -> (i32, i32, i32) {
    %c0_i32 = arith.constant 0 : i32
    %c0_i32_0 = arith.constant 0 : i32
    %c0_i32_1 = arith.constant 0 : i32
    %c0_i32_2 = arith.constant 0 : i32
    return %c0_i32, %c0_i32_0, %c0_i32_1 : i32, i32, i32
  }
  func.func @transform_3(%arg0: i32) -> (i32, i32, i32) {
    %c0_i32 = arith.constant 0 : i32
    %c0_i32_0 = arith.constant 0 : i32
    %c0_i32_1 = arith.constant 0 : i32
    %c0_i32_2 = arith.constant 0 : i32
    return %c0_i32, %c0_i32_0, %c0_i32_1 : i32, i32, i32
  }
  func.func @transform_4(%arg0: i32) -> (i32, i32, i32) {
    %c0_i32 = arith.constant 0 : i32
    %c0_i32_0 = arith.constant 0 : i32
    %c0_i32_1 = arith.constant 0 : i32
    %c0_i32_2 = arith.constant 0 : i32
    return %c0_i32, %c0_i32_0, %c0_i32_1 : i32, i32, i32
  }
  func.func @transform_5(%arg0: i32) -> (i32, i32, i32) {
    %c0_i32 = arith.constant 0 : i32
    %c0_i32_0 = arith.constant 0 : i32
    %c0_i32_1 = arith.constant 0 : i32
    return %arg0, %c0_i32, %c0_i32_0 : i32, i32, i32
  }
}

module attributes {stable_mosaic.version = 11 : i64} {
  func.func @_dense_kernel(%arg0: i32, %arg1: memref<8x256xf32, #tpu.memory_space<vmem>>, %arg2: memref<256x10xf32, #tpu.memory_space<vmem>>, %arg3: memref<8x10xf32, #tpu.memory_space<vmem>>) attributes {dimension_semantics = [#tpu.dimension_semantics<parallel>], iteration_bounds = array<i64: 1>, scalar_prefetch = 0 : i64, scratch_operands = 0 : i64, tpu.core_type = #tpu.core_type<tc>, window_params = [{pipeline_mode = #tpu.pipeline_mode<synchronous>, transform_indices = @transform_0, window_bounds = array<i64: 8, 256>}, {transform_indices = @transform_1, window_bounds = array<i64: 256, 10>}, {transform_indices = @transform_2, window_bounds = array<i64: 8, 10>}]} {
    %c0 = arith.constant 0 : index
    %c0_0 = arith.constant 0 : index
    %0 = vector.load %arg1[%c0, %c0_0] : memref<8x256xf32, #tpu.memory_space<vmem>>, vector<8x256xf32>
    %c0_1 = arith.constant 0 : index
    %c0_2 = arith.constant 0 : index
    %1 = vector.load %arg2[%c0_1, %c0_2] : memref<256x10xf32, #tpu.memory_space<vmem>>, vector<256x10xf32>
    %cst = arith.constant dense<0.000000e+00> : vector<8x10xf32>
    %2 = tpu.matmul %0, %1, %cst {dimension_numbers = #tpu.dot_dimension_numbers<[1], [0], [0], [1], [0, 0, 1, 1], [], []>} : vector<8x256xf32>, vector<256x10xf32>, vector<8x10xf32> -> vector<8x10xf32>
    %c0_3 = arith.constant 0 : index
    %c0_4 = arith.constant 0 : index
    %3 = vector.load %arg3[%c0_3, %c0_4] : memref<8x10xf32, #tpu.memory_space<vmem>>, vector<8x10xf32>
    tpu.vector_store %arg3[%c0_3, %c0_4], %2 {strides = array<i32>} : memref<8x10xf32, #tpu.memory_space<vmem>>, vector<8x10xf32>,
    return
  }
  func.func @transform_0(%arg0: i32) -> (i32, i32) {
    %c0_i32 = arith.constant 0 : i32
    %c0_i32_0 = arith.constant 0 : i32
    %c0_i32_1 = arith.constant 0 : i32
    return %c0_i32, %c0_i32_0 : i32, i32
  }
  func.func @transform_1(%arg0: i32) -> (i32, i32) {
    %c0_i32 = arith.constant 0 : i32
    %c0_i32_0 = arith.constant 0 : i32
    return %c0_i32, %arg0 : i32, i32
  }
  func.func @transform_2(%arg0: i32) -> (i32, i32) {
    %c0_i32 = arith.constant 0 : i32
    %c0_i32_0 = arith.constant 0 : i32
    return %c0_i32, %arg0 : i32, i32
  }
}

</mosaic_0001>

<bundles_post_ra>
// kernel: tabcnn_forward.3
= control target key start
LH: loop header
LB: loop body
LE: loop exit
PB: predicated region body
PF: predicated region fallthrough
CT: control target
= control target key end

     0   :  { %s427_s9 = smov 0   ;;  %s429_s10 = smov 0   ;;  %s484_s0 = inlined_call_operand.vmem [shape: f32[8,24], index: 0, kind: input, shape index: {}]   ;;  %s485_s1 = inlined_call_operand.vmem [shape: f32[24,512], index: 1, kind: input, shape index: {}]   ;;  %s486_s2 = inlined_call_operand.vmem [shape: f32[8,512], index: 2, kind: output, shape index: {}]  }
   0x1   :  { %s431_s11 = smov 0  }
   0x2 LB: > { %s327_s12 = sadd.s32 4294967295, %s407_s11   ;;  %s444_s13 = sadd.s32 1, %s407_s11   ;;  %s407_s11 = sphi %s431_s11, %s489_s11   ;;  %s403_s10 = sphi %s429_s10, %s488_s10   ;;  %s399_s9 = sphi %s427_s9, %s487_s9  }
   0x3   : > { %s37_s14 = ssub.s32 %s407_s11, %s444_s13  ;;  %s40_s15 = sadd.s32 1, %s403_s10 }
   0x4   : > { %p38_p0 = scmp.eq.s32.totalorder %s37_s14, 0  ;;  %p47_p1 = scmp.ne.s32.totalorder %s403_s10, %s399_s9 }
   0x5   : > { %p48_p2 = scmp.eq.s32.totalorder %s407_s11, 0  ;;  %p330_p4 = scmp.ge.s32.totalorder %s407_s11, 4 }
   0x6   : > { %s453_s16 = scalar_select %p38_p0, %s403_s10, %s40_s15  }
   0x7   : > { %p49_p3 = por %p48_p2, %p47_p1  ;;  %102 = sbr.rel (%p330_p4) target bundleno = 21 (0x15), region = 20 }
   0xe   : > { %105 = sbr.rel (!%p49_p3) target bundleno = 21 (0x15), region = 24  ;;  %s107_s17 = sand.u32 (%p49_p3), 1, %s403_s10  }
   0xf   : > { %s331_s18 = sshll.u32 (%p49_p3), %s407_s11, 3  ;;  %s354_s19 = smul.u32 (%p49_p3), 24, %s107_s17 }
  0x10   : > { %s111_s22 = scalar_lea.vmem (%p49_p3), %s485_s1, %s331_s18 }
  0x11   : > { %v143_v0 = vld [vmem:[%s111_s22] sm:$0xff] (%p49_p3)  ;;  %s109_s23 = scalar_lea.vmem (%p49_p3), [#allocation2], %s354_s19 }
  0x12   : > { %v145_v1 = vld [vmem:[%s111_s22 + $0x20] sm:$0xff] (%p49_p3)  ;;  %144 = vst [vmem:[%s109_s23] sm:$0xff] (%p49_p3), %v143_v0 }
  0x13   : > { %v147_v2 = vld [vmem:[%s111_s22 + $0x40] sm:$0xff] (%p49_p3)  ;;  %146 = vst [vmem:[%s109_s23 + $0x8] sm:$0xff] (%p49_p3), %v145_v1 }
  0x14   : > { %148 = vst [vmem:[%s109_s23 + $0x10] sm:$0xff] (%p49_p3), %v147_v2 }
  0x15 PF: > { %p332_p5 = scmp.ge.s32.totalorder %s407_s11, 1  ;;  %p153_p6 = scmp.lt.s32.totalorder %s407_s11, 5 }
  0x17   : > { %p154_p7 = pnand %p332_p5, %p153_p6 }
  0x18   : > { %s160_s24 = sand.u32 (!%p154_p7), 1, %s399_s9   ;;  %v409_v3 = vmov (!%p154_p7), 0.0|0.0   ;;  %vm410_vm0 = vmmov (!%p154_p7), 0   ;;  %v411_v4 = vmov (!%p154_p7), 0.0   ;;  %v184_v9 = vld [vmem:[%s484_s0] sm:$0xff] (!%p154_p7)  ;;  %vm188_vm1 = vcmask (!%p154_p7), 195584  }
  0x19   : > { %157 = sbr.rel (%p154_p7) target bundleno = 266 (0x10a), region = 62  ;;  %351 = vmatprep.subr.bf16.mxu0 (!%p154_p7), %v409_v3  ;;  %348 = vmatprep.mubr.msk.f32.mxu0 (!%p154_p7), %vm410_vm0, %v411_v4  ;;  %p180_p8 = scmp.lt.s32.totalorder (!%p154_p7), %s327_s12, 3 }
  0x1a   : > { %s355_s25 = smul.u32 (!%p154_p7), 24, %s160_s24 }
  0x1c   : > { %s162_s26 = scalar_lea.vmem (!%p154_p7), [#allocation2], %s355_s25 }
  0x1d   : > { %v185_v5 = vld [vmem:[%s162_s26] sm:$0xff] (!%p154_p7)  ;;  %v186_v6 = vld [vmem:[%s162_s26 + $0x8] sm:$0xff] (!%p154_p7)  ;;  %v187_v8 = vld [vmem:[%s162_s26 + $0x10] sm:$0xff] (!%p154_p7) }
  0x1e   : > { %v352_v7 = vpack.c.bf16 (!%p154_p7), %v186_v6, %v185_v5 }
  0x20   : > { %353 = vmatpush3.bf16.msra.mxu0 %v352_v7  ;;  %s491_s12 = smov (!%p180_p8, %s327_s12), 3 }
  0x21   : > { %346 = vmatprep.subr.mxu0 %v411_v4  ;;  %s333_s29 = sshll.u32 %s491_s12, 3 }
  0x22   : > { %s183_s4 = scalar_lea.vmem %s486_s2, %s333_s29 }
  0x24   : > { %347 = vmatpush3.msra.mxu0 %v187_v8 }
  0x25   : > { %349 = vmatmul.mubr.msk.f32.vlgmr.msra.gmra.mrb[0].mxu0 %vm188_vm1, %v184_v9 }
  0xf8   : > { %v258_v10 = vpop.f32.mrb[0].mxu0 }
  0xf9   : > { %v263_v11 = vmul.f32 1.442695, %v258_v10  ;;  %v350_v12 = vpop.f32.mrb[1].mxu0  ;;  %vm262_vm2 = vcmp.gt.f32.partialorder %v258_v10, 0.0 }
  0xfb   : > { %383 = vpow2.f32 %v263_v11 }
 0x105   : > { %v384_v13 = vpop.eup %383 }
 0x106   : > { %v335_v14 = vadd.f32 -1.0, %v384_v13 }
 0x108   : > { %v266_v15 = vsel %vm262_vm2, %v258_v10, %v335_v14 }
 0x109   : > { %267 = vst [vmem:[%s183_s4] sm:$0xff] %v266_v15 }
 0x10a PF: > { %p9_p9 = scmp.ge.s32.totalorder %s444_s13, 6   ;;  %s487_s9 = smov %s403_s10 }
 0x10b   : > { %s488_s10 = smov %s453_s16  ;;  %s489_s11 = smov %s444_s13 }
 0x10c   :  { %11 = sbr.rel (!%p9_p9) target bundleno = 2 (0x2), region = 101 }

// kernel: tabcnn_forward.5
= control target key start
LH: loop header
LB: loop body
LE: loop exit
PB: predicated region body
PF: predicated region fallthrough
CT: control target
= control target key end

     0   :  { %s354_s0 = inlined_call_operand.vmem [shape: f32[8,256], index: 0, kind: input, shape index: {}]   ;;  %s355_s1 = inlined_call_operand.vmem [shape: f32[256,10], index: 1, kind: input, shape index: {}]   ;;  %s356_s2 = inlined_call_operand.hbm [shape: f32[8,10], index: 2, kind: output, shape index: {}]  }
   0x1   :  { %v30_v0 = vld [vmem:[%s355_s1 + $0x80] sm:$0xff]  ;;  %v31_v1 = vld [vmem:[%s355_s1 + $0x88] sm:$0xff]  ;;  %v32_v5 = vld [vmem:[%s355_s1 + $0x90] sm:$0xff] }
   0x2   :  { %v14_v2 = vld [vmem:[%s355_s1] sm:$0xff]  ;;  %v167_v3 = vpack.c.bf16 %v31_v1, %v30_v0  ;;  %v15_v4 = vld [vmem:[%s355_s1 + $0x8] sm:$0xff]  ;;  %v33_v6 = vld [vmem:[%s355_s1 + $0x98] sm:$0xff] }
   0x3   :  { %v169_v7 = vpack.c.bf16 %v15_v4, %v14_v2  ;;  %v171_v8 = vpack.c.bf16 %v33_v6, %v32_v5  ;;  %v16_v9 = vld [vmem:[%s355_s1 + $0x10] sm:$0xff]  ;;  %v17_v10 = vld [vmem:[%s355_s1 + $0x18] sm:$0xff]  ;;  %v34_v11 = vld [vmem:[%s355_s1 + $0xa0] sm:$0xff] }
   0x4   :  { %168 = vmatprep.subr.bf16.mxu0 %v167_v3  ;;  %v35_v12 = vld [vmem:[%s355_s1 + $0xa8] sm:$0xff]  ;;  %v173_v13 = vpack.c.bf16 %v17_v10, %v16_v9  ;;  %v18_v15 = vld [vmem:[%s355_s1 + $0x20] sm:$0xff]  ;;  %v36_v17 = vld [vmem:[%s355_s1 + $0xb0] sm:$0xff] }
   0x5   :  { %170 = vmatpush3.bf16.msra.mxu0 %v169_v7  ;;  %v175_v14 = vpack.c.bf16 %v35_v12, %v34_v11  ;;  %v19_v16 = vld [vmem:[%s355_s1 + $0x28] sm:$0xff]  ;;  %v37_v18 = vld [vmem:[%s355_s1 + $0xb8] sm:$0xff]  ;;  %v20_v21 = vld [vmem:[%s355_s1 + $0x30] sm:$0xff] }
   0x6   :  { %172 = vmatprep.subr.bf16.mxu0 %v171_v8  ;;  %v177_v19 = vpack.c.bf16 %v19_v16, %v18_v15  ;;  %v179_v20 = vpack.c.bf16 %v37_v18, %v36_v17  ;;  %v21_v22 = vld [vmem:[%s355_s1 + $0x38] sm:$0xff]  ;;  %v38_v23 = vld [vmem:[%s355_s1 + $0xc0] sm:$0xff]  ;;  %v39_v24 = vld [vmem:[%s355_s1 + $0xc8] sm:$0xff] }
   0x7   :  { %v13_v25 = vld [vmem:[%s354_s0 + $0x8] sm:$0xff] }
   0x8   :  { %110 = vmatprep.mubr.f32.mxu0 %v13_v25 }
   0x9   :  { %174 = vmatpush3.bf16.msra.mxu0 %v173_v13 }
   0xa   :  { %176 = vmatprep.subr.bf16.mxu0 %v175_v14 }
   0xb   :  { %7 = vsyncpa [#allocation3], 0  ;;  %v181_v26 = vpack.c.bf16 %v21_v22, %v20_v21  ;;  %v183_v27 = vpack.c.bf16 %v39_v24, %v38_v23  ;;  %v22_v28 = vld [vmem:[%s355_s1 + $0x40] sm:$0xff]  ;;  %v23_v29 = vld [vmem:[%s355_s1 + $0x48] sm:$0xff]  ;;  %s224_s21 = smov [#allocation2]   ;;  %vm116_vm0 = vcmask 80896  }
   0xc   :  { %v40_v30 = vld [vmem:[%s355_s1 + $0xd0] sm:$0xff]  ;;  %v41_v31 = vld [vmem:[%s355_s1 + $0xd8] sm:$0xff]  ;;  %v185_v32 = vpack.c.bf16 %v23_v29, %v22_v28  ;;  %v42_v36 = vld [vmem:[%s355_s1 + $0xe0] sm:$0xff]  ;;  %s124_s22 = sshll.u32 %s224_s21, 4  ;;  %s125_s22 = int_to_ptr.vmem [resolvable:$true] %s124_s22 }
   0xd   :  { %178 = vmatpush3.bf16.msra.mxu0 %v177_v19  ;;  %v187_v33 = vpack.c.bf16 %v41_v31, %v40_v30  ;;  %v24_v34 = vld [vmem:[%s355_s1 + $0x50] sm:$0xff]  ;;  %v25_v35 = vld [vmem:[%s355_s1 + $0x58] sm:$0xff]  ;;  %v43_v37 = vld [vmem:[%s355_s1 + $0xe8] sm:$0xff]  ;;  %s200_s23 = scalar_lea.vmem %s125_s22, 128  ;;  %p205_p1 = scmp.lt.s32.totalorder %s125_s22, %s125_s22 }
   0xe   :  { %180 = vmatprep.subr.bf16.mxu0 %v179_v20  ;;  %v189_v38 = vpack.c.bf16 %v25_v35, %v24_v34  ;;  %v191_v39 = vpack.c.bf16 %v43_v37, %v42_v36  ;;  %v26_v40 = vld [vmem:[%s355_s1 + $0x60] sm:$0xff]  ;;  %v27_v41 = vld [vmem:[%s355_s1 + $0x68] sm:$0xff]  ;;  %v44_v42 = vld [vmem:[%s355_s1 + $0xf0] sm:$0xff]  ;;  %p201_p0 = scmp.ne.s32.totalorder %s125_s22, %s200_s23  ;;  %p206_p2 = scmp.lt.s32.totalorder %s200_s23, %s200_s23 }
   0xf   :  { %v45_v43 = vld [vmem:[%s355_s1 + $0xf8] sm:$0xff]  ;;  %v193_v44 = vpack.c.bf16 %v27_v41, %v26_v40  ;;  %v28_v46 = vld [vmem:[%s355_s1 + $0x70] sm:$0xff]  ;;  %v12_v49 = vld [vmem:[%s354_s0] sm:$0xff] }
  0x10   :  { %v195_v45 = vpack.c.bf16 %v45_v43, %v44_v42  ;;  %v29_v47 = vld [vmem:[%s355_s1 + $0x78] sm:$0xff]  ;;  %p207_p3 = por %p206_p2, %p205_p1 }
  0x11   :  { %182 = vmatpush3.bf16.msra.mxu0 %v181_v26  ;;  %v197_v48 = vpack.c.bf16 %v29_v47, %v28_v46 }
  0x12   :  { %184 = vmatprep.subr.bf16.mxu0 %v183_v27  ;;  %p208_p4 = pnand %p207_p3, %p201_p0 }
  0x15   :  { %186 = vmatpush3.bf16.msra.mxu0 %v185_v32 }
  0x16   :  { %188 = vmatprep.subr.bf16.mxu0 %v187_v33 }
  0x19   :  { %190 = vmatpush3.bf16.msra.mxu0 %v189_v38 }
  0x1a   :  { %192 = vmatprep.subr.bf16.mxu0 %v191_v39 }
  0x1d   :  { %194 = vmatpush3.bf16.msra.mxu0 %v193_v44 }
  0x1e   :  { %196 = vmatprep.subr.bf16.mxu0 %v195_v45 }
  0x21   :  { %198 = vmatpush3.bf16.msra.mxu0 %v197_v48 }
  0x24   :  { %111 = vmatmul.mubr.f32.vlgmr.msra.gmra.mrb[0].mxu0 %v12_v49 }
  0xf7   :  { %v164_v50 = vpop.f32.mrb[0].mxu0 }
  0xf8   :  { %v165_v51 = vpop.f32.mrb[1].mxu0 }
  0xf9   :  { %v166_v52 = vadd.f32 %v165_v51, %v164_v50 }
  0xfb   :  { %117 = vst.msk [vmem:[#allocation2] sm:$0xff] %vm116_vm0, %v166_v52 }
  0xfc   :  { %211 = shalt.err (!%p208_p4)
}
  0xfd   :  { %s212_s0 = scalar_lea.hbm %s356_s2, 128 }
  0xfe   :  { %p213_p5 = scmp.ne.s32.totalorder %s356_s2, %s212_s0  ;;  %p216_p6 = scmp.lt.u32.totalorder %s212_s0, %s356_s2 }
 0x100   :  { %p218_p7 = pnand %p216_p6, %p213_p5 }
 0x102   :  { %221 = shalt.err (!%p218_p7)
}
 0x103   :  { %127 = dma.vmem_to_hbm [thread:$0]  %s125_s22, 128, %s356_s2, [#allocation3]  }
 0x104   :  { %222 = dma.done.wait [#allocation3], 128  }
 0x105   :  { %223 = vsyncadd [#allocation3], 4294967168 }
 0x106   :  { %131 = vsyncpa [#allocation3], 1 }

// kernel: tabcnn_forward.4
= control target key start
LH: loop header
LB: loop body
LE: loop exit
PB: predicated region body
PF: predicated region fallthrough
CT: control target
= control target key end

     0   :  { %s5538_s18 = smov 0   ;;  %s7005_s0 = inlined_call_operand.vmem [shape: f32[2,16,128], index: 0, kind: input, shape index: {}]   ;;  %s7006_s1 = inlined_call_operand.vmem [shape: f32[5,32,16], index: 1, kind: input, shape index: {}]   ;;  %s7007_s2 = inlined_call_operand.vmem [shape: f32[3,32,32], index: 2, kind: input, shape index: {}]   ;;  %s7008_s3 = inlined_call_operand.vmem [shape: f32[3,32,32], index: 3, kind: input, shape index: {}]   ;;  %s7009_s4 = inlined_call_operand.vmem [shape: f32[5,32,32], index: 4, kind: input, shape index: {}]   ;;  %s7010_s5 = inlined_call_operand.vmem [shape: f32[2,32,32], index: 5, kind: output, shape index: {}]  }
   0x1 LB: > { %s3815_s19 = sadd.s32 4294967295, %s5503_s18   ;;  %p3819_p0 = scmp.ge.s32.totalorder %s5503_s18, 1  ;;  %s5503_s18 = sphi %s5538_s18, %s15_s18  }
   0x2   : > { %p187_p1 = scmp.lt.s32.totalorder %s5503_s18, 3 }
   0x4   : > { %p188_p2 = pnand %p3819_p0, %p187_p1 }
   0x5   : > { %v227_v0 = vlaneseq (!%p188_p2)  ;;  %p215_p3 = scmp.lt.s32.totalorder (!%p188_p2), %s3815_s19, 1  ;;  %v5505_v12 = vmov (!%p188_p2), 1.0|1.0   ;;  %v7041_v13 = vmov (!%p188_p2), 0  ;;  %v7043_v16 = vmov (!%p188_p2), 0  ;;  %v3856_v39 = vld [vmem:[%s7006_s1 + $0x20] sm:$0xff] (!%p188_p2) }
   0x6   : > { %191 = sbr.rel (%p188_p2) target bundleno = 2630 (0xa46), region = 40  ;;  %v7045_v20 = vmov (!%p188_p2), 0  ;;  %v7047_v23 = vmov (!%p188_p2), 0  ;;  %v7049_v35 = vmov (!%p188_p2), 0  ;;  %v7055_v36 = vmov (!%p188_p2), 0  ;;  %v3857_v43 = vld [vmem:[%s7006_s1 + $0x28] sm:$0xff] (!%p188_p2) }
   0x7   : > { %v5546_v1 = vshrl.u32 (!%p188_p2), %v227_v0, 7  ;;  %v5548_v2 = vand.u32 (!%p188_p2), 127, %v227_v0  ;;  %v7063_v37 = vmov (!%p188_p2), 0  ;;  %v7071_v38 = vmov (!%p188_p2), 0  ;;  %v3858_v44 = vld [vmem:[%s7006_s1 + $0x30] sm:$0xff] (!%p188_p2)  ;;  %v3859_v45 = vld [vmem:[%s7006_s1 + $0x38] sm:$0xff] (!%p188_p2) }
   0x8   : > { %v390_v46 = vld [vmem:[%s7006_s1] sm:$0xff] (!%p188_p2)  ;;  %v391_v51 = vld [vmem:[%s7006_s1 + $0x8] sm:$0xff] (!%p188_p2)  ;;  %v392_v52 = vld [vmem:[%s7006_s1 + $0x10] sm:$0xff] (!%p188_p2) }
   0x9   : > { %v5553_v3 = vadd.s32 (!%p188_p2), 8, %v5546_v1  ;;  %v5556_v4 = vand.u32 (!%p188_p2), 31, %v5548_v2  ;;  %v5559_v5 = vadd.s32 (!%p188_p2), 4294967295, %v5548_v2  ;;  %v5563_v6 = vand.u32 (!%p188_p2), 15, %v5548_v2  ;;  %v393_v53 = vld [vmem:[%s7006_s1 + $0x18] sm:$0xff] (!%p188_p2)  ;;  %v3868_v54 = vld [vmem:[%s7006_s1 + $0x40] sm:$0xff] (!%p188_p2) }
   0xa   : > { %v5585_v10 = vadd.s32 (!%p188_p2), 16, %v5546_v1  ;;  %v5593_v11 = vadd.s32 (!%p188_p2), 24, %v5546_v1  ;;  %v5619_v14 = vadd.s32 (!%p188_p2), 32, %v5546_v1  ;;  %v5624_v15 = vadd.s32 (!%p188_p2), 40, %v5546_v1  ;;  %v3869_v57 = vld [vmem:[%s7006_s1 + $0x48] sm:$0xff] (!%p188_p2)  ;;  %v3870_v58 = vld [vmem:[%s7006_s1 + $0x50] sm:$0xff] (!%p188_p2) }
   0xb   : > { %vm395_vm0 = vcmp.eq.s32.totalorder (!%p188_p2), %v5546_v1, %v5559_v5  ;;  %v5573_v7 = vadd.s32 (!%p188_p2), 4294967295, %v5556_v4  ;;  %vm396_vm1 = vcmp.eq.s32.totalorder (!%p188_p2), %v5553_v3, %v5559_v5  ;;  %v1594_v9 = vadd.s32 (!%p188_p2), 4294967295, %v5563_v6  ;;  %v3871_v59 = vld [vmem:[%s7006_s1 + $0x58] sm:$0xff] (!%p188_p2)  ;;  %v3892_v60 = vld [vmem:[%s7006_s1 + $0x60] sm:$0xff] (!%p188_p2) }
   0xc   : > { %vm397_vm8 = vcmp.eq.s32.totalorder (!%p188_p2), %v5585_v10, %v5559_v5  ;;  %vm398_vm10 = vcmp.eq.s32.totalorder (!%p188_p2), %v5593_v11, %v5559_v5  ;;  %v5641_v17 = vadd.s32 (!%p188_p2), 48, %v5546_v1  ;;  %v5646_v18 = vadd.s32 (!%p188_p2), 56, %v5546_v1 }
   0xd   : > { %s7211_s19 = smov (!%p215_p3, %s3815_s19), 1  ;;  %vm412_vm2 = vcmp.ge.s32.totalorder %v5573_v7, 0  ;;  %vm1595_vm4 = vcmp.ge.s32.totalorder %v1594_v9, 0  ;;  %v5659_v19 = vadd.s32 4294967294, %v5548_v2  ;;  %v5666_v21 = vadd.s32 4294967294, %v5556_v4  ;;  %v3893_v9 = vld [vmem:[%s7006_s1 + $0x68] sm:$0xff] }
   0xe   : > { %s4126_s20 = sshll.u32 %s7211_s19, 4  ;;  %vm413_vm3 = vmand %vm395_vm0, %vm412_vm2  ;;  %v5682_v22 = vadd.s32 64, %v5546_v1  ;;  %v5689_v24 = vadd.s32 72, %v5546_v1  ;;  %v5708_v25 = vadd.s32 80, %v5546_v1  ;;  %v5715_v26 = vadd.s32 88, %v5546_v1  ;;  %s4127_s12 = sshll.u32 %s7211_s19, 5 }
   0xf   : > { %s5568_s23 = scalar_lea.vmem %s7005_s0, %s4126_s20  ;;  %vm414_vm5 = vmand %vm396_vm1, %vm412_vm2  ;;  %v5738_v27 = vadd.s32 96, %v5546_v1  ;;  %v5746_v28 = vadd.s32 104, %v5546_v1  ;;  %v5770_v29 = vadd.s32 112, %v5546_v1  ;;  %v5778_v30 = vadd.s32 120, %v5546_v1  ;;  %s224_s15 = scalar_lea.vmem %s7010_s5, %s4127_s12 }
  0x10   : > { %v5576_v8 = vld [vmem:[%s5568_s23] sm:$0xff]  ;;  %vm5058_vm6 = vmpackc.low %vm414_vm5, %vm413_vm3  ;;  %vm400_vm3 = vcmp.eq.s32.totalorder %v5624_v15, %v5559_v5  ;;  %v5802_v31 = vadd.s32 1, %v5548_v2  ;;  %v5805_v32 = vadd.s32 1, %v5556_v4  ;;  %v5818_v33 = vadd.s32 1, %v5563_v6  ;;  %v5830_v34 = vld [vmem:[%s5568_s23 + $0x8] sm:$0xff] }
  0x11   : > { %4513 = vmatprep.mubr.f32.mxu1 %v5576_v8  ;;  %4478 = vmatprep.mubr.f32.mxu0 %v5576_v8  ;;  %vm1596_vm7 = vmand %vm395_vm0, %vm1595_vm4  ;;  %vm399_vm0 = vcmp.eq.s32.totalorder %v5619_v14, %v5559_v5  ;;  %v5098_v50 = vpack.c.bf16 %v5830_v34, %v5576_v8  ;;  %v6022_v55 = vadd.s32 2, %v5548_v2  ;;  %v6026_v56 = vadd.s32 2, %v5556_v4 }
  0x12   : > { %5059 = vmatprep.subr.msk.bf16.mxu1 %vm5058_vm6, %v5505_v12  ;;  %vm1597_vm9 = vmand %vm396_vm1, %vm1595_vm4 }
  0x13   : > { %5061 = vmatpush3.bf16.msk.msra.mxu1 %vm5058_vm6, %v5505_v12  ;;  %vm5614_vm11 = vmpackc.low %vm1597_vm9, %vm1596_vm7 }
  0x14   : > { %v7042_v13 = vsel %vm5614_vm11, 4294967295, %v7041_v13  ;;  %vm415_vm12 = vmand %vm397_vm8, %vm412_vm2 }
  0x15   : > { %vm416_vm13 = vmand %vm398_vm10, %vm412_vm2 }
  0x16   : > { %vm5062_vm14 = vmpackc.low %vm416_vm13, %vm415_vm12  ;;  %vm402_vm13 = vcmp.eq.s32.totalorder %v5646_v18, %v5559_v5 }
  0x17   : > { %5063 = vmatprep.subr.msk.bf16.mxu1 %vm5062_vm14, %v5505_v12  ;;  %vm1598_vm15 = vmand %vm397_vm8, %vm1595_vm4 }
  0x18   : > { %vm1599_vm1 = vmand %vm398_vm10, %vm1595_vm4  ;;  %5065 = vmatpush3.bf16.msk.msra.mxu1 %vm5062_vm14, %v5505_v12  ;;  %vm401_vm10 = vcmp.eq.s32.totalorder %v5641_v17, %v5559_v5 }
  0x19   : > { %vm5636_vm5 = vmpackc.low %vm1599_vm1, %vm1598_vm15 }
  0x1a   : > { %v7044_v16 = vsel %vm5636_vm5, 4294967295, %v7043_v16  ;;  %vm417_vm6 = vmand %vm399_vm0, %vm412_vm2 }
  0x1b   : > { %vm418_vm7 = vmand %vm400_vm3, %vm412_vm2 }
  0x1c   : > { %vm5066_vm8 = vmpackc.low %vm418_vm7, %vm417_vm6  ;;  %vm7018_vm6 = vcmp.eq.s32.totalorder %v5546_v1, %v5659_v19  ;;  %vm7023_vm7 = vcmp.ge.s32.totalorder %v5666_v21, 0 }
  0x1d   : > { %5067 = vmatprep.subr.msk.bf16.mxu1 %vm5066_vm8, %v5505_v12  ;;  %vm1600_vm9 = vmand %vm399_vm0, %vm1595_vm4 }
  0x1e   : > { %vm1601_vm12 = vmand %vm400_vm3, %vm1595_vm4  ;;  %5069 = vmatpush3.bf16.msk.msra.mxu1 %vm5066_vm8, %v5505_v12 }
  0x1f   : > { %vm5661_vm14 = vmpackc.low %vm1601_vm12, %vm1600_vm9  ;;  %vm7013_vm9 = vcmp.eq.s32.totalorder %v5553_v3, %v5659_v19 }
  0x20   : > { %v7046_v20 = vsel %vm5661_vm14, 4294967295, %v7045_v20  ;;  %vm419_vm15 = vmand %vm401_vm10, %vm412_vm2 }
  0x21   : > { %vm420_vm0 = vmand %vm402_vm13, %vm412_vm2 }
  0x22   : > { %vm5070_vm1 = vmpackc.low %vm420_vm0, %vm419_vm15  ;;  %vm403_vm15 = vcmp.eq.s32.totalorder %v5682_v22, %v5559_v5  ;;  %vm404_vm0 = vcmp.eq.s32.totalorder %v5689_v24, %v5559_v5 }
  0x23   : > { %5071 = vmatprep.subr.msk.bf16.mxu1 %vm5070_vm1, %v5505_v12  ;;  %vm1602_vm3 = vmand %vm401_vm10, %vm1595_vm4 }
  0x24   : > { %vm1603_vm8 = vmand %vm402_vm13, %vm1595_vm4  ;;  %5073 = vmatpush3.bf16.msk.msra.mxu1 %vm5070_vm1, %v5505_v12 }
  0x25   : > { %vm5684_vm12 = vmpackc.low %vm1603_vm8, %vm1602_vm3  ;;  %vm7011_vm3 = vcmp.eq.s32.totalorder %v5585_v10, %v5659_v19 }
  0x26   : > { %v7048_v23 = vsel %vm5684_vm12, 4294967295, %v7047_v23  ;;  %vm266_vm4 = vmand %vm7018_vm6, %vm7023_vm7  ;;  %vm7053_vm12 = vcmp.lt.s32.totalorder %v5818_v33, 16 }
  0x27   : > { %vm267_vm10 = vmand %vm7013_vm9, %vm7023_vm7  ;;  %vm407_vm9 = vcmp.eq.s32.totalorder %v5738_v27, %v5559_v5 }
  0x28   : > { %vm5026_vm13 = vmpackc.low %vm267_vm10, %vm266_vm4  ;;  %vm7012_vm4 = vcmp.eq.s32.totalorder %v5593_v11, %v5659_v19 }
  0x29   : > { %5027 = vmatprep.subr.msk.bf16.mxu0 %vm5026_vm13, %v5505_v12  ;;  %vm421_vm1 = vmand %vm403_vm15, %vm412_vm2  ;;  %vm405_vm15 = vcmp.eq.s32.totalorder %v5708_v25, %v5559_v5 }
  0x2a   : > { %5029 = vmatpush3.bf16.msk.msra.mxu0 %vm5026_vm13, %v5505_v12  ;;  %vm422_vm8 = vmand %vm404_vm0, %vm412_vm2 }
  0x2b   : > { %vm5074_vm10 = vmpackc.low %vm422_vm8, %vm421_vm1  ;;  %vm406_vm1 = vcmp.eq.s32.totalorder %v5715_v26, %v5559_v5 }
  0x2c   : > { %5075 = vmatprep.subr.msk.bf16.mxu1 %vm5074_vm10, %v5505_v12  ;;  %vm268_vm13 = vmand %vm7011_vm3, %vm7023_vm7 }
  0x2d   : > { %5077 = vmatpush3.bf16.msk.msra.mxu1 %vm5074_vm10, %v5505_v12  ;;  %vm269_vm0 = vmand %vm7012_vm4, %vm7023_vm7  ;;  %vm7015_vm10 = vcmp.eq.s32.totalorder %v5619_v14, %v5659_v19 }
  0x2e   : > { %vm5030_vm8 = vmpackc.low %vm269_vm0, %vm268_vm13  ;;  %vm7014_vm13 = vcmp.eq.s32.totalorder %v5624_v15, %v5659_v19 }
  0x2f   : > { %5031 = vmatprep.subr.msk.bf16.mxu0 %vm5030_vm8, %v5505_v12  ;;  %vm423_vm3 = vmand %vm405_vm15, %vm412_vm2 }
  0x30   : > { %5033 = vmatpush3.bf16.msk.msra.mxu0 %vm5030_vm8, %v5505_v12  ;;  %vm424_vm4 = vmand %vm406_vm1, %vm412_vm2 }
  0x31   : > { %vm5078_vm0 = vmpackc.low %vm424_vm4, %vm423_vm3  ;;  %vm408_vm3 = vcmp.eq.s32.totalorder %v5746_v28, %v5559_v5 }
  0x32   : > { %5079 = vmatprep.subr.msk.bf16.mxu1 %vm5078_vm0, %v5505_v12  ;;  %vm270_vm15 = vmand %vm7015_vm10, %vm7023_vm7  ;;  %vm409_vm10 = vcmp.eq.s32.totalorder %v5770_v29, %v5559_v5 }
  0x33   : > { %5081 = vmatpush3.bf16.msk.msra.mxu1 %vm5078_vm0, %v5505_v12  ;;  %vm271_vm1 = vmand %vm7014_vm13, %vm7023_vm7  ;;  %vm7017_vm0 = vcmp.eq.s32.totalorder %v5641_v17, %v5659_v19 }
  0x34   : > { %vm5034_vm4 = vmpackc.low %vm271_vm1, %vm270_vm15  ;;  %vm7016_vm15 = vcmp.eq.s32.totalorder %v5646_v18, %v5659_v19 }
  0x35   : > { %5035 = vmatprep.subr.msk.bf16.mxu0 %vm5034_vm4, %v5505_v12  ;;  %vm425_vm8 = vmand %vm407_vm9, %vm412_vm2 }
  0x36   : > { %5037 = vmatpush3.bf16.msk.msra.mxu0 %vm5034_vm4, %v5505_v12  ;;  %vm426_vm13 = vmand %vm408_vm3, %vm412_vm2 }
  0x37   : > { %vm5082_vm1 = vmpackc.low %vm426_vm13, %vm425_vm8  ;;  %vm410_vm13 = vcmp.eq.s32.totalorder %v5778_v30, %v5559_v5 }
  0x38   : > { %5083 = vmatprep.subr.msk.bf16.mxu1 %vm5082_vm1, %v5505_v12  ;;  %vm272_vm9 = vmand %vm7017_vm0, %vm7023_vm7  ;;  %vm844_vm0 = vcmp.eq.s32.totalorder %v5546_v1, %v5802_v31 }
  0x39   : > { %5085 = vmatpush3.bf16.msk.msra.mxu1 %vm5082_vm1, %v5505_v12  ;;  %vm273_vm3 = vmand %vm7016_vm15, %vm7023_vm7  ;;  %vm256_vm1 = vcmp.eq.s32.totalorder %v5682_v22, %v5659_v19 }
  0x3a   : > { %vm5038_vm4 = vmpackc.low %vm273_vm3, %vm272_vm9  ;;  %vm257_vm9 = vcmp.eq.s32.totalorder %v5689_v24, %v5659_v19 }
  0x3b   : > { %5039 = vmatprep.subr.msk.bf16.mxu0 %vm5038_vm4, %v5505_v12  ;;  %vm427_vm8 = vmand %vm409_vm10, %vm412_vm2 }
  0x3c   : > { %5041 = vmatpush3.bf16.msk.msra.mxu0 %vm5038_vm4, %v5505_v12  ;;  %vm428_vm15 = vmand %vm410_vm13, %vm412_vm2  ;;  %vm7019_vm4 = vcmp.lt.s32.totalorder %v5805_v32, 32 }
  0x3d   : > { %vm5086_vm3 = vmpackc.low %vm428_vm15, %vm427_vm8  ;;  %vm845_vm15 = vcmp.eq.s32.totalorder %v5553_v3, %v5802_v31 }
  0x3e   : > { %5087 = vmatprep.subr.msk.bf16.mxu1 %vm5086_vm3, %v5505_v12  ;;  %vm274_vm10 = vmand %vm256_vm1, %vm7023_vm7  ;;  %vm7020_vm1 = vcmp.lt.s32.totalorder %v5818_v33, 16 }
  0x3f   : > { %5089 = vmatpush3.bf16.msk.msra.mxu1 %vm5086_vm3, %v5505_v12  ;;  %vm275_vm2 = vmand %vm257_vm9, %vm7023_vm7 }
  0x40   : > { %vm5042_vm13 = vmpackc.low %vm275_vm2, %vm274_vm10  ;;  %vm258_vm2 = vcmp.eq.s32.totalorder %v5708_v25, %v5659_v19 }
  0x41   : > { %5043 = vmatprep.subr.msk.bf16.mxu0 %vm5042_vm13, %v5505_v12  ;;  %vm879_vm8 = vmand %vm844_vm0, %vm7019_vm4 }
  0x42   : > { %5045 = vmatpush3.bf16.msk.msra.mxu0 %vm5042_vm13, %v5505_v12  ;;  %4514 = vmatmul.mubr.f32.vlgmr.msra.gmra.mrb[0].mxu1 %v5830_v34  ;;  %vm880_vm9 = vmand %vm845_vm15, %vm7019_vm4 }
  0x43   : > { %vm5102_vm3 = vmpackc.low %vm880_vm9, %vm879_vm8  ;;  %4578 = vmatprep.mubr.f32.mxu1 %v5576_v8  ;;  %vm259_vm8 = vcmp.eq.s32.totalorder %v5715_v26, %v5659_v19 }
  0x44   : > { %5103 = vmatprep.subr.msk.bf16.mxu1 %vm5102_vm3, %v5505_v12  ;;  %vm1934_vm10 = vmand %vm844_vm0, %vm7020_vm1  ;;  %vm846_vm0 = vcmp.eq.s32.totalorder %v5585_v10, %v5802_v31 }
  0x45   : > { %vm1935_vm13 = vmand %vm845_vm15, %vm7020_vm1  ;;  %5105 = vmatpush3.bf16.msk.msra.mxu1 %vm5102_vm3, %v5505_v12  ;;  %vm847_vm15 = vcmp.eq.s32.totalorder %v5593_v11, %v5802_v31 }
  0x46   : > { %vm5859_vm9 = vmpackc.low %vm1935_vm13, %vm1934_vm10  ;;  %vm7051_vm10 = vcmp.lt.s32.totalorder %v5805_v32, 32 }
  0x47   : > { %v7050_v35 = vsel %vm5859_vm9, 4294967295, %v7049_v35  ;;  %vm276_vm6 = vmand %vm258_vm2, %vm7023_vm7 }
  0x48   : > { %vm277_vm4 = vmand %vm259_vm8, %vm7023_vm7  ;;  %vm260_vm7 = vcmp.eq.s32.totalorder %v5738_v27, %v5659_v19 }
  0x49   : > { %vm5046_vm3 = vmpackc.low %vm277_vm4, %vm276_vm6 }
  0x4a   : > { %5047 = vmatprep.subr.msk.bf16.mxu0 %vm5046_vm3, %v5505_v12  ;;  %vm881_vm13 = vmand %vm846_vm0, %vm7051_vm10 }
  0x4b   : > { %5049 = vmatpush3.bf16.msk.msra.mxu0 %vm5046_vm3, %v5505_v12  ;;  %vm7052_vm1 = vmmov %vm7051_vm10  ;;  %vm261_vm3 = vcmp.eq.s32.totalorder %v5746_v28, %v5659_v19 }
  0x4c   : > { %vm882_vm2 = vmand %vm847_vm15, %vm7052_vm1  ;;  %vm7057_vm1 = vcmp.ge.s32.totalorder %v5666_v21, 0 }
  0x4d   : > { %vm5106_vm9 = vmpackc.low %vm882_vm2, %vm881_vm13 }
  0x4e   : > { %5107 = vmatprep.subr.msk.bf16.mxu1 %vm5106_vm9, %v5505_v12  ;;  %vm1936_vm8 = vmand %vm846_vm0, %vm7053_vm12 }
  0x4f   : > { %vm7054_vm6 = vmmov %vm7053_vm12  ;;  %5109 = vmatpush3.bf16.msk.msra.mxu1 %vm5106_vm9, %v5505_v12  ;;  %vm848_vm12 = vcmp.eq.s32.totalorder %v5619_v14, %v5802_v31 }
  0x50   : > { %vm1937_vm4 = vmand %vm847_vm15, %vm7054_vm6  ;;  %vm849_vm15 = vcmp.eq.s32.totalorder %v5624_v15, %v5802_v31 }
  0x51   : > { %vm5887_vm10 = vmpackc.low %vm1937_vm4, %vm1936_vm8  ;;  %vm7059_vm8 = vcmp.lt.s32.totalorder %v5805_v32, 32 }
  0x52   : > { %v7056_v36 = vsel %vm5887_vm10, 4294967295, %v7055_v36  ;;  %vm278_vm13 = vmand %vm260_vm7, %vm7057_vm1  ;;  %vm7061_vm10 = vcmp.lt.s32.totalorder %v5818_v33, 16 }
  0x53   : > { %vm7058_vm0 = vmmov %vm7057_vm1 }
  0x54   : > { %vm279_vm2 = vmand %vm261_vm3, %vm7058_vm0  ;;  %vm262_vm0 = vcmp.eq.s32.totalorder %v5770_v29, %v5659_v19 }
  0x55   : > { %vm5050_vm9 = vmpackc.low %vm279_vm2, %vm278_vm13 }
  0x56   : > { %5051 = vmatprep.subr.msk.bf16.mxu0 %vm5050_vm9, %v5505_v12  ;;  %vm883_vm6 = vmand %vm848_vm12, %vm7059_vm8 }
  0x57   : > { %5053 = vmatpush3.bf16.msk.msra.mxu0 %vm5050_vm9, %v5505_v12  ;;  %vm7060_vm4 = vmmov %vm7059_vm8  ;;  %vm263_vm9 = vcmp.eq.s32.totalorder %v5778_v30, %v5659_v19 }
  0x58   : > { %vm884_vm7 = vmand %vm849_vm15, %vm7060_vm4 }
  0x59   : > { %vm5110_vm1 = vmpackc.low %vm884_vm7, %vm883_vm6  ;;  %vm7065_vm6 = vcmp.ge.s32.totalorder %v5666_v21, 0  ;;  %v3955_v21 = vld [vmem:[%s7007_s2 + $0x38] sm:$0xff] }
  0x5a   : > { %5111 = vmatprep.subr.msk.bf16.mxu1 %vm5110_vm1, %v5505_v12  ;;  %vm1938_vm3 = vmand %vm848_vm12, %vm7061_vm10 }
  0x5b   : > { %vm7062_vm13 = vmmov %vm7061_vm10  ;;  %5113 = vmatpush3.bf16.msk.msra.mxu1 %vm5110_vm1, %v5505_v12  ;;  %vm850_vm10 = vcmp.eq.s32.totalorder %v5641_v17, %v5802_v31 }
  0x5c   : > { %vm1939_vm2 = vmand %vm849_vm15, %vm7062_vm13  ;;  %vm851_vm15 = vcmp.eq.s32.totalorder %v5646_v18, %v5802_v31 }
  0x5d   : > { %vm5915_vm8 = vmpackc.low %vm1939_vm2, %vm1938_vm3  ;;  %vm7067_vm3 = vcmp.lt.s32.totalorder %v5805_v32, 32  ;;  %v3894_v32 = vld [vmem:[%s7006_s1 + $0x70] sm:$0xff] }
  0x5e   : > { %v7064_v37 = vsel %vm5915_vm8, 4294967295, %v7063_v37  ;;  %vm280_vm4 = vmand %vm262_vm0, %vm7065_vm6  ;;  %vm7069_vm8 = vcmp.lt.s32.totalorder %v5818_v33, 16  ;;  %v3895_v33 = vld [vmem:[%s7006_s1 + $0x78] sm:$0xff] }
  0x5f   : > { %vm7066_vm12 = vmmov %vm7065_vm6 }
  0x60   : > { %vm281_vm7 = vmand %vm263_vm9, %vm7066_vm12  ;;  %vm852_vm12 = vcmp.eq.s32.totalorder %v5682_v22, %v5802_v31 }
  0x61   : > { %vm5054_vm1 = vmpackc.low %vm281_vm7, %vm280_vm4 }
  0x62   : > { %5055 = vmatprep.subr.msk.bf16.mxu0 %vm5054_vm1, %v5505_v12  ;;  %vm885_vm13 = vmand %vm850_vm10, %vm7067_vm3 }
  0x63   : > { %5057 = vmatpush3.bf16.msk.msra.mxu0 %vm5054_vm1, %v5505_v12  ;;  %vm7068_vm2 = vmmov %vm7067_vm3  ;;  %vm853_vm1 = vcmp.eq.s32.totalorder %v5689_v24, %v5802_v31 }
  0x64   : > { %vm886_vm0 = vmand %vm851_vm15, %vm7068_vm2 }
  0x65   : > { %vm5114_vm6 = vmpackc.low %vm886_vm0, %vm885_vm13  ;;  %vm855_vm0 = vcmp.eq.s32.totalorder %v5715_v26, %v5802_v31 }
  0x66   : > { %5115 = vmatprep.subr.msk.bf16.mxu1 %vm5114_vm6, %v5505_v12  ;;  %vm1940_vm9 = vmand %vm850_vm10, %vm7069_vm8  ;;  %4479 = vmatmul.mubr.f32.vlgmr.msra.gmra.mrb[0].mxu0 %v5830_v34  ;;  %vm854_vm10 = vcmp.eq.s32.totalorder %v5708_v25, %v5802_v31 }
  0x67   : > { %vm7070_vm4 = vmmov %vm7069_vm8  ;;  %5117 = vmatpush3.bf16.msk.msra.mxu1 %vm5114_vm6, %v5505_v12 }
  0x68   : > { %vm1941_vm7 = vmand %vm851_vm15, %vm7070_vm4 }
  0x69   : > { %vm5944_vm3 = vmpackc.low %vm1941_vm7, %vm1940_vm9  ;;  %vm856_vm7 = vcmp.eq.s32.totalorder %v5738_v27, %v5802_v31 }
  0x6a   : > { %v7072_v38 = vsel %vm5944_vm3, 4294967295, %v7071_v38  ;;  %vm7073_vm13 = vmmov %vm7068_vm2 }
  0x6b   : > { %vm887_vm8 = vmand %vm852_vm12, %vm7073_vm13 }
  0x6c   : > { %vm888_vm15 = vmand %vm853_vm1, %vm7068_vm2  ;;  %vm857_vm1 = vcmp.eq.s32.totalorder %v5746_v28, %v5802_v31 }
  0x6d   : > { %vm5118_vm6 = vmpackc.low %vm888_vm15, %vm887_vm8 }
  0x6e   : > { %5119 = vmatprep.subr.msk.bf16.mxu1 %vm5118_vm6, %v5505_v12  ;;  %vm7074_vm9 = vmmov %vm7068_vm2 }
  0x6f   : > { %vm889_vm4 = vmand %vm854_vm10, %vm7074_vm9  ;;  %5121 = vmatpush3.bf16.msk.msra.mxu1 %vm5118_vm6, %v5505_v12  ;;  %vm858_vm10 = vcmp.eq.s32.totalorder %v5770_v29, %v5802_v31  ;;  %vm859_vm6 = vcmp.eq.s32.totalorder %v5778_v30, %v5802_v31  ;;  %v1352_v31 = vand.u32 31, %v5646_v18 }
  0x70   : > { %vm7075_vm12 = vmmov %vm7068_vm2 }
  0x71   : > { %vm890_vm13 = vmand %vm855_vm0, %vm7075_vm12 }
  0x72   : > { %vm5122_vm2 = vmpackc.low %vm890_vm13, %vm889_vm4 }
  0x73   : > { %5123 = vmatprep.subr.msk.bf16.mxu1 %vm5122_vm2, %v5505_v12  ;;  %vm7076_vm8 = vmmov %vm7074_vm9 }
  0x74   : > { %vm891_vm15 = vmand %vm856_vm7, %vm7076_vm8  ;;  %5125 = vmatpush3.bf16.msk.msra.mxu1 %vm5122_vm2, %v5505_v12  ;;  %vm1127_vm2 = vcmp.lt.s32.totalorder %v6026_v56, 32 }
  0x75   : > { %vm7077_vm9 = vmmov %vm7076_vm8 }
  0x76   : > { %vm892_vm3 = vmand %vm857_vm1, %vm7077_vm9  ;;  %vm7034_vm1 = vcmp.eq.s32.totalorder %v5546_v1, %v6022_v55 }
  0x77   : > { %vm5126_vm0 = vmpackc.low %vm892_vm3, %vm891_vm15  ;;  %vm7035_vm3 = vcmask 130048   ;;  %vm7030_vm15 = vcmp.eq.s32.totalorder %v5553_v3, %v6022_v55 }
  0x78   : > { %5127 = vmatprep.subr.msk.bf16.mxu1 %vm5126_vm0, %v5505_v12  ;;  %vm7078_vm4 = vmmov %vm7076_vm8  ;;  %4520 = vmatprep.mubr.msk.f32.mxu0 %vm7035_vm3, %v3856_v39 }
  0x79   : > { %vm893_vm12 = vmand %vm858_vm10, %vm7078_vm4  ;;  %5129 = vmatpush3.bf16.msk.msra.mxu1 %vm5126_vm0, %v5505_v12  ;;  %vm7028_vm0 = vcmp.eq.s32.totalorder %v5593_v11, %v6022_v55 }
  0x7a   : > { %vm7079_vm13 = vmmov %vm7078_vm4 }
  0x7b   : > { %vm894_vm7 = vmand %vm859_vm6, %vm7079_vm13  ;;  %vm7027_vm6 = vcmp.eq.s32.totalorder %v5585_v10, %v6022_v55 }
  0x7c   : > { %vm5130_vm8 = vmpackc.low %vm894_vm7, %vm893_vm12  ;;  %vm7029_vm12 = vcmp.eq.s32.totalorder %v5619_v14, %v6022_v55  ;;  %vm7031_vm7 = vcmp.eq.s32.totalorder %v5624_v15, %v6022_v55 }
  0x7d   : > { %5131 = vmatprep.subr.msk.bf16.mxu1 %vm5130_vm8, %v5505_v12  ;;  %vm6053_vm10 = vmand %vm7034_vm1, %vm1127_vm2  ;;  %vm1104_vm1 = vcmp.eq.s32.totalorder %v5715_v26, %v6022_v55 }
  0x7e   : > { %5133 = vmatpush3.bf16.msk.msra.mxu1 %vm5130_vm8, %v5505_v12  ;;  %vm6063_vm9 = vmand %vm7030_vm15, %vm1127_vm2  ;;  %vm7033_vm15 = vcmp.eq.s32.totalorder %v5641_v17, %v6022_v55 }
  0x7f   : > { %vm5138_vm4 = vmpackc.low %vm6063_vm9, %vm6053_vm10 }
  0x80   : > { %vm6083_vm13 = vmand %vm7027_vm6, %vm1127_vm2 }
  0x81   : > { %4579 = vmatmul.mubr.f32.vlgmr.msra.gmra.mrb[2].mxu1 %v5830_v34  ;;  %vm6094_vm8 = vmand %vm7028_vm0, %vm1127_vm2 }
  0x82   : > { %vm6106_vm6 = vmand %vm7029_vm12, %vm1127_vm2 }
  0x83   : > { %vm6121_vm0 = vmand %vm7031_vm7, %vm1127_vm2  ;;  %vm7032_vm7 = vcmp.eq.s32.totalorder %v5646_v18, %v6022_v55 }
  0x84   : > { %vm5142_vm12 = vmpackc.low %vm6094_vm8, %vm6083_vm13  ;;  %vm1102_vm8 = vcmp.eq.s32.totalorder %v5689_v24, %v6022_v55 }
  0x85   : > { %vm5146_vm13 = vmpackc.low %vm6121_vm0, %vm6106_vm6  ;;  %vm1105_vm6 = vcmp.eq.s32.totalorder %v5738_v27, %v6022_v55  ;;  %vm1106_vm0 = vcmp.eq.s32.totalorder %v5746_v28, %v6022_v55 }
  0x86   : > { %vm6157_vm10 = vmand %vm7033_vm15, %vm1127_vm2 }
  0x87   : > { %vm6166_vm9 = vmand %vm7032_vm7, %vm1127_vm2 }
  0x88   : > { %vm5150_vm7 = vmpackc.low %vm6166_vm9, %vm6157_vm10 }
  0x89   : > { %vm6214_vm9 = vmand %vm1104_vm1, %vm1127_vm2 }
  0x8a   : > { %vm1140_vm1 = vmand %vm1105_vm6, %vm1127_vm2 }
 0x115   : > { %v4515_v40 = vpop.f32.mrb[0].mxu1 }
 0x116   : > { %v528_v41 = vpop.f32.mrb[1].mxu1 }
 0x117   : > { %v5090_v42 = vpack.c.bf16 %v4515_v40, %v528_v41 }
 0x119   : > { %5091 = vmatprep.subr.bf16.mxu0 %v5090_v42 }
 0x11a   : > { %5093 = vmatpush3.bf16.msra.mxu0 %v5090_v42 }
 0x11d   : > { %4521 = vmatmul.mubr.msk.f32.vlgmr.msra.gmra.mrb[2].mxu0 %vm7035_vm3, %v3857_v43  ;;  %v3916_v43 = vld [vmem:[%s7006_s1 + $0x80] sm:$0xff] }
 0x11e   : > { %4523 = vmatprep.mubr.msk.f32.mxu0 %vm7035_vm3, %v3858_v44  ;;  %v1394_v44 = vsub.s32 %v5548_v2, %v5563_v6 }
 0x121   : > { %4524 = vmatmul.mubr.msk.f32.gmra.mrb[4].mxu0 %vm7035_vm3, %v3859_v45  ;;  %v6257_v45 = vmul.u32 2, %v5563_v6 }
 0x122   : > { %4530 = vmatprep.mubr.msk.f32.mxu0 %vm7035_vm3, %v390_v46  ;;  %v1345_v46 = vand.u32 31, %v5546_v1 }
 0x139   : > { %v4480_v47 = vpop.f32.mrb[0].mxu0 }
 0x13a   : > { %v381_v48 = vpop.f32.mrb[1].mxu0 }
 0x13b   : > { %v5094_v49 = vpack.c.bf16 %v4480_v47, %v381_v48  ;;  %v1346_v47 = vand.u32 31, %v5553_v3  ;;  %v1347_v48 = vand.u32 31, %v5585_v10 }
 0x13d   : > { %5095 = vmatprep.subr.bf16.mxu0 %v5094_v49  ;;  %v1415_v62 = vsub.s32 %v1347_v48, %v6257_v45 }
 0x13e   : > { %5097 = vmatpush3.bf16.msra.mxu0 %v5094_v49  ;;  %v6262_v49 = vmul.u32 32, %v1394_v44  ;;  %v1369_v44 = vsub.s32 %v5646_v18, %v1352_v31 }
 0x13f   : > { %5099 = vmatprep.subr.bf16.mxu0 %v5098_v50 }
 0x141   : > { %4531 = vmatmul.mubr.msk.f32.vlgmr.msra.gmra.mrb[2].mxu0 %vm7035_vm3, %v391_v51  ;;  %v1363_v51 = vsub.s32 %v5553_v3, %v1346_v47 }
 0x142   : > { %4533 = vmatprep.mubr.msk.f32.mxu0 %vm7035_vm3, %v392_v52  ;;  %5101 = vmatpush3.bf16.msra.mxu0 %v5098_v50  ;;  %v1362_v50 = vsub.s32 %v5546_v1, %v1345_v46  ;;  %v1413_v52 = vsub.s32 %v1345_v46, %v6257_v45  ;;  %v1353_v46 = vand.u32 31, %v5682_v22 }
 0x145   : > { %4534 = vmatmul.mubr.msk.f32.gmra.mrb[4].mxu0 %vm7035_vm3, %v393_v53  ;;  %v1414_v53 = vsub.s32 %v1346_v47, %v6257_v45  ;;  %v1354_v47 = vand.u32 31, %v5689_v24 }
 0x146   : > { %4540 = vmatprep.mubr.msk.f32.mxu0 %vm7035_vm3, %v3868_v54  ;;  %v1364_v54 = vsub.s32 %v5585_v10, %v1347_v48  ;;  %v3918_v48 = vld [vmem:[%s7006_s1 + $0x90] sm:$0xff] }
 0x147   : > { %vm1430_vm6 = vcmp.ge.s32.totalorder %v1414_v53, 0 }
 0x148   : > { %v1380_v61 = vmul.u32 16, %v1364_v54  ;;  %v1420_v54 = vsub.s32 %v1352_v31, %v6257_v45 }
 0x149   : > { %4541 = vmatmul.mubr.msk.f32.vlgmr.msra.gmra.mrb[2].mxu0 %vm7035_vm3, %v3869_v57  ;;  %v1349_v57 = vand.u32 31, %v5619_v14 }
 0x14a   : > { %4543 = vmatprep.mubr.msk.f32.mxu0 %vm7035_vm3, %v3870_v58  ;;  %v1378_v58 = vmul.u32 16, %v1362_v50  ;;  %v1359_v50 = vand.u32 31, %v5770_v29 }
 0x14b   : > { %v1366_v5 = vsub.s32 %v5619_v14, %v1349_v57  ;;  %v1417_v40 = vsub.s32 %v1349_v57, %v6257_v45  ;;  %v1371_v57 = vsub.s32 %v5689_v24, %v1354_v47 }
 0x14d   : > { %4544 = vmatmul.mubr.msk.f32.gmra.mrb[4].mxu0 %vm7035_vm3, %v3871_v59  ;;  %v1379_v59 = vmul.u32 16, %v1363_v51  ;;  %v1382_v39 = vmul.u32 16, %v1366_v5 }
 0x14e   : > { %4585 = vmatprep.mubr.msk.f32.mxu0 %vm7035_vm3, %v3892_v60  ;;  %v1350_v60 = vand.u32 31, %v5624_v15 }
 0x150   : > { %v1367_v7 = vsub.s32 %v5624_v15, %v1350_v60 }
 0x152   : > { %v1383_v41 = vmul.u32 16, %v1367_v7  ;;  %v1357_v7 = vand.u32 31, %v5738_v27 }
 0x154   : > { %v4580_v63 = vpop.f32.mrb[2].mxu1 }
 0x155   : > { %v977_v0 = vpop.f32.mrb[3].mxu1 }
 0x156   : > { %v5134_v4 = vpack.c.bf16 %v4580_v63, %v977_v0 }
 0x158   : > { %5135 = vmatprep.subr.bf16.mxu0 %v5134_v4 }
 0x159   : > { %5137 = vmatpush3.bf16.msra.mxu0 %v5134_v4  ;;  %v1351_v4 = vand.u32 31, %v5641_v17 }
 0x15a   : > { %5139 = vmatprep.subr.msk.bf16.mxu0 %vm5138_vm4, %v5505_v12 }
 0x15b   : > { %v1368_v42 = vsub.s32 %v5641_v17, %v1351_v4 }
 0x15c   : > { %4586 = vmatmul.mubr.msk.f32.vlgmr.msra.gmra.mrb[2].mxu0 %vm7035_vm3, %v3893_v9  ;;  %v1358_v9 = vand.u32 31, %v5746_v28 }
 0x15d   : > { %5141 = vmatpush3.bf16.msk.msra.mxu0 %vm5138_vm4, %v5505_v12  ;;  %4588 = vmatprep.mubr.msk.f32.mxu0 %vm7035_vm3, %v3894_v32  ;;  %vm1101_vm4 = vcmp.eq.s32.totalorder %v5682_v22, %v6022_v55  ;;  %v1384_v51 = vmul.u32 16, %v1368_v42 }
 0x15e   : > { %5143 = vmatprep.subr.msk.bf16.mxu0 %vm5142_vm12, %v5505_v12  ;;  %vm6191_vm15 = vmand %vm1101_vm4, %vm1127_vm2 }
 0x160   : > { %4589 = vmatmul.mubr.msk.f32.gmra.mrb[4].mxu0 %vm7035_vm3, %v3895_v33  ;;  %vm1137_vm3 = vmand %vm1102_vm8, %vm1127_vm2  ;;  %v1374_v33 = vsub.s32 %v5738_v27, %v1357_v7 }
 0x161   : > { %5145 = vmatpush3.bf16.msk.msra.mxu0 %vm5142_vm12, %v5505_v12  ;;  %4623 = vmatprep.mubr.f32.mxu0 %v5576_v8  ;;  %vm1103_vm12 = vcmp.eq.s32.totalorder %v5708_v25, %v6022_v55  ;;  %vm5154_vm4 = vmpackc.low %vm1137_vm3, %vm6191_vm15  ;;  %vm1107_vm15 = vcmp.eq.s32.totalorder %v5770_v29, %v6022_v55  ;;  %v1418_v8 = vsub.s32 %v1350_v60, %v6257_v45 }
 0x162   : > { %5147 = vmatprep.subr.msk.bf16.mxu0 %vm5146_vm13, %v5505_v12  ;;  %vm6207_vm10 = vmand %vm1103_vm12, %vm1127_vm2  ;;  %v1390_v27 = vmul.u32 16, %v1374_v33 }
 0x163   : > { %vm1141_vm3 = vmand %vm1106_vm0, %vm1127_vm2  ;;  %vm1396_vm0 = vcmp.eq.s32.totalorder %v1378_v58, %v6262_v49  ;;  %v1355_v58 = vand.u32 31, %v5708_v25 }
 0x164   : > { %vm5162_vm8 = vmpackc.low %vm1141_vm3, %vm1140_vm1  ;;  %vm1461_vm1 = vcmp.le.s32.totalorder %v1413_v52, 1 }
 0x165   : > { %5149 = vmatpush3.bf16.msk.msra.mxu0 %vm5146_vm13, %v5505_v12  ;;  %vm5158_vm13 = vmpackc.low %vm6214_vm9, %vm6207_vm10 }
 0x166   : > { %5151 = vmatprep.subr.msk.bf16.mxu0 %vm5150_vm7, %v5505_v12  ;;  %vm1142_vm12 = vmand %vm1107_vm15, %vm1127_vm2  ;;  %vm1462_vm15 = vcmp.le.s32.totalorder %v1414_v53, 1  ;;  %v1385_v53 = vmul.u32 16, %v1369_v44 }
 0x169   : > { %5153 = vmatpush3.bf16.msk.msra.mxu0 %vm5150_vm7, %v5505_v12  ;;  %vm1108_vm7 = vcmp.eq.s32.totalorder %v5778_v30, %v6022_v55 }
 0x16a   : > { %5155 = vmatprep.subr.msk.bf16.mxu0 %vm5154_vm4, %v5505_v12  ;;  %vm1143_vm10 = vmand %vm1108_vm7, %vm1127_vm2  ;;  %vm1429_vm2 = vcmp.ge.s32.totalorder %v1413_v52, 0  ;;  %v1419_v52 = vsub.s32 %v1351_v4, %v6257_v45  ;;  %v1372_v4 = vsub.s32 %v5708_v25, %v1355_v58 }
 0x16b   : > { %vm5166_vm9 = vmpackc.low %vm1143_vm10, %vm1142_vm12  ;;  %vm6285_vm12 = vcmp.eq.s32.totalorder %v1380_v61, %v6262_v49  ;;  %vm1431_vm10 = vcmp.ge.s32.totalorder %v1415_v62, 0 }
 0x16c   : > { %vm1445_vm3 = vmand %vm1396_vm0, %vm1429_vm2  ;;  %vm1463_vm0 = vcmp.le.s32.totalorder %v1415_v62, 1  ;;  %v1421_v62 = vsub.s32 %v1353_v46, %v6257_v45  ;;  %v1388_v25 = vmul.u32 16, %v1372_v4 }
 0x16d   : > { %5157 = vmatpush3.bf16.msk.msra.mxu0 %vm5154_vm4, %v5505_v12  ;;  %vm7102_vm4 = vcmask 130048  }
 0x16e   : > { %5159 = vmatprep.subr.msk.bf16.mxu0 %vm5158_vm13, %v5505_v12 }
 0x171   : > { %5161 = vmatpush3.bf16.msk.msra.mxu0 %vm5158_vm13, %v5505_v12  ;;  %vm1397_vm13 = vcmp.eq.s32.totalorder %v1379_v59, %v6262_v49  ;;  %v1356_v59 = vand.u32 31, %v5715_v26 }
 0x172   : > { %5163 = vmatprep.subr.msk.bf16.mxu0 %vm5162_vm8, %v5505_v12  ;;  %vm1446_vm7 = vmand %vm1397_vm13, %vm1430_vm6 }
 0x173   : > { %vm1447_vm13 = vmand %vm6285_vm12, %vm1431_vm10  ;;  %vm6326_vm10 = vcmp.eq.s32.totalorder %v1383_v41, %v6262_v49  ;;  %v1373_v5 = vsub.s32 %v5715_v26, %v1356_v59  ;;  %v1423_v26 = vsub.s32 %v1355_v58, %v6257_v45  ;;  %v1424_v32 = vsub.s32 %v1356_v59, %v6257_v45 }
 0x174   : > { %v1425_v41 = vsub.s32 %v1357_v7, %v6257_v45  ;;  %v3953_v7 = vld [vmem:[%s7007_s2 + $0x28] sm:$0xff] }
 0x175   : > { %5165 = vmatpush3.bf16.msk.msra.mxu0 %vm5162_vm8, %v5505_v12  ;;  %vm6280_vm8 = vmand %vm1445_vm3, %vm1461_vm1  ;;  %v1389_v31 = vmul.u32 16, %v1373_v5  ;;  %vm1440_vm5 = vcmp.ge.s32.totalorder %v1424_v32, 0  ;;  %v3952_v5 = vld [vmem:[%s7007_s2 + $0x20] sm:$0xff] }
 0x176   : > { %5167 = vmatprep.subr.msk.bf16.mxu0 %vm5166_vm9, %v5505_v12 }
 0x177   : > { %vm1407_vm14 = vcmp.eq.s32.totalorder %v1389_v31, %v6262_v49 }
 0x179   : > { %5169 = vmatpush3.bf16.msk.msra.mxu0 %vm5166_vm9, %v5505_v12  ;;  %vm6290_vm9 = vmand %vm1446_vm7, %vm1462_vm15  ;;  %vm1400_vm7 = vcmp.eq.s32.totalorder %v1382_v39, %v6262_v49  ;;  %v1375_v39 = vsub.s32 %v5746_v28, %v1358_v9 }
 0x17a   : > { %vm5174_vm6 = vmpackc.low %vm6290_vm9, %vm6280_vm8  ;;  %vm1433_vm8 = vcmp.ge.s32.totalorder %v1417_v40, 0  ;;  %vm1434_vm9 = vcmp.ge.s32.totalorder %v1418_v8, 0 }
 0x17b   : > { %vm6316_vm15 = vmand %vm1447_vm13, %vm1463_vm0  ;;  %vm1466_vm0 = vcmp.le.s32.totalorder %v1418_v8, 1  ;;  %v1391_v28 = vmul.u32 16, %v1375_v39  ;;  %v1426_v8 = vsub.s32 %v1358_v9, %v6257_v45  ;;  %v3954_v9 = vld [vmem:[%s7007_s2 + $0x30] sm:$0xff] }
 0x17c   : > { %4624 = vmatmul.mubr.f32.vlgmr.msra.gmra.mrb[6].mxu0 %v5830_v34  ;;  %v1348_v34 = vand.u32 31, %v5593_v11  ;;  %vm1450_vm13 = vmand %vm6326_vm10, %vm1434_vm9  ;;  %vm1467_vm9 = vcmp.le.s32.totalorder %v1419_v52, 1 }
 0x17d   : > { %4630 = vmatprep.mubr.msk.f32.mxu0 %vm7102_vm4, %v3916_v43  ;;  %v5506_v43 = vmov 0.5|0.5   ;;  %vm1409_vm11 = vcmp.eq.s32.totalorder %v1391_v28, %v6262_v49  ;;  %v1722_v28 = vld [vmem:[%s7007_s2 + $0x18] sm:$0xff] }
 0x17e   : > { %v1365_v56 = vsub.s32 %v5593_v11, %v1348_v34  ;;  %v1416_v63 = vsub.s32 %v1348_v34, %v6257_v45  ;;  %5175 = vmatprep.subr.msk.bf16.mxu1 %vm5174_vm6, %v5506_v43  ;;  %v3919_v34 = vld [vmem:[%s7006_s1 + $0x98] sm:$0xff] }
 0x17f   : > { %5177 = vmatpush3.bf16.msk.msra.mxu1 %vm5174_vm6, %v5506_v43  ;;  %vm1449_vm6 = vmand %vm1400_vm7, %vm1433_vm8  ;;  %vm6354_vm8 = vcmp.eq.s32.totalorder %v1385_v53, %v6262_v49 }
 0x180   : > { %v1381_v0 = vmul.u32 16, %v1365_v56  ;;  %vm1432_vm2 = vcmp.ge.s32.totalorder %v1416_v63, 0  ;;  %vm1464_vm1 = vcmp.le.s32.totalorder %v1416_v63, 1  ;;  %v1370_v56 = vsub.s32 %v5682_v22, %v1353_v46  ;;  %vm6349_vm7 = vmand %vm1450_vm13, %vm1466_vm0 }
 0x181   : > { %v1387_v63 = vmul.u32 16, %v1371_v57  ;;  %v1427_v57 = vsub.s32 %v1359_v50, %v6257_v45 }
 0x182   : > { %vm6295_vm4 = vcmp.eq.s32.totalorder %v1381_v0, %v6262_v49  ;;  %v1386_v61 = vmul.u32 16, %v1370_v56  ;;  %v1422_v0 = vsub.s32 %v1354_v47, %v6257_v45  ;;  %v3917_v47 = vld [vmem:[%s7006_s1 + $0x88] sm:$0xff] }
 0x183   : > { %vm1448_vm3 = vmand %vm6295_vm4, %vm1432_vm2  ;;  %vm1465_vm2 = vcmp.le.s32.totalorder %v1417_v40, 1 }
 0x184   : > { %vm6321_vm12 = vmand %vm1448_vm3, %vm1464_vm1  ;;  %vm1402_vm3 = vcmp.eq.s32.totalorder %v1384_v51, %v6262_v49  ;;  %vm1404_vm13 = vcmp.eq.s32.totalorder %v1386_v61, %v6262_v49  ;;  %v1360_v51 = vand.u32 31, %v5778_v30 }
 0x185   : > { %vm5178_vm4 = vmpackc.low %vm6321_vm12, %vm6316_vm15  ;;  %vm1435_vm15 = vcmp.ge.s32.totalorder %v1419_v52, 0  ;;  %vm1436_vm12 = vcmp.ge.s32.totalorder %v1420_v54, 0  ;;  %v1376_v52 = vsub.s32 %v5770_v29, %v1359_v50  ;;  %v3977_v50 = vld [vmem:[%s7007_s2 + $0x48] sm:$0xff] }
 0x186   : > { %5179 = vmatprep.subr.msk.bf16.mxu1 %vm5178_vm4, %v5506_v43  ;;  %vm6344_vm1 = vmand %vm1449_vm6, %vm1465_vm2  ;;  %vm1468_vm2 = vcmp.le.s32.totalorder %v1420_v54, 1  ;;  %v1377_v53 = vsub.s32 %v5778_v30, %v1360_v51  ;;  %v1428_v58 = vsub.s32 %v1360_v51, %v6257_v45  ;;  %v3978_v51 = vld [vmem:[%s7007_s2 + $0x50] sm:$0xff] }
 0x187   : > { %5181 = vmatpush3.bf16.msk.msra.mxu1 %vm5178_vm4, %v5506_v43  ;;  %vm5182_vm10 = vmpackc.low %vm6349_vm7, %vm6344_vm1  ;;  %vm1437_vm1 = vcmp.ge.s32.totalorder %v1421_v62, 0  ;;  %vm1438_vm7 = vcmp.ge.s32.totalorder %v1422_v0, 0  ;;  %v1392_v54 = vmul.u32 16, %v1376_v52  ;;  %v3979_v52 = vld [vmem:[%s7007_s2 + $0x58] sm:$0xff] }
 0x188   : > { %5183 = vmatprep.subr.msk.bf16.mxu1 %vm5182_vm10, %v5506_v43  ;;  %vm1451_vm4 = vmand %vm1402_vm3, %vm1435_vm15  ;;  %vm1405_vm15 = vcmp.eq.s32.totalorder %v1387_v63, %v6262_v49  ;;  %v1393_v56 = vmul.u32 16, %v1377_v53 }
 0x189   : > { %vm1452_vm6 = vmand %vm6354_vm8, %vm1436_vm12  ;;  %vm1469_vm8 = vcmp.le.s32.totalorder %v1421_v62, 1 }
 0x18a   : > { %vm6372_vm0 = vmand %vm1451_vm4, %vm1467_vm9  ;;  %vm1470_vm9 = vcmp.le.s32.totalorder %v1422_v0, 1 }
 0x18b   : > { %5185 = vmatpush3.bf16.msk.msra.mxu1 %vm5182_vm10, %v5506_v43  ;;  %vm1484_vm3 = vmand %vm1452_vm6, %vm1468_vm2  ;;  %vm1406_vm6 = vcmp.eq.s32.totalorder %v1388_v25, %v6262_v49  ;;  %v1719_v25 = vld [vmem:[%s7007_s2] sm:$0xff] }
 0x18c   : > { %vm5186_vm10 = vmpackc.low %vm1484_vm3, %vm6372_vm0  ;;  %vm1439_vm0 = vcmp.ge.s32.totalorder %v1423_v26, 0 }
 0x18d   : > { %5187 = vmatprep.subr.msk.bf16.mxu1 %vm5186_vm10, %v5506_v43  ;;  %vm1453_vm12 = vmand %vm1404_vm13, %vm1437_vm1  ;;  %vm1471_vm1 = vcmp.le.s32.totalorder %v1423_v26, 1 }
 0x18e   : > { %vm1454_vm4 = vmand %vm1405_vm15, %vm1438_vm7  ;;  %vm1472_vm7 = vcmp.le.s32.totalorder %v1424_v32, 1 }
 0x18f   : > { %5189 = vmatpush3.bf16.msk.msra.mxu1 %vm5186_vm10, %v5506_v43  ;;  %vm6386_vm2 = vmand %vm1453_vm12, %vm1469_vm8  ;;  %vm1408_vm12 = vcmp.eq.s32.totalorder %v1390_v27, %v6262_v49  ;;  %v1720_v27 = vld [vmem:[%s7007_s2 + $0x8] sm:$0xff] }
 0x190   : > { %vm1486_vm3 = vmand %vm1454_vm4, %vm1470_vm9  ;;  %vm1441_vm9 = vcmp.ge.s32.totalorder %v1425_v41, 0 }
 0x191   : > { %vm5190_vm13 = vmpackc.low %vm1486_vm3, %vm6386_vm2  ;;  %vm1442_vm2 = vcmp.ge.s32.totalorder %v1426_v8, 0 }
 0x192   : > { %5191 = vmatprep.subr.msk.bf16.mxu1 %vm5190_vm13, %v5506_v43  ;;  %vm1455_vm15 = vmand %vm1406_vm6, %vm1439_vm0  ;;  %vm1473_vm0 = vcmp.le.s32.totalorder %v1425_v41, 1  ;;  %v1721_v41 = vld [vmem:[%s7007_s2 + $0x10] sm:$0xff] }
 0x193   : > { %5193 = vmatpush3.bf16.msk.msra.mxu1 %vm5190_vm13, %v5506_v43  ;;  %vm1456_vm10 = vmand %vm1407_vm14, %vm1440_vm5  ;;  %vm1474_vm13 = vcmp.le.s32.totalorder %v1426_v8, 1  ;;  %v3976_v8 = vld [vmem:[%s7007_s2 + $0x40] sm:$0xff] }
 0x194   : > { %vm1487_vm8 = vmand %vm1455_vm15, %vm1471_vm1 }
 0x195   : > { %vm1488_vm4 = vmand %vm1456_vm10, %vm1472_vm7  ;;  %vm7128_vm7 = vcmask 130048  }
 0x196   : > { %vm5194_vm3 = vmpackc.low %vm1488_vm4, %vm1487_vm8  ;;  %vm7130_vm8 = vnez %v7044_v16  ;;  %vm7133_vm4 = vnez %v7048_v23  ;;  %v3997_v16 = vld [vmem:[%s7008_s3 + $0x28] sm:$0xff]  ;;  %v3999_v23 = vld [vmem:[%s7008_s3 + $0x38] sm:$0xff] }
 0x197   : > { %5195 = vmatprep.subr.msk.bf16.mxu1 %vm5194_vm3, %v5506_v43  ;;  %vm1457_vm6 = vmand %vm1408_vm12, %vm1441_vm9  ;;  %vm7132_vm9 = vnez %v7046_v20  ;;  %v3998_v20 = vld [vmem:[%s7008_s3 + $0x30] sm:$0xff] }
 0x198   : > { %5197 = vmatpush3.bf16.msk.msra.mxu1 %vm5194_vm3, %v5506_v43  ;;  %vm1458_vm5 = vmand %vm1409_vm11, %vm1442_vm2  ;;  %vm7127_vm11 = vnez %v7042_v13  ;;  %vm7134_vm2 = vnez %v7050_v35  ;;  %vm1410_vm3 = vcmp.eq.s32.totalorder %v1392_v54, %v6262_v49  ;;  %v3996_v13 = vld [vmem:[%s7008_s3 + $0x20] sm:$0xff] }
 0x199   : > { %vm1489_vm14 = vmand %vm1457_vm6, %vm1473_vm0  ;;  %vm1411_vm0 = vcmp.eq.s32.totalorder %v1393_v56, %v6262_v49  ;;  %vm1443_vm6 = vcmp.ge.s32.totalorder %v1427_v57, 0 }
 0x19a   : > { %vm1490_vm1 = vmand %vm1458_vm5, %vm1474_vm13  ;;  %vm1444_vm13 = vcmp.ge.s32.totalorder %v1428_v58, 0 }
 0x19b   : > { %vm5198_vm15 = vmpackc.low %vm1490_vm1, %vm1489_vm14  ;;  %vm1475_vm14 = vcmp.le.s32.totalorder %v1427_v57, 1  ;;  %vm1476_vm1 = vcmp.le.s32.totalorder %v1428_v58, 1 }
 0x19c   : > { %5199 = vmatprep.subr.msk.bf16.mxu1 %vm5198_vm15, %v5506_v43  ;;  %vm7129_vm10 = vmmov %vm7128_vm7 }
 0x19d   : > { %5201 = vmatpush3.bf16.msk.msra.mxu1 %vm5198_vm15, %v5506_v43  ;;  %vm7131_vm12 = vmmov %vm7128_vm7 }
 0x19e   : > { %vm1459_vm5 = vmand %vm1410_vm3, %vm1443_vm6  ;;  %vm7039_vm3 = vcmask 523264   ;;  %vm7136_vm6 = vnez %v7064_v37  ;;  %v3575_v37 = vand.u32 15, %v5546_v1 }
 0x19f   : > { %vm1460_vm15 = vmand %vm1411_vm0, %vm1444_vm13  ;;  %vm7135_vm0 = vnez %v7056_v36  ;;  %vm7137_vm13 = vnez %v7072_v38  ;;  %v4052_v36 = vld [vmem:[%s7009_s4 + $0x20] sm:$0xff]  ;;  %v3576_v38 = vand.u32 15, %v5553_v3 }
 0x24f   : > { %v4625_v42 = vpop.f32.mrb[6].mxu0 }
 0x250   : > { %v1226_v44 = vpop.f32.mrb[7].mxu0 }
 0x251   : > { %v5170_v46 = vpack.c.bf16 %v4625_v42, %v1226_v44 }
 0x253   : > { %5171 = vmatprep.subr.bf16.mxu0 %v5170_v46 }
 0x254   : > { %5173 = vmatpush3.bf16.msra.mxu0 %v5170_v46 }
 0x255   : > { %5207 = vmatprep.subr.msk.bf16.mxu0 %vm7127_vm11, %v5505_v12 }
 0x257   : > { %4631 = vmatmul.mubr.msk.f32.vlgmr.msra.gmra.mrb[2].mxu0 %vm7128_vm7, %v3917_v47  ;;  %vm1491_vm7 = vmand %vm1459_vm5, %vm1475_vm14  ;;  %vm7040_vm5 = vcmask 261120  }
 0x258   : > { %4633 = vmatprep.mubr.msk.f32.mxu0 %vm7129_vm10, %v3918_v48  ;;  %5209 = vmatpush3.bf16.msk.msra.mxu0 %vm7127_vm11, %v5505_v12  ;;  %vm1492_vm10 = vmand %vm1460_vm15, %vm1476_vm1  ;;  %vm7144_vm15 = vcmp.eq.s32.totalorder %v5585_v10, %v5659_v19 }
 0x259   : > { %5211 = vmatprep.subr.msk.bf16.mxu0 %vm7130_vm8, %v5505_v12 }
 0x25b   : > { %4634 = vmatmul.mubr.msk.f32.gmra.mrb[4].mxu0 %vm7131_vm12, %v3919_v34  ;;  %vm5202_vm12 = vmpackc.low %vm1492_vm10, %vm1491_vm7  ;;  %vm7147_vm10 = vcmp.eq.s32.totalorder %v5593_v11, %v5659_v19 }
 0x25c   : > { %5213 = vmatpush3.bf16.msk.msra.mxu0 %vm7130_vm8, %v5505_v12  ;;  %5203 = vmatprep.subr.msk.bf16.mxu1 %vm5202_vm12, %v5506_v43 }
 0x25d   : > { %5215 = vmatprep.subr.msk.bf16.mxu0 %vm7132_vm9, %v5505_v12  ;;  %5205 = vmatpush3.bf16.msk.msra.mxu1 %vm5202_vm12, %v5506_v43 }
 0x260   : > { %5217 = vmatpush3.bf16.msk.msra.mxu0 %vm7132_vm9, %v5505_v12 }
 0x261   : > { %5219 = vmatprep.subr.msk.bf16.mxu0 %vm7133_vm4, %v5505_v12 }
 0x264   : > { %5221 = vmatpush3.bf16.msk.msra.mxu0 %vm7133_vm4, %v5505_v12 }
 0x265   : > { %5239 = vmatprep.subr.msk.bf16.mxu0 %vm7134_vm2, %v5505_v12 }
 0x32a   : > { %v4632_v29 = vpop.f32.mrb[2].mxu0 }
 0x32b   : > { %v1318_v30 = vpop.f32.mrb[3].mxu0  ;;  %v1342_v59 = vmax.f32 %v4632_v29, 0.0 }
 0x32c   : > { %v1341_v45 = vmax.f32 %v1318_v30, 0.0 }
 0x32e   : > { %v4635_v60 = vpop.f32.mrb[4].mxu0  ;;  %4668 = vmatprep.mubr.f32.mxu1 %v1341_v45 }
 0x32f   : > { %v1328_v49 = vpop.f32.mrb[5].mxu0  ;;  %4669 = vmatmul.mubr.f32.vlgmr.msra.gmra.mrb[4].mxu1 %v1342_v59  ;;  %v1344_v24 = vmax.f32 %v4635_v60, 0.0 }
 0x330   : > { %v1343_v22 = vmax.f32 %v1328_v49, 0.0  ;;  %v2242_v49 = vld [vmem:[%s7008_s3] sm:$0xff] }
 0x332   : > { %4671 = vmatprep.mubr.f32.mxu1 %v1343_v22  ;;  %v2640_v22 = vadd.s32 4294967294, %v5563_v6 }
 0x333   : > { %4672 = vmatmul.mubr.f32.gmra.mrb[6].mxu1 %v1344_v24 }
 0x334   : > { %4704 = vmatprep.mubr.msk.f32.mxu1 %vm7040_vm5, %v3952_v5 }
 0x402   : > { %v4670_v61 = vpop.f32.mrb[4].mxu1 }
 0x403   : > { %v1575_v62 = vpop.f32.mrb[5].mxu1 }
 0x404   : > { %v5222_v63 = vpack.c.bf16 %v4670_v61, %v1575_v62  ;;  %4690 = vmatprep.mubr.msk.f32.mxu0 %vm7039_vm3, %v1575_v62 }
 0x405   : > { %4691 = vmatmul.mubr.msk.f32.vlgmr.msra.gmra.mrb[8].mxu0 %vm7039_vm3, %v4670_v61 }
 0x406   : > { %5241 = vmatpush3.bf16.msk.msra.mxu0 %vm7134_vm2, %v5505_v12  ;;  %v4673_v43 = vpop.f32.mrb[6].mxu1  ;;  %5223 = vmatprep.subr.bf16.mxu1 %v5222_v63 }
 0x407   : > { %v1585_v0 = vpop.f32.mrb[7].mxu1  ;;  %5225 = vmatpush3.bf16.msra.mxu1 %v5222_v63  ;;  %5243 = vmatprep.subr.msk.bf16.mxu0 %vm7135_vm0, %v5505_v12 }
 0x408   : > { %v5226_v4 = vpack.c.bf16 %v4673_v43, %v1585_v0  ;;  %4693 = vmatprep.mubr.msk.f32.mxu0 %vm7039_vm3, %v1585_v0 }
 0x409   : > { %4694 = vmatmul.mubr.msk.f32.gmra.mrb[10].mxu0 %vm7039_vm3, %v4673_v43 }
 0x40a   : > { %5245 = vmatpush3.bf16.msk.msra.mxu0 %vm7135_vm0, %v5505_v12  ;;  %5227 = vmatprep.subr.bf16.mxu1 %v5226_v4 }
 0x40b   : > { %4740 = vmatprep.mubr.msk.f32.mxu0 %vm7039_vm3, %v1575_v62  ;;  %5229 = vmatpush3.bf16.msra.mxu1 %v5226_v4 }
 0x40c   : > { %5247 = vmatprep.subr.msk.bf16.mxu0 %vm7136_vm6, %v5505_v12 }
 0x40e   : > { %5249 = vmatpush3.bf16.msk.msra.mxu0 %vm7136_vm6, %v5505_v12  ;;  %4705 = vmatmul.mubr.msk.f32.vlgmr.msra.gmra.mrb[8].mxu1 %vm7040_vm5, %v3953_v7  ;;  %v2243_v7 = vld [vmem:[%s7008_s3 + $0x8] sm:$0xff] }
 0x40f   : > { %5251 = vmatprep.subr.msk.bf16.mxu0 %vm7137_vm13, %v5505_v12  ;;  %4707 = vmatprep.mubr.msk.f32.mxu1 %vm7040_vm5, %v3954_v9  ;;  %v2244_v9 = vld [vmem:[%s7008_s3 + $0x10] sm:$0xff] }
 0x412   : > { %5253 = vmatpush3.bf16.msk.msra.mxu0 %vm7137_vm13, %v5505_v12  ;;  %4708 = vmatmul.mubr.msk.f32.gmra.mrb[10].mxu1 %vm7040_vm5, %v3955_v21  ;;  %v2245_v21 = vld [vmem:[%s7008_s3 + $0x18] sm:$0xff] }
 0x413   : > { %4718 = vmatprep.mubr.msk.f32.mxu1 %vm7040_vm5, %v1719_v25  ;;  %v4020_v25 = vld [vmem:[%s7008_s3 + $0x40] sm:$0xff] }
 0x415   : > { %4741 = vmatmul.mubr.msk.f32.vlgmr.msra.gmra.mrb[12].mxu0 %vm7039_vm3, %v4670_v61 }
 0x416   : > { %4743 = vmatprep.mubr.msk.f32.mxu0 %vm7039_vm3, %v1585_v0 }
 0x419   : > { %4744 = vmatmul.mubr.msk.f32.gmra.mrb[14].mxu0 %vm7039_vm3, %v4673_v43 }
 0x41a   : > { %4790 = vmatprep.mubr.msk.f32.mxu0 %vm7040_vm5, %v3996_v13 }
 0x4d8   : > { %v4692_v26 = vpop.f32.mrb[8].mxu0 }
 0x4d9   : > { %v1700_v31 = vpop.f32.mrb[9].mxu0 }
 0x4da   : > { %v5230_v32 = vpack.c.bf16 %v4692_v26, %v1700_v31 }
 0x4dc   : > { %v4695_v33 = vpop.f32.mrb[10].mxu0  ;;  %5231 = vmatprep.subr.bf16.mxu1 %v5230_v32 }
 0x4dd   : > { %v1710_v39 = vpop.f32.mrb[11].mxu0  ;;  %5233 = vmatpush3.bf16.msra.mxu1 %v5230_v32 }
 0x4de   : > { %v5234_v40 = vpack.c.bf16 %v4695_v33, %v1710_v39 }
 0x4e0   : > { %5235 = vmatprep.subr.bf16.mxu1 %v5234_v40 }
 0x4e1   : > { %5237 = vmatpush3.bf16.msra.mxu1 %v5234_v40 }
 0x4e4   : > { %4719 = vmatmul.mubr.msk.f32.vlgmr.msra.gmra.mrb[8].mxu1 %vm7040_vm5, %v1720_v27 }
 0x4e5   : > { %4721 = vmatprep.mubr.msk.f32.mxu1 %vm7040_vm5, %v1721_v41 }
 0x4e8   : > { %v4742_v42 = vpop.f32.mrb[12].mxu0  ;;  %4722 = vmatmul.mubr.msk.f32.gmra.mrb[10].mxu1 %vm7040_vm5, %v1722_v28  ;;  %v4021_v28 = vld [vmem:[%s7008_s3 + $0x48] sm:$0xff] }
 0x4e9   : > { %v2016_v44 = vpop.f32.mrb[13].mxu0  ;;  %4754 = vmatprep.mubr.msk.f32.mxu1 %vm7040_vm5, %v3976_v8  ;;  %v4022_v8 = vld [vmem:[%s7008_s3 + $0x50] sm:$0xff] }
 0x4ea   : > { %v5254_v46 = vpack.c.bf16 %v4742_v42, %v2016_v44  ;;  %v4023_v42 = vld [vmem:[%s7008_s3 + $0x58] sm:$0xff] }
 0x4ec   : > { %v4745_v47 = vpop.f32.mrb[14].mxu0  ;;  %5255 = vmatprep.subr.bf16.mxu1 %v5254_v46 }
 0x4ed   : > { %v2026_v48 = vpop.f32.mrb[15].mxu0  ;;  %5257 = vmatpush3.bf16.msra.mxu1 %v5254_v46 }
 0x4ee   : > { %v5258_v34 = vpack.c.bf16 %v4745_v47, %v2026_v48 }
 0x4f0   : > { %5259 = vmatprep.subr.bf16.mxu1 %v5258_v34 }
 0x4f1   : > { %5261 = vmatpush3.bf16.msra.mxu1 %v5258_v34 }
 0x4f2   : > { %5263 = vmatprep.subr.msk.bf16.mxu1 %vm7127_vm11, %v5505_v12 }
 0x4f4   : > { %4755 = vmatmul.mubr.msk.f32.vlgmr.msra.gmra.mrb[8].mxu1 %vm7040_vm5, %v3977_v50 }
 0x4f5   : > { %4757 = vmatprep.mubr.msk.f32.mxu1 %vm7040_vm5, %v3978_v51  ;;  %5265 = vmatpush3.bf16.msk.msra.mxu1 %vm7127_vm11, %v5505_v12 }
 0x4f6   : > { %5267 = vmatprep.subr.msk.bf16.mxu1 %vm7130_vm8, %v5505_v12 }
 0x4f8   : > { %4758 = vmatmul.mubr.msk.f32.gmra.mrb[10].mxu1 %vm7040_vm5, %v3979_v52 }
 0x4f9   : > { %5269 = vmatpush3.bf16.msk.msra.mxu1 %vm7130_vm8, %v5505_v12 }
 0x4fa   : > { %5271 = vmatprep.subr.msk.bf16.mxu1 %vm7132_vm9, %v5505_v12 }
 0x4fd   : > { %5273 = vmatpush3.bf16.msk.msra.mxu1 %vm7132_vm9, %v5505_v12 }
 0x4fe   : > { %5275 = vmatprep.subr.msk.bf16.mxu1 %vm7133_vm4, %v5505_v12 }
 0x501   : > { %5277 = vmatpush3.bf16.msk.msra.mxu1 %vm7133_vm4, %v5505_v12 }
 0x502   : > { %5295 = vmatprep.subr.msk.bf16.mxu1 %vm7134_vm2, %v5505_v12 }
 0x5c7   : > { %v4756_v53 = vpop.f32.mrb[8].mxu1 }
 0x5c8   : > { %v6557_v54 = vmax.f32 %v4756_v53, 0.0  ;;  %v2118_v56 = vpop.f32.mrb[9].mxu1 }
 0x5c9   : > { %v6559_v57 = vmax.f32 %v2118_v56, 0.0 }
 0x5cb   : > { %v4759_v58 = vpop.f32.mrb[10].mxu1  ;;  %4776 = vmatprep.mubr.msk.f32.mxu1 %vm7039_vm3, %v6559_v57  ;;  %v5278_v29 = vpack.c.bf16 %v6557_v54, %v6559_v57 }
 0x5cc   : > { %v6565_v30 = vmax.f32 %v4759_v58, 0.0  ;;  %v2128_v45 = vpop.f32.mrb[11].mxu1  ;;  %4777 = vmatmul.mubr.msk.f32.vlgmr.msra.gmra.mrb[12].mxu1 %vm7039_vm3, %v6557_v54  ;;  %v3578_v58 = vand.u32 15, %v5593_v11 }
 0x5cd   : > { %v6569_v59 = vmax.f32 %v2128_v45, 0.0  ;;  %5297 = vmatpush3.bf16.msk.msra.mxu1 %vm7134_vm2, %v5505_v12  ;;  %5279 = vmatprep.subr.bf16.mxu0 %v5278_v29  ;;  %v3584_v45 = vsub.s32 %v5546_v1, %v3575_v37 }
 0x5ce   : > { %5281 = vmatpush3.bf16.msra.mxu0 %v5278_v29  ;;  %5299 = vmatprep.subr.msk.bf16.mxu1 %vm7135_vm0, %v5505_v12  ;;  %v3579_v29 = vand.u32 15, %v5619_v14 }
 0x5cf   : > { %4779 = vmatprep.mubr.msk.f32.mxu1 %vm7039_vm3, %v6569_v59  ;;  %v5282_v60 = vpack.c.bf16 %v6565_v30, %v6569_v59 }
 0x5d0   : > { %4780 = vmatmul.mubr.msk.f32.gmra.mrb[14].mxu1 %vm7039_vm3, %v6565_v30 }
 0x5d1   : > { %5301 = vmatpush3.bf16.msk.msra.mxu1 %vm7135_vm0, %v5505_v12  ;;  %5283 = vmatprep.subr.bf16.mxu0 %v5282_v60 }
 0x5d2   : > { %4826 = vmatprep.mubr.msk.f32.mxu1 %vm7039_vm3, %v6559_v57  ;;  %5285 = vmatpush3.bf16.msra.mxu0 %v5282_v60  ;;  %v3585_v60 = vsub.s32 %v5553_v3, %v3576_v38 }
 0x5d3   : > { %5303 = vmatprep.subr.msk.bf16.mxu1 %vm7136_vm6, %v5505_v12 }
 0x5d4   : > { %v3593_v24 = vmul.u32 8, %v3585_v60 }
 0x5d5   : > { %5305 = vmatpush3.bf16.msk.msra.mxu1 %vm7136_vm6, %v5505_v12  ;;  %4791 = vmatmul.mubr.msk.f32.vlgmr.msra.gmra.mrb[16].mxu0 %vm7040_vm5, %v3997_v16 }
 0x5d6   : > { %5307 = vmatprep.subr.msk.bf16.mxu1 %vm7137_vm13, %v5505_v12  ;;  %4793 = vmatprep.mubr.msk.f32.mxu0 %vm7040_vm5, %v3998_v20 }
 0x5d9   : > { %5309 = vmatpush3.bf16.msk.msra.mxu1 %vm7137_vm13, %v5505_v12  ;;  %4794 = vmatmul.mubr.msk.f32.gmra.mrb[18].mxu0 %vm7040_vm5, %v3999_v23  ;;  %v3587_v23 = vsub.s32 %v5593_v11, %v3578_v58 }
 0x5da   : > { %5335 = vmatprep.subr.msk.bf16.mxu1 %vm7127_vm11, %v5505_v12  ;;  %4804 = vmatprep.mubr.msk.f32.mxu0 %vm7040_vm5, %v2242_v49  ;;  %v3580_v49 = vand.u32 15, %v5624_v15 }
 0x5dc   : > { %4827 = vmatmul.mubr.msk.f32.vlgmr.msra.gmra.mrb[16].mxu1 %vm7039_vm3, %v6557_v54 }
 0x5dd   : > { %4829 = vmatprep.mubr.msk.f32.mxu1 %vm7039_vm3, %v6569_v59  ;;  %5337 = vmatpush3.bf16.msk.msra.mxu1 %vm7127_vm11, %v5505_v12  ;;  %vm2641_vm11 = vcmp.ge.s32.totalorder %v2640_v22, 0  ;;  %v3592_v22 = vmul.u32 8, %v3584_v45  ;;  %v4086_v45 = vld [vmem:[%s7009_s4 + $0x70] sm:$0xff] }
 0x5de   : > { %5339 = vmatprep.subr.msk.bf16.mxu1 %vm7130_vm8, %v5505_v12  ;;  %vm6694_vm7 = vmand %vm7144_vm15, %vm2641_vm11 }
 0x5df   : > { %vm6702_vm12 = vmand %vm7147_vm10, %vm2641_vm11  ;;  %vm7151_vm10 = vcmp.eq.s32.totalorder %v5624_v15, %v5659_v19 }
 0x5e0   : > { %4830 = vmatmul.mubr.msk.f32.gmra.mrb[18].mxu1 %vm7039_vm3, %v6565_v30  ;;  %vm2647_vm3 = vmand %vm7151_vm10, %vm2641_vm11 }
 0x5e1   : > { %5341 = vmatpush3.bf16.msk.msra.mxu1 %vm7130_vm8, %v5505_v12  ;;  %vm7138_vm8 = vcmp.eq.s32.totalorder %v5546_v1, %v5659_v19 }
 0x5e2   : > { %5343 = vmatprep.subr.msk.bf16.mxu1 %vm7132_vm9, %v5505_v12 }
 0x5e5   : > { %5345 = vmatpush3.bf16.msk.msra.mxu1 %vm7132_vm9, %v5505_v12  ;;  %vm6658_vm9 = vmand %vm7138_vm8, %vm2641_vm11 }
 0x5e6   : > { %5347 = vmatprep.subr.msk.bf16.mxu1 %vm7133_vm4, %v5505_v12  ;;  %vm5322_vm8 = vmpackc.low %vm6702_vm12, %vm6694_vm7  ;;  %vm7152_vm12 = vcmp.eq.s32.totalorder %v5641_v17, %v5659_v19 }
 0x5e9   : > { %5349 = vmatpush3.bf16.msk.msra.mxu1 %vm7133_vm4, %v5505_v12  ;;  %vm7141_vm4 = vcmp.eq.s32.totalorder %v5553_v3, %v5659_v19 }
 0x5ea   : > { %5375 = vmatprep.subr.msk.bf16.mxu1 %vm7134_vm2, %v5505_v12  ;;  %vm6666_vm14 = vmand %vm7141_vm4, %vm2641_vm11  ;;  %vm7150_vm4 = vcmp.eq.s32.totalorder %v5619_v14, %v5659_v19 }
 0x5eb   : > { %vm5318_vm1 = vmpackc.low %vm6666_vm14, %vm6658_vm9  ;;  %vm7153_vm9 = vcmp.eq.s32.totalorder %v5646_v18, %v5659_v19  ;;  %v3349_v19 = vadd.s32 2, %v5563_v6  ;;  %v2767_v6 = vld [vmem:[%s7009_s4 + $0x18] sm:$0xff] }
 0x5ec   : > { %vm2646_vm15 = vmand %vm7150_vm4, %vm2641_vm11 }
 0x5ed   : > { %vm5326_vm7 = vmpackc.low %vm2647_vm3, %vm2646_vm15  ;;  %vm7154_vm3 = vcmask 523264  }
 0x5ee   : > { %vm2648_vm4 = vmand %vm7152_vm12, %vm2641_vm11 }
 0x5ef   : > { %vm2649_vm14 = vmand %vm7153_vm9, %vm2641_vm11  ;;  %vm3359_vm9 = vcmp.lt.s32.totalorder %v3349_v19, 16 }
 0x5f0   : > { %vm7156_vm15 = vmmov %vm7154_vm3 }
 0x5f1   : > { %vm7157_vm11 = vmmov %vm7154_vm3 }
 0x5f2   : > { %vm7158_vm10 = vmmov %vm7154_vm3 }
 0x5f3   : > { %vm7160_vm12 = vmmov %vm7154_vm3 }
 0x69f   : > { %v4778_v62 = vpop.f32.mrb[12].mxu1 }
 0x6a0   : > { %v2223_v63 = vpop.f32.mrb[13].mxu1 }
 0x6a1   : > { %v5286_v43 = vpack.c.bf16 %v4778_v62, %v2223_v63 }
 0x6a3   : > { %v4781_v0 = vpop.f32.mrb[14].mxu1  ;;  %5287 = vmatprep.subr.bf16.mxu0 %v5286_v43 }
 0x6a4   : > { %v2233_v4 = vpop.f32.mrb[15].mxu1  ;;  %5289 = vmatpush3.bf16.msra.mxu0 %v5286_v43  ;;  %v3589_v43 = vsub.s32 %v5624_v15, %v3580_v49 }
 0x6a5   : > { %v5290_v5 = vpack.c.bf16 %v4781_v0, %v2233_v4 }
 0x6a7   : > { %5291 = vmatprep.subr.bf16.mxu0 %v5290_v5 }
 0x6a8   : > { %5293 = vmatpush3.bf16.msra.mxu0 %v5290_v5 }
 0x6ab   : > { %4805 = vmatmul.mubr.msk.f32.vlgmr.msra.gmra.mrb[16].mxu0 %vm7040_vm5, %v2243_v7  ;;  %v5507_v7 = vmov 0.25|0.25  }
 0x6ac   : > { %4807 = vmatprep.mubr.msk.f32.mxu0 %vm7040_vm5, %v2244_v9 }
 0x6af   : > { %v4828_v26 = vpop.f32.mrb[16].mxu1  ;;  %4808 = vmatmul.mubr.msk.f32.gmra.mrb[18].mxu0 %vm7040_vm5, %v2245_v21 }
 0x6b0   : > { %v2511_v31 = vpop.f32.mrb[17].mxu1  ;;  %4840 = vmatprep.mubr.msk.f32.mxu0 %vm7040_vm5, %v4020_v25 }
 0x6b1   : > { %v5310_v32 = vpack.c.bf16 %v4828_v26, %v2511_v31 }
 0x6b3   : > { %v4831_v33 = vpop.f32.mrb[18].mxu1  ;;  %5311 = vmatprep.subr.bf16.mxu0 %v5310_v32 }
 0x6b4   : > { %v2521_v39 = vpop.f32.mrb[19].mxu1  ;;  %5313 = vmatpush3.bf16.msra.mxu0 %v5310_v32 }
 0x6b5   : > { %v5314_v40 = vpack.c.bf16 %v4831_v33, %v2521_v39 }
 0x6b7   : > { %5315 = vmatprep.subr.bf16.mxu0 %v5314_v40 }
 0x6b8   : > { %5317 = vmatpush3.bf16.msra.mxu0 %v5314_v40 }
 0x6b9   : > { %5319 = vmatprep.subr.msk.bf16.mxu0 %vm5318_vm1, %v5505_v12 }
 0x6bb   : > { %4841 = vmatmul.mubr.msk.f32.vlgmr.msra.gmra.mrb[16].mxu0 %vm7040_vm5, %v4021_v28 }
 0x6bc   : > { %4843 = vmatprep.mubr.msk.f32.mxu0 %vm7040_vm5, %v4022_v8  ;;  %5321 = vmatpush3.bf16.msk.msra.mxu0 %vm5318_vm1, %v5505_v12  ;;  %vm5330_vm1 = vmpackc.low %vm2649_vm14, %vm2648_vm4  ;;  %vm7163_vm14 = vcmp.eq.s32.totalorder %v5546_v1, %v6022_v55  ;;  %v4053_v8 = vld [vmem:[%s7009_s4 + $0x28] sm:$0xff] }
 0x6bd   : > { %5323 = vmatprep.subr.msk.bf16.mxu0 %vm5322_vm8, %v5505_v12  ;;  %vm7161_vm4 = vmmov %vm7154_vm3 }
 0x6bf   : > { %4844 = vmatmul.mubr.msk.f32.gmra.mrb[18].mxu0 %vm7040_vm5, %v4023_v42  ;;  %v4054_v42 = vld [vmem:[%s7009_s4 + $0x30] sm:$0xff] }
 0x6c0   : > { %5325 = vmatpush3.bf16.msk.msra.mxu0 %vm5322_vm8, %v5505_v12  ;;  %vm7155_vm8 = vmmov %vm7154_vm3 }
 0x6c1   : > { %5327 = vmatprep.subr.msk.bf16.mxu0 %vm5326_vm7, %v5505_v12 }
 0x6c4   : > { %5329 = vmatpush3.bf16.msk.msra.mxu0 %vm5326_vm7, %v5505_v12  ;;  %vm7159_vm7 = vmmov %vm7154_vm3 }
 0x6c5   : > { %5331 = vmatprep.subr.msk.bf16.mxu0 %vm5330_vm1, %v5505_v12 }
 0x6c8   : > { %5333 = vmatpush3.bf16.msk.msra.mxu0 %vm5330_vm1, %v5505_v12  ;;  %vm3360_vm1 = vmand %vm7163_vm14, %vm3359_vm9 }
 0x78e   : > { %v4842_v44 = vpop.f32.mrb[16].mxu0 }
 0x78f   : > { %v2637_v46 = vmax.f32 %v4842_v44, 0.0  ;;  %v2613_v47 = vpop.f32.mrb[17].mxu0  ;;  %v4055_v44 = vld [vmem:[%s7009_s4 + $0x38] sm:$0xff] }
 0x790   : > { %v2636_v48 = vmax.f32 %v2613_v47, 0.0 }
 0x792   : > { %v4845_v34 = vpop.f32.mrb[18].mxu0  ;;  %4862 = vmatprep.mubr.msk.f32.mxu0 %vm7154_vm3, %v2636_v48  ;;  %4884 = vmatprep.mubr.msk.f32.mxu1 %vm7155_vm8, %v2636_v48  ;;  %v6758_v50 = vpack.c.bf16 %v2637_v46, %v2636_v48 }
 0x793   : > { %v2639_v51 = vmax.f32 %v4845_v34, 0.0  ;;  %v2623_v52 = vpop.f32.mrb[19].mxu0  ;;  %4863 = vmatmul.mubr.msk.f32.vlgmr.msra.gmra.mrb[20].mxu0 %vm7156_vm15, %v2637_v46  ;;  %4885 = vmatmul.mubr.msk.f32.vlgmr.msra.gmra.mrb[20].mxu1 %vm7157_vm11, %v2637_v46  ;;  %vm7168_vm11 = vcmp.eq.s32.totalorder %v5593_v11, %v6022_v55  ;;  %v3595_v11 = vmul.u32 8, %v3587_v23  ;;  %v2765_v34 = vld [vmem:[%s7009_s4 + $0x8] sm:$0xff] }
 0x794   : > { %v2638_v53 = vmax.f32 %v2623_v52, 0.0  ;;  %5377 = vmatpush3.bf16.msk.msra.mxu1 %vm7134_vm2, %v5505_v12  ;;  %vm7162_vm2 = vmmov %vm7154_vm3  ;;  %vm7164_vm3 = vcmp.eq.s32.totalorder %v5553_v3, %v6022_v55  ;;  %v3588_v3 = vsub.s32 %v5619_v14, %v3579_v29  ;;  %v2766_v52 = vld [vmem:[%s7009_s4 + $0x10] sm:$0xff] }
 0x795   : > { %5379 = vmatprep.subr.msk.bf16.mxu1 %vm7135_vm0, %v5505_v12  ;;  %vm3361_vm8 = vmand %vm7164_vm3, %vm3359_vm9 }
 0x796   : > { %4865 = vmatprep.mubr.msk.f32.mxu0 %vm7158_vm10, %v2638_v53  ;;  %4887 = vmatprep.mubr.msk.f32.mxu1 %vm7159_vm7, %v2638_v53  ;;  %v6771_v56 = vpack.c.bf16 %v2639_v51, %v2638_v53  ;;  %vm6808_vm10 = vmand %vm7168_vm11, %vm3359_vm9  ;;  %vm7177_vm11 = vcmp.eq.s32.totalorder %v5646_v18, %v6022_v55 }
 0x797   : > { %4866 = vmatmul.mubr.msk.f32.gmra.mrb[22].mxu0 %vm7160_vm12, %v2639_v51  ;;  %4888 = vmatmul.mubr.msk.f32.gmra.mrb[22].mxu1 %vm7161_vm4, %v2639_v51  ;;  %vm7171_vm12 = vcmp.eq.s32.totalorder %v5619_v14, %v6022_v55  ;;  %v3596_v14 = vmul.u32 8, %v3588_v3 }
 0x798   : > { %5381 = vmatpush3.bf16.msk.msra.mxu1 %vm7135_vm0, %v5505_v12  ;;  %4948 = vmatprep.mubr.msk.f32.mxu1 %vm7162_vm2, %v2636_v48  ;;  %vm7165_vm0 = vcmp.eq.s32.totalorder %v5585_v10, %v6022_v55  ;;  %vm3364_vm4 = vmand %vm7171_vm12, %vm3359_vm9  ;;  %vm7172_vm2 = vcmp.eq.s32.totalorder %v5624_v15, %v6022_v55  ;;  %v3597_v15 = vmul.u32 8, %v3589_v43 }
 0x799   : > { %5383 = vmatprep.subr.msk.bf16.mxu1 %vm7136_vm6, %v5505_v12  ;;  %vm6797_vm15 = vmand %vm7165_vm0, %vm3359_vm9  ;;  %4898 = vmatprep.mubr.msk.f32.mxu0 %vm7040_vm5, %v4052_v36  ;;  %v4064_v36 = vld [vmem:[%s7009_s4 + $0x40] sm:$0xff] }
 0x79a   : > { %vm5402_vm7 = vmpackc.low %vm6808_vm10, %vm6797_vm15 }
 0x79b   : > { %vm3365_vm14 = vmand %vm7172_vm2, %vm3359_vm9 }
 0x79c   : > { %5385 = vmatpush3.bf16.msk.msra.mxu1 %vm7136_vm6, %v5505_v12  ;;  %vm5398_vm6 = vmpackc.low %vm3361_vm8, %vm3360_vm1  ;;  %vm7173_vm1 = vcmask 523264   ;;  %vm7175_vm8 = vcmp.eq.s32.totalorder %v5641_v17, %v6022_v55  ;;  %v3583_v55 = vand.u32 7, %v5548_v2 }
 0x79d   : > { %5387 = vmatprep.subr.msk.bf16.mxu1 %vm7137_vm13, %v5505_v12  ;;  %vm5406_vm3 = vmpackc.low %vm3365_vm14, %vm3364_vm4 }
 0x79e   : > { %vm3366_vm0 = vmand %vm7175_vm8, %vm3359_vm9  ;;  %v3600_v13 = vsub.s32 %v5548_v2, %v3583_v55  ;;  %v6863_v16 = vmul.u32 2, %v3583_v55 }
 0x79f   : > { %vm7176_vm15 = vmmov %vm7173_vm1 }
 0x7a0   : > { %5389 = vmatpush3.bf16.msk.msra.mxu1 %vm7137_vm13, %v5505_v12  ;;  %vm7174_vm13 = vmmov %vm7173_vm1  ;;  %v3611_v61 = vsub.s32 %v3575_v37, %v6863_v16  ;;  %v3612_v62 = vsub.s32 %v3576_v38, %v6863_v16  ;;  %v6870_v63 = vmul.u32 16, %v3600_v13  ;;  %v3615_v4 = vsub.s32 %v3579_v29, %v6863_v16  ;;  %v4066_v37 = vld [vmem:[%s7009_s4 + $0x50] sm:$0xff]  ;;  %v4084_v38 = vld [vmem:[%s7009_s4 + $0x60] sm:$0xff] }
 0x7a1   : > { %5399 = vmatprep.subr.msk.bf16.mxu1 %vm5398_vm6, %v5505_v12  ;;  %vm3367_vm10 = vmand %vm7177_vm11, %vm3359_vm9  ;;  %v3616_v5 = vsub.s32 %v3580_v49, %v6863_v16  ;;  %v4104_v49 = vld [vmem:[%s7009_s4 + $0x80] sm:$0xff] }
 0x7a2   : > { %vm7178_vm12 = vmmov %vm7173_vm1  ;;  %vm3619_vm9 = vcmp.ge.s32.totalorder %v3611_v61, 4294967295  ;;  %vm3607_vm5 = vcmp.eq.s32.totalorder %v3597_v15, %v6870_v63 }
 0x7a3   : > { %4949 = vmatmul.mubr.msk.f32.vlgmr.msra.gmra.mrb[24].mxu1 %vm7173_vm1, %v2637_v46  ;;  %vm7179_vm4 = vmmov %vm7173_vm1 }
 0x7a4   : > { %4951 = vmatprep.mubr.msk.f32.mxu1 %vm7174_vm13, %v2638_v53  ;;  %5401 = vmatpush3.bf16.msk.msra.mxu1 %vm5398_vm6, %v5505_v12  ;;  %vm5410_vm6 = vmpackc.low %vm3367_vm10, %vm3366_vm0  ;;  %vm3603_vm13 = vcmp.eq.s32.totalorder %v3593_v24, %v6870_v63  ;;  %vm3636_vm0 = vcmp.le.s32.totalorder %v3612_v62, 2  ;;  %v4106_v24 = vld [vmem:[%s7009_s4 + $0x90] sm:$0xff] }
 0x7a5   : > { %5403 = vmatprep.subr.msk.bf16.mxu1 %vm5402_vm7, %v5505_v12  ;;  %vm7180_vm2 = vmmov %vm7173_vm1 }
 0x7a6   : > { %vm7181_vm14 = vmmov %vm7173_vm1  ;;  %vm3602_vm1 = vcmp.eq.s32.totalorder %v3592_v22, %v6870_v63  ;;  %v4105_v22 = vld [vmem:[%s7009_s4 + $0x88] sm:$0xff] }
 0x7a7   : > { %4952 = vmatmul.mubr.msk.f32.gmra.mrb[26].mxu1 %vm7176_vm15, %v2639_v51  ;;  %vm3627_vm8 = vmand %vm3602_vm1, %vm3619_vm9 }
 0x7a8   : > { %5405 = vmatpush3.bf16.msk.msra.mxu1 %vm5402_vm7, %v5505_v12  ;;  %4984 = vmatprep.mubr.msk.f32.mxu1 %vm7178_vm12, %v2636_v48  ;;  %vm3620_vm7 = vcmp.ge.s32.totalorder %v3612_v62, 4294967295  ;;  %v3581_v62 = vand.u32 15, %v5641_v17 }
 0x7a9   : > { %5407 = vmatprep.subr.msk.bf16.mxu1 %vm5406_vm3, %v5505_v12  ;;  %vm3628_vm15 = vmand %vm3603_vm13, %vm3620_vm7 }
 0x7aa   : > { %v3590_v3 = vsub.s32 %v5641_v17, %v3581_v62  ;;  %v3617_v43 = vsub.s32 %v3581_v62, %v6863_v16 }
 0x7ac   : > { %5409 = vmatpush3.bf16.msk.msra.mxu1 %vm5406_vm3, %v5505_v12  ;;  %vm3635_vm3 = vcmp.le.s32.totalorder %v3611_v61, 2  ;;  %v4107_v61 = vld [vmem:[%s7009_s4 + $0x98] sm:$0xff] }
 0x7ad   : > { %5411 = vmatprep.subr.msk.bf16.mxu1 %vm5410_vm6, %v5505_v12  ;;  %vm6878_vm11 = vmand %vm3627_vm8, %vm3635_vm3  ;;  %vm3606_vm8 = vcmp.eq.s32.totalorder %v3596_v14, %v6870_v63 }
 0x7b0   : > { %5413 = vmatpush3.bf16.msk.msra.mxu1 %vm5410_vm6, %v5505_v12  ;;  %v3577_v12 = vand.u32 15, %v5585_v10  ;;  %vm3644_vm6 = vmand %vm3628_vm15, %vm3636_vm0  ;;  %vm3623_vm0 = vcmp.ge.s32.totalorder %v3615_v4, 4294967295 }
 0x7b2   : > { %v3586_v20 = vsub.s32 %v5585_v10, %v3577_v12  ;;  %v3613_v2 = vsub.s32 %v3577_v12, %v6863_v16  ;;  %v3614_v10 = vsub.s32 %v3578_v58, %v6863_v16  ;;  %v4085_v58 = vld [vmem:[%s7009_s4 + $0x68] sm:$0xff] }
 0x7b3   : > { %4985 = vmatmul.mubr.msk.f32.vlgmr.msra.gmra.mrb[28].mxu1 %vm7179_vm4, %v2637_v46  ;;  %vm3605_vm4 = vcmp.eq.s32.totalorder %v3595_v11, %v6870_v63  ;;  %v2764_v46 = vld [vmem:[%s7009_s4] sm:$0xff] }
 0x7b4   : > { %4987 = vmatprep.mubr.msk.f32.mxu1 %vm7180_vm2, %v2638_v53  ;;  %v3594_v1 = vmul.u32 8, %v3586_v20  ;;  %vm3621_vm12 = vcmp.ge.s32.totalorder %v3613_v2, 4294967295  ;;  %vm3622_vm2 = vcmp.ge.s32.totalorder %v3614_v10, 4294967295  ;;  %vm3637_vm9 = vcmp.le.s32.totalorder %v3613_v2, 2  ;;  %v4087_v20 = vld [vmem:[%s7009_s4 + $0x78] sm:$0xff] }
 0x7b5   : > { %vm3638_vm1 = vcmp.le.s32.totalorder %v3614_v10, 2  ;;  %vm3630_vm13 = vmand %vm3605_vm4, %vm3622_vm2  ;;  %v3598_v10 = vmul.u32 8, %v3590_v3 }
 0x7b6   : > { %vm3604_vm10 = vcmp.eq.s32.totalorder %v3594_v1, %v6870_v63  ;;  %vm3646_vm15 = vmand %vm3630_vm13, %vm3638_vm1  ;;  %v3582_v1 = vand.u32 15, %v5646_v18 }
 0x7b7   : > { %4988 = vmatmul.mubr.msk.f32.gmra.mrb[30].mxu1 %vm7181_vm14, %v2639_v51  ;;  %vm5422_vm14 = vmpackc.low %vm3644_vm6, %vm6878_vm11  ;;  %vm3624_vm11 = vcmp.ge.s32.totalorder %v3616_v5, 4294967295 }
 0x7b8   : > { %5423 = vmatprep.subr.msk.bf16.mxu1 %vm5422_vm14, %v5507_v7  ;;  %vm3629_vm7 = vmand %vm3604_vm10, %vm3621_vm12  ;;  %vm3639_vm10 = vcmp.le.s32.totalorder %v3615_v4, 2  ;;  %v3591_v2 = vsub.s32 %v5646_v18, %v3582_v1  ;;  %v3618_v0 = vsub.s32 %v3582_v1, %v6863_v16 }
 0x7b9   : > { %5425 = vmatpush3.bf16.msk.msra.mxu1 %vm5422_vm14, %v5507_v7  ;;  %vm3645_vm3 = vmand %vm3629_vm7, %vm3637_vm9  ;;  %vm3640_vm14 = vcmp.le.s32.totalorder %v3616_v5, 2 }
 0x7ba   : > { %vm5426_vm6 = vmpackc.low %vm3646_vm15, %vm3645_vm3  ;;  %v3599_v11 = vmul.u32 8, %v3591_v2 }
 0x7bb   : > { %5427 = vmatprep.subr.msk.bf16.mxu1 %vm5426_vm6, %v5507_v7  ;;  %vm3631_vm12 = vmand %vm3606_vm8, %vm3623_vm0 }
 0x7bc   : > { %vm3632_vm2 = vmand %vm3607_vm5, %vm3624_vm11  ;;  %vm7184_vm5 = vcmask 261120  }
 0x7bd   : > { %5429 = vmatpush3.bf16.msk.msra.mxu1 %vm5426_vm6, %v5507_v7  ;;  %vm3647_vm4 = vmand %vm3631_vm12, %vm3639_vm10 }
 0x7be   : > { %vm3648_vm7 = vmand %vm3632_vm2, %vm3640_vm14 }
 0x7bf   : > { %vm5430_vm9 = vmpackc.low %vm3648_vm7, %vm3647_vm4 }
 0x7c0   : > { %5431 = vmatprep.subr.msk.bf16.mxu1 %vm5430_vm9, %v5507_v7  ;;  %vm7185_vm1 = vmmov %vm7184_vm5 }
 0x7c1   : > { %5433 = vmatpush3.bf16.msk.msra.mxu1 %vm5430_vm9, %v5507_v7  ;;  %vm7186_vm13 = vmmov %vm7185_vm1 }
 0x7c2   : > { %vm7187_vm3 = vmmov %vm7185_vm1 }
 0x7c3   : > { %vm7188_vm8 = vmmov %vm7185_vm1 }
 0x7c4   : > { %vm7189_vm0 = vmmov %vm7185_vm1 }
 0x7c5   : > { %vm7190_vm15 = vmmov %vm7189_vm0 }
 0x7c6   : > { %vm7191_vm11 = vmmov %vm7189_vm0 }
 0x7c7   : > { %vm7192_vm6 = vmmov %vm7189_vm0 }
 0x7c8   : > { %vm7193_vm10 = vmmov %vm7189_vm0 }
 0x7c9   : > { %vm7194_vm12 = vmmov %vm7189_vm0 }
 0x7ca   : > { %vm7195_vm14 = vmmov %vm7189_vm0 }
 0x7cb   : > { %vm7196_vm2 = vmmov %vm7189_vm0 }
 0x7cc   : > { %vm7197_vm4 = vmmov %vm7189_vm0 }
 0x7cd   : > { %vm7198_vm7 = vmmov %vm7189_vm0 }
 0x7ce   : > { %vm7199_vm9 = vmmov %vm7189_vm0 }
 0x866   : > { %v4864_v9 = vpop.f32.mrb[20].mxu0  ;;  %v4886_v21 = vpop.f32.mrb[20].mxu1 }
 0x867   : > { %v2745_v25 = vpop.f32.mrb[21].mxu0  ;;  %v2834_v26 = vpop.f32.mrb[21].mxu1 }
 0x868   : > { %v5358_v31 = vpack.c.bf16 %v4864_v9, %v2745_v25  ;;  %v5350_v32 = vpack.c.bf16 %v4886_v21, %v2834_v26 }
 0x86a   : > { %v4867_v33 = vpop.f32.mrb[22].mxu0  ;;  %v4889_v39 = vpop.f32.mrb[22].mxu1  ;;  %5351 = vmatprep.subr.bf16.mxu0 %v5350_v32 }
 0x86b   : > { %v2755_v40 = vpop.f32.mrb[23].mxu0  ;;  %v2844_v27 = vpop.f32.mrb[23].mxu1  ;;  %5353 = vmatpush3.bf16.msra.mxu0 %v5350_v32 }
 0x86c   : > { %v5362_v41 = vpack.c.bf16 %v4867_v33, %v2755_v40  ;;  %v5354_v28 = vpack.c.bf16 %v4889_v39, %v2844_v27 }
 0x86e   : > { %5355 = vmatprep.subr.bf16.mxu0 %v5354_v28 }
 0x86f   : > { %5357 = vmatpush3.bf16.msra.mxu0 %v5354_v28 }
 0x870   : > { %5359 = vmatprep.subr.bf16.mxu0 %v5358_v31 }
 0x872   : > { %4899 = vmatmul.mubr.msk.f32.vlgmr.msra.gmra.mrb[24].mxu0 %vm7184_vm5, %v4053_v8  ;;  %vm7200_vm5 = vmmov %vm7189_vm0 }
 0x873   : > { %5361 = vmatpush3.bf16.msra.mxu0 %v5358_v31  ;;  %4901 = vmatprep.mubr.msk.f32.mxu0 %vm7185_vm1, %v4054_v42  ;;  %vm7201_vm1 = vmmov %vm7189_vm0 }
 0x874   : > { %5363 = vmatprep.subr.bf16.mxu0 %v5362_v41 }
 0x876   : > { %v4950_v47 = vpop.f32.mrb[24].mxu1  ;;  %4902 = vmatmul.mubr.msk.f32.gmra.mrb[26].mxu0 %vm7186_vm13, %v4055_v44  ;;  %vm7202_vm13 = vmmov %vm7189_vm0 }
 0x877   : > { %v3224_v48 = vpop.f32.mrb[25].mxu1  ;;  %5365 = vmatpush3.bf16.msra.mxu0 %v5362_v41  ;;  %4912 = vmatprep.mubr.msk.f32.mxu0 %vm7187_vm3, %v2764_v46  ;;  %vm3608_vm3 = vcmp.eq.s32.totalorder %v3598_v10, %v6870_v63 }
 0x878   : > { %v5390_v51 = vpack.c.bf16 %v4950_v47, %v3224_v48  ;;  %5367 = vmatprep.subr.bf16.mxu0 %v6758_v50 }
 0x87a   : > { %v4953_v19 = vpop.f32.mrb[26].mxu1  ;;  %4913 = vmatmul.mubr.msk.f32.vlgmr.msra.gmra.mrb[24].mxu0 %vm7188_vm8, %v2765_v34  ;;  %vm3609_vm8 = vcmp.eq.s32.totalorder %v3599_v11, %v6870_v63 }
 0x87b   : > { %v3234_v53 = vpop.f32.mrb[27].mxu1  ;;  %5369 = vmatpush3.bf16.msra.mxu0 %v6758_v50  ;;  %4915 = vmatprep.mubr.msk.f32.mxu0 %vm7189_vm0, %v2766_v52  ;;  %v4065_v50 = vld [vmem:[%s7009_s4 + $0x48] sm:$0xff]  ;;  %vm3625_vm0 = vcmp.ge.s32.totalorder %v3617_v43, 4294967295 }
 0x87c   : > { %v5394_v35 = vpack.c.bf16 %v4953_v19, %v3234_v53  ;;  %5371 = vmatprep.subr.bf16.mxu0 %v6771_v56 }
 0x87e   : > { %4916 = vmatmul.mubr.msk.f32.gmra.mrb[26].mxu0 %vm7190_vm15, %v2767_v6  ;;  %vm3626_vm15 = vcmp.ge.s32.totalorder %v3618_v0, 4294967295 }
 0x87f   : > { %5373 = vmatpush3.bf16.msra.mxu0 %v6771_v56  ;;  %4926 = vmatprep.mubr.msk.f32.mxu0 %vm7191_vm11, %v4064_v36  ;;  %v4067_v56 = vld [vmem:[%s7009_s4 + $0x58] sm:$0xff]  ;;  %vm3633_vm11 = vmand %vm3608_vm3, %vm3625_vm0 }
 0x880   : > { %5391 = vmatprep.subr.bf16.mxu0 %v5390_v51  ;;  %vm7207_vm3 = vmmov %vm7202_vm13 }
 0x881   : > { %vm7209_vm0 = vmmov %vm7207_vm3 }
 0x882   : > { %4927 = vmatmul.mubr.msk.f32.vlgmr.msra.gmra.mrb[24].mxu0 %vm7192_vm6, %v4065_v50  ;;  %vm3641_vm6 = vcmp.le.s32.totalorder %v3617_v43, 2 }
 0x883   : > { %5393 = vmatpush3.bf16.msra.mxu0 %v5390_v51  ;;  %4929 = vmatprep.mubr.msk.f32.mxu0 %vm7193_vm10, %v4066_v37  ;;  %vm3642_vm10 = vcmp.le.s32.totalorder %v3618_v0, 2 }
 0x884   : > { %5395 = vmatprep.subr.bf16.mxu0 %v5394_v35 }
 0x886   : > { %v4986_v55 = vpop.f32.mrb[28].mxu1  ;;  %4930 = vmatmul.mubr.msk.f32.gmra.mrb[26].mxu0 %vm7194_vm12, %v4067_v56  ;;  %vm3634_vm12 = vmand %vm3609_vm8, %vm3626_vm15 }
 0x887   : > { %v3442_v12 = vpop.f32.mrb[29].mxu1  ;;  %5397 = vmatpush3.bf16.msra.mxu0 %v5394_v35  ;;  %4962 = vmatprep.mubr.msk.f32.mxu0 %vm7195_vm14, %v4084_v38  ;;  %vm3649_vm14 = vmand %vm3633_vm11, %vm3641_vm6 }
 0x888   : > { %v5414_v29 = vpack.c.bf16 %v4986_v55, %v3442_v12  ;;  %vm7208_vm8 = vmmov %vm7207_vm3 }
 0x88a   : > { %v4989_v60 = vpop.f32.mrb[30].mxu1  ;;  %5415 = vmatprep.subr.bf16.mxu0 %v5414_v29  ;;  %4963 = vmatmul.mubr.msk.f32.vlgmr.msra.gmra.mrb[24].mxu0 %vm7196_vm2, %v4085_v58  ;;  %vm3650_vm2 = vmand %vm3634_vm12, %vm3642_vm10 }
 0x88b   : > { %v3452_v13 = vpop.f32.mrb[31].mxu1  ;;  %5417 = vmatpush3.bf16.msra.mxu0 %v5414_v29  ;;  %4965 = vmatprep.mubr.msk.f32.mxu0 %vm7197_vm4, %v4086_v45  ;;  %vm5434_vm4 = vmpackc.low %vm3650_vm2, %vm3649_vm14 }
 0x88c   : > { %v5418_v23 = vpack.c.bf16 %v4989_v60, %v3452_v13  ;;  %5435 = vmatprep.subr.msk.bf16.mxu1 %vm5434_vm4, %v5507_v7 }
 0x88d   : > { %5437 = vmatpush3.bf16.msk.msra.mxu1 %vm5434_vm4, %v5507_v7 }
 0x88e   : > { %5419 = vmatprep.subr.bf16.mxu0 %v5418_v23  ;;  %4966 = vmatmul.mubr.msk.f32.gmra.mrb[26].mxu0 %vm7198_vm7, %v4087_v20  ;;  %vm7203_vm7 = vcmask 523264  }
 0x88f   : > { %5421 = vmatpush3.bf16.msra.mxu0 %v5418_v23  ;;  %4998 = vmatprep.mubr.msk.f32.mxu0 %vm7199_vm9, %v4104_v49  ;;  %vm7204_vm9 = vmmov %vm7203_vm7 }
 0x892   : > { %4999 = vmatmul.mubr.msk.f32.vlgmr.msra.gmra.mrb[24].mxu0 %vm7200_vm5, %v4105_v22  ;;  %vm7205_vm5 = vmmov %vm7203_vm7 }
 0x893   : > { %5001 = vmatprep.mubr.msk.f32.mxu0 %vm7201_vm1, %v4106_v24  ;;  %vm7206_vm1 = vmmov %vm7205_vm5 }
 0x896   : > { %5002 = vmatmul.mubr.msk.f32.gmra.mrb[26].mxu0 %vm7202_vm13, %v4107_v61 }
 0x965   : > { %v5000_v17 = vpop.f32.mrb[24].mxu0 }
 0x966   : > { %v3568_v18 = vadd.f32 %v5000_v17, %v6557_v54  ;;  %v3544_v16 = vpop.f32.mrb[25].mxu0 }
 0x967   : > { %v3567_v63 = vadd.f32 %v3544_v16, %v6559_v57 }
 0x968   : > { %v3572_v15 = vmax.f32 %v3568_v18, 0.0 }
 0x969   : > { %v3571_v14 = vmax.f32 %v3567_v63, 0.0  ;;  %v5003_v4 = vpop.f32.mrb[26].mxu0 }
 0x96a   : > { %v3570_v5 = vadd.f32 %v5003_v4, %v6565_v30  ;;  %v3554_v9 = vpop.f32.mrb[27].mxu0 }
 0x96b   : > { %v3569_v21 = vadd.f32 %v3554_v9, %v6569_v59  ;;  %5020 = vmatprep.mubr.msk.f32.mxu1 %vm7203_vm7, %v3571_v14 }
 0x96c   : > { %5021 = vmatmul.mubr.msk.f32.vlgmr.msra.gmra.mrb[32].mxu1 %vm7204_vm9, %v3572_v15  ;;  %v3574_v25 = vmax.f32 %v3570_v5, 0.0 }
 0x96d   : > { %v3573_v7 = vmax.f32 %v3569_v21, 0.0 }
 0x96f   : > { %5023 = vmatprep.mubr.msk.f32.mxu1 %vm7205_vm5, %v3573_v7 }
 0x970   : > { %5024 = vmatmul.mubr.msk.f32.gmra.mrb[34].mxu1 %vm7206_vm1, %v3574_v25 }
 0xa3f   : > { %v5022_v54 = vpop.f32.mrb[32].mxu1 }
 0xa40   : > { %3757 = vst.msk [vmem:[%s224_s15 + $0x8] sm:$0xff] %vm7202_vm13, %v5022_v54  ;;  %v3737_v57 = vpop.f32.mrb[33].mxu1 }
 0xa41   : > { %3756 = vst.msk [vmem:[%s224_s15] sm:$0xff] %vm7207_vm3, %v3737_v57 }
 0xa43   : > { %v5025_v30 = vpop.f32.mrb[34].mxu1 }
 0xa44   : > { %3759 = vst.msk [vmem:[%s224_s15 + $0x18] sm:$0xff] %vm7208_vm8, %v5025_v30  ;;  %v3747_v59 = vpop.f32.mrb[35].mxu1 }
 0xa45   : > { %3758 = vst.msk [vmem:[%s224_s15 + $0x10] sm:$0xff] %vm7209_vm0, %v3747_v59 }
 0xa46 PF: > { %s15_s18 = sadd.s32 1, %s5503_s18  }
 0xa47   : > { %p12_p4 = scmp.ge.s32.totalorder %s15_s18, 4  }
 0xa49   :  { %14 = sbr.rel (!%p12_p4) target bundleno = 1 (0x1), region = 82 }

</bundles_post_ra>
